<compile_context>
chip_gen: v7x
topology: tpu7x:2x2x1
jax: 0.10.0
libtpu: 0.0.40
codegen_flags: <defaults>
</compile_context>

<pallas_src>
import functools

import jax
import jax.numpy as jnp
from jax import lax
from jax.experimental import pallas as pl
from jax.experimental.pallas import tpu as pltpu

N_TREE = 32     # module-level N in the reference (segment tree over 32 leaves)
LEVELS = 5      # log2(N_TREE): number of `while l < r` iterations
LN_EPS = 1e-5   # torch.nn.LayerNorm default eps


# ------------------------------ kernel helpers ------------------------------

def _layer_norm(s, w, b):
    mu = jnp.mean(s, axis=-1, keepdims=True)
    var = jnp.mean((s - mu) * (s - mu), axis=-1, keepdims=True)
    return (s - mu) * lax.rsqrt(var + LN_EPS) * w + b


def _segtree_mha(q, kv, sel, head_mask, w_o, *, sq, heads, d):
    """Multi-head SegmentTreeAttention (valid_lens=None) + output projection.

    q:   (sq, H)      query projection, head h in columns [h*d, (h+1)*d)
    kv:  (skv, 2H)    columns [0,H) = keys, [H,2H) = values (all heads)
    sel: (2*NT, skv)  precomputed 0/1 subtree-selection (rows 0..NT-1 = left
                      child of node p, rows NT..2NT-1 = right child)
    head_mask: (heads*sq, H) 0/1, row h*sq+i has ones only in head h's columns
    w_o: (H, H)
    Returns (sq, H) == concat_heads(attention) @ w_o.
    """
    f32 = jnp.float32
    H = heads * d
    NT = N_TREE
    R = heads * sq

    # Tree "pair" table: one matmul builds key/value sums of BOTH children of
    # every internal node; row p = [K(2p) | V(2p) | K(2p+1) | V(2p+1)].
    tkv = jnp.dot(sel, kv, preferred_element_type=f32)              # (2NT, 2H)
    pairs = jnp.concatenate([tkv[0:NT, :], tkv[NT:2 * NT, :]], axis=-1)  # (NT,4H)

    # Head-stacked, head-masked queries: row h*sq+i holds q[i] restricted to
    # head h's feature block, so a full-width q.k reduce yields exactly head
    # h's score (lets the descent run for all heads in one matmul per level).
    q_all = jnp.concatenate([q] * heads, axis=0) * head_mask        # (R, H)

    node_col = lax.broadcasted_iota(jnp.int32, (R, NT), 1)
    idv = jnp.ones((R, 1), jnp.int32)                               # current node
    ans = jnp.zeros((R, H), f32)
    for lev in range(LEVELS):
        decay = 0.5 ** (LEVELS - 1 - lev)        # folds the per-level ans*0.5
        oh = (node_col == idv).astype(f32)                          # (R, NT)
        g = jnp.dot(oh, pairs, preferred_element_type=f32)          # (R, 4H)
        lk = g[:, 0:H]
        lv = g[:, H:2 * H]
        rk = g[:, 2 * H:3 * H]
        rv = g[:, 3 * H:4 * H]
        raw = jnp.concatenate(
            [jnp.sum(q_all * lk, axis=-1, keepdims=True),
             jnp.sum(q_all * rk, axis=-1, keepdims=True)], axis=-1)  # (R, 2)
        sig = jax.nn.sigmoid(raw)                                    # one EUP call
        ls = sig[:, 0:1]
        rs = sig[:, 1:2]
        go_left = ls >= rs
        # ls >= rs: add RIGHT child's value * rs and descend LEFT (else vice
        # versa); matches the reference recurrence ans = ans*0.5 + child*score.
        ans = ans + jnp.where(go_left, rv * (rs * decay), lv * (ls * decay))
        idv = jnp.where(go_left, 2 * idv, 2 * idv + 1)

    # Head-block-diagonal extraction + concat -> (sq, H); one fused W_o matmul.
    masked = ans * head_mask
    concat = masked[0:sq, :]
    for h in range(1, heads):
        concat = concat + masked[h * sq:(h + 1) * sq, :]
    return jnp.dot(concat, w_o, preferred_element_type=f32)


# ------------------------------ fused kernel --------------------------------

def decoder_block_kernel(
        x_ref, enc_ref, sel_dec_ref, sel_enc_ref, hm_ref,
        w_qkv1_ref, w_o1_ref, ln1_w_ref, ln1_b_ref,
        w_q2_ref, w_kv2_ref, w_o2_ref, ln2_w_ref, ln2_b_ref,
        ffn_w1_ref, ffn_b1_ref, ffn_w2_ref, ffn_b2_ref, ln3_w_ref, ln3_b_ref,
        out_ref, *, s_dec, heads):
    f32 = jnp.float32
    x = x_ref[...]                       # (S, H)    this batch's decoder rows
    enc = enc_ref[...]                   # (S_enc, H) this batch's encoder rows
    hm = hm_ref[...]                     # (heads*S, H) head mask
    H = x.shape[1]
    d = H // heads

    # ---- self attention (key_values == X): fused QKV projection, no bias.
    qkv = jnp.dot(x, w_qkv1_ref[...], preferred_element_type=f32)   # (S, 3H)
    x2 = _segtree_mha(qkv[:, 0:H], qkv[:, H:3 * H], sel_dec_ref[...], hm,
                      w_o1_ref[...], sq=s_dec, heads=heads, d=d)
    y = _layer_norm(x + x2, ln1_w_ref[...], ln1_b_ref[...])

    # ---- cross attention over encoder outputs (enc_valid_lens == None).
    q2 = jnp.dot(y, w_q2_ref[...], preferred_element_type=f32)      # (S, H)
    kv2 = jnp.dot(enc, w_kv2_ref[...], preferred_element_type=f32)  # (S_enc, 2H)
    y2 = _segtree_mha(q2, kv2, sel_enc_ref[...], hm, w_o2_ref[...],
                      sq=s_dec, heads=heads, d=d)
    z = _layer_norm(y + y2, ln2_w_ref[...], ln2_b_ref[...])

    # ---- position-wise FFN + final AddNorm.
    hdn = jnp.maximum(
        jnp.dot(z, ffn_w1_ref[...], preferred_element_type=f32) + ffn_b1_ref[...],
        0.0)
    f = jnp.dot(hdn, ffn_w2_ref[...], preferred_element_type=f32) + ffn_b2_ref[...]
    out_ref[...] = _layer_norm(z + f, ln3_w_ref[...], ln3_b_ref[...])


# --------------------- hoisted constant tables (wrapper) ---------------------

def _build_subtree_selectors(skv):
    """(2*NT, skv) 0/1 table: row p (< NT) selects valid leaves in the subtree
    of node 2p (left child), row NT+p selects node 2p+1 (right child).
    Leaf for key index j sits at tree node NT + j - 1 and is valid iff
    1 <= j <= NT and j < n (= skv), matching the reference Build()."""
    p = jnp.arange(N_TREE, dtype=jnp.int32)[:, None]          # (NT, 1)
    j = jnp.arange(skv, dtype=jnp.int32)[None, :]             # (1, skv)
    leaf = N_TREE + j - 1
    valid = (j >= 1) & (j <= N_TREE)

    def in_subtree(node):
        m = leaf == node
        for t in range(1, LEVELS + 1):
            m = m | ((leaf >> t) == node)
        return m

    sel_l = (valid & in_subtree(2 * p)).astype(jnp.float32)
    sel_r = (valid & in_subtree(2 * p + 1)).astype(jnp.float32)
    return jnp.concatenate([sel_l, sel_r], axis=0)            # (2*NT, skv)


def _build_head_mask(heads, sq, hidden):
    d = hidden // heads
    r = jnp.arange(heads * sq, dtype=jnp.int32)[:, None]
    c = jnp.arange(hidden, dtype=jnp.int32)[None, :]
    return ((r // sq) == (c // d)).astype(jnp.float32)        # (heads*sq, H)


# ------------------------------ python wrapper -------------------------------

def decoder_block_forward(X, state, params, num_heads):
    # TODO(synk): training-time causal dec_valid_lens, non-None enc_valid_lens
    # and decode-time KV-cache concat (state[2] not None) are not implemented;
    # this reproduces eval-mode, cache-free semantics (key_values == X,
    # valid_lens == None).
    enc_outputs, enc_valid_lens, cache = state
    key_values = X
    new_state = (enc_outputs, enc_valid_lens, key_values)

    B, S, H = X.shape
    S_enc = enc_outputs.shape[1]
    ffn_hidden = params["ffn_w1"].shape[1]

    # Hoisted, shape-static constant tables (DMA of these is free under the
    # pipeline; removes all in-kernel iota/shift/compare mask construction).
    sel_dec = _build_subtree_selectors(S)
    sel_enc = _build_subtree_selectors(S_enc)
    head_mask = _build_head_mask(num_heads, S, H)

    kernel = functools.partial(decoder_block_kernel, s_dec=S, heads=num_heads)

    def const(shape):
        return pl.BlockSpec(shape, lambda b: (0, 0))

    grid_spec = pltpu.PrefetchScalarGridSpec(
        num_scalar_prefetch=0,
        grid=(B,),                                        # one batch per step
        in_specs=[
            pl.BlockSpec((S, H), lambda b: (b, 0)),       # X rows of batch b
            pl.BlockSpec((S_enc, H), lambda b: (b, 0)),   # enc rows of batch b
            const((2 * N_TREE, S)),                       # sel_dec
            const((2 * N_TREE, S_enc)),                   # sel_enc
            const((num_heads * S, H)),                    # head mask
            const((H, 3 * H)), const((H, H)), const((1, H)), const((1, H)),
            const((H, H)), const((H, 2 * H)), const((H, H)),
            const((1, H)), const((1, H)),
            const((H, ffn_hidden)), const((1, ffn_hidden)),
            const((ffn_hidden, H)), const((1, H)),
            const((1, H)), const((1, H)),
        ],
        out_specs=pl.BlockSpec((S, H), lambda b: (b, 0)),
    )

    out2d = pl.pallas_call(
        kernel,
        out_shape=jax.ShapeDtypeStruct((B * S, H), jnp.float32),
        grid_spec=grid_spec,
        compiler_params=pltpu.CompilerParams(
            dimension_semantics=("parallel",),            # v7x: 2 TCs share B
            vmem_limit_bytes=32 * 1024 * 1024),           # v5e default is 16MiB
    )(
        X.reshape(B * S, H), enc_outputs.reshape(B * S_enc, H),
        sel_dec, sel_enc, head_mask,
        params["w_qkv1"], params["w_o1"], params["ln1_w"], params["ln1_b"],
        params["w_q2"], params["w_kv2"], params["w_o2"],
        params["ln2_w"], params["ln2_b"],
        params["ffn_w1"], params["ffn_b1"], params["ffn_w2"], params["ffn_b2"],
        params["ln3_w"], params["ln3_b"],
    )
    return out2d.reshape(B, S, H), new_state


def init_params(key, h, ffn_hidden):
    ks = jax.random.split(key, 12)

    def lin(k, fin, fout, scale=0.1):
        return jax.random.normal(k, (fin, fout), jnp.float32) * scale

    params = {
        # attention 1: fused [Wq | Wk | Wv]; attention projections have no bias.
        "w_qkv1": jnp.concatenate(
            [lin(ks[0], h, h), lin(ks[1], h, h), lin(ks[2], h, h)], axis=1),
        "w_o1": lin(ks[3], h, h),
        # attention 2: separate Wq, fused [Wk | Wv].
        "w_q2": lin(ks[4], h, h),
        "w_kv2": jnp.concatenate([lin(ks[5], h, h), lin(ks[6], h, h)], axis=1),
        "w_o2": lin(ks[7], h, h),
        "ln1_w": jnp.ones((1, h), jnp.float32), "ln1_b": jnp.zeros((1, h), jnp.float32),
        "ln2_w": jnp.ones((1, h), jnp.float32), "ln2_b": jnp.zeros((1, h), jnp.float32),
        "ln3_w": jnp.ones((1, h), jnp.float32), "ln3_b": jnp.zeros((1, h), jnp.float32),
        "ffn_w1": lin(ks[8], h, ffn_hidden),
        "ffn_b1": jax.random.normal(ks[9], (1, ffn_hidden), jnp.float32) * 0.1,
        "ffn_w2": lin(ks[10], ffn_hidden, h),
        "ffn_b2": jax.random.normal(ks[11], (1, h), jnp.float32) * 0.1,
    }
    return params


if __name__ == "__main__":
    # Small shapes consistent with norm_shape=[32] in the reference.
    B, S_DEC, S_ENC, H, HEADS, FFN_HID = 2, 8, 8, 32, 4, 64

    key = jax.random.PRNGKey(0)
    k_x, k_enc, k_p = jax.random.split(key, 3)
    X = jax.random.normal(k_x, (B, S_DEC, H), jnp.float32)
    enc_outputs = jax.random.normal(k_enc, (B, S_ENC, H), jnp.float32)
    params = init_params(k_p, H, FFN_HID)

    state = (enc_outputs, None, None)   # (enc_outputs, enc_valid_lens, cache[i])
    fwd = jax.jit(decoder_block_forward, static_argnums=(3,))
    out, new_state = fwd(X, state, params, HEADS)
    out = jax.block_until_ready(out)
    assert out.shape == (B, S_DEC, H) and out.dtype == jnp.float32
    assert bool(jnp.all(jnp.isfinite(out)))
    print("KERNEL_OK")
</pallas_src>

<mosaic_0001>
module attributes {stable_mosaic.version = 11 : i64} {
  func.func @decoder_block_kernel(%arg0: i32, %arg1: memref<8x32xf32, #tpu.memory_space<vmem>>, %arg2: memref<8x32xf32, #tpu.memory_space<vmem>>, %arg3: memref<64x8xf32, #tpu.memory_space<vmem>>, %arg4: memref<64x8xf32, #tpu.memory_space<vmem>>, %arg5: memref<32x32xf32, #tpu.memory_space<vmem>>, %arg6: memref<32x96xf32, #tpu.memory_space<vmem>>, %arg7: memref<32x32xf32, #tpu.memory_space<vmem>>, %arg8: memref<1x32xf32, #tpu.memory_space<vmem>>, %arg9: memref<1x32xf32, #tpu.memory_space<vmem>>, %arg10: memref<32x32xf32, #tpu.memory_space<vmem>>, %arg11: memref<32x64xf32, #tpu.memory_space<vmem>>, %arg12: memref<32x32xf32, #tpu.memory_space<vmem>>, %arg13: memref<1x32xf32, #tpu.memory_space<vmem>>, %arg14: memref<1x32xf32, #tpu.memory_space<vmem>>, %arg15: memref<32x64xf32, #tpu.memory_space<vmem>>, %arg16: memref<1x64xf32, #tpu.memory_space<vmem>>, %arg17: memref<64x32xf32, #tpu.memory_space<vmem>>, %arg18: memref<1x32xf32, #tpu.memory_space<vmem>>, %arg19: memref<1x32xf32, #tpu.memory_space<vmem>>, %arg20: memref<1x32xf32, #tpu.memory_space<vmem>>, %arg21: memref<8x32xf32, #tpu.memory_space<vmem>>) attributes {dimension_semantics = [#tpu.dimension_semantics<parallel>], iteration_bounds = array<i64: 2>, scalar_prefetch = 0 : i64, scratch_operands = 0 : i64, tpu.core_type = #tpu.core_type<tc>, window_params = [{transform_indices = @transform_0, window_bounds = array<i64: 8, 32>}, {transform_indices = @transform_1, window_bounds = array<i64: 8, 32>}, {pipeline_mode = #tpu.pipeline_mode<synchronous>, transform_indices = @transform_2, window_bounds = array<i64: 64, 8>}, {pipeline_mode = #tpu.pipeline_mode<synchronous>, transform_indices = @transform_3, window_bounds = array<i64: 64, 8>}, {pipeline_mode = #tpu.pipeline_mode<synchronous>, transform_indices = @transform_4, window_bounds = array<i64: 32, 32>}, {pipeline_mode = #tpu.pipeline_mode<synchronous>, transform_indices = @transform_5, window_bounds = array<i64: 32, 96>}, {pipeline_mode = #tpu.pipeline_mode<synchronous>, transform_indices = @transform_6, window_bounds = array<i64: 32, 32>}, {pipeline_mode = #tpu.pipeline_mode<synchronous>, transform_indices = @transform_7, window_bounds = array<i64: 1, 32>}, {pipeline_mode = #tpu.pipeline_mode<synchronous>, transform_indices = @transform_8, window_bounds = array<i64: 1, 32>}, {pipeline_mode = #tpu.pipeline_mode<synchronous>, transform_indices = @transform_9, window_bounds = array<i64: 32, 32>}, {pipeline_mode = #tpu.pipeline_mode<synchronous>, transform_indices = @transform_10, window_bounds = array<i64: 32, 64>}, {pipeline_mode = #tpu.pipeline_mode<synchronous>, transform_indices = @transform_11, window_bounds = array<i64: 32, 32>}, {pipeline_mode = #tpu.pipeline_mode<synchronous>, transform_indices = @transform_12, window_bounds = array<i64: 1, 32>}, {pipeline_mode = #tpu.pipeline_mode<synchronous>, transform_indices = @transform_13, window_bounds = array<i64: 1, 32>}, {pipeline_mode = #tpu.pipeline_mode<synchronous>, transform_indices = @transform_14, window_bounds = array<i64: 32, 64>}, {pipeline_mode = #tpu.pipeline_mode<synchronous>, transform_indices = @transform_15, window_bounds = array<i64: 1, 64>}, {pipeline_mode = #tpu.pipeline_mode<synchronous>, transform_indices = @transform_16, window_bounds = array<i64: 64, 32>}, {pipeline_mode = #tpu.pipeline_mode<synchronous>, transform_indices = @transform_17, window_bounds = array<i64: 1, 32>}, {pipeline_mode = #tpu.pipeline_mode<synchronous>, transform_indices = @transform_18, window_bounds = array<i64: 1, 32>}, {pipeline_mode = #tpu.pipeline_mode<synchronous>, transform_indices = @transform_19, window_bounds = array<i64: 1, 32>}, {transform_indices = @transform_20, window_bounds = array<i64: 8, 32>}]} {
    %c0 = arith.constant 0 : index
    %c0_0 = arith.constant 0 : index
    %0 = vector.load %arg1[%c0, %c0_0] : memref<8x32xf32, #tpu.memory_space<vmem>>, vector<8x32xf32>
    %c0_1 = arith.constant 0 : index
    %c0_2 = arith.constant 0 : index
    %1 = vector.load %arg2[%c0_1, %c0_2] : memref<8x32xf32, #tpu.memory_space<vmem>>, vector<8x32xf32>
    %c0_3 = arith.constant 0 : index
    %c0_4 = arith.constant 0 : index
    %2 = vector.load %arg5[%c0_3, %c0_4] : memref<32x32xf32, #tpu.memory_space<vmem>>, vector<32x32xf32>
    %c0_5 = arith.constant 0 : index
    %c0_6 = arith.constant 0 : index
    %3 = vector.load %arg6[%c0_5, %c0_6] : memref<32x96xf32, #tpu.memory_space<vmem>>, vector<32x96xf32>
    %cst = arith.constant dense<0.000000e+00> : vector<8x96xf32>
    %4 = tpu.matmul %0, %3, %cst {dimension_numbers = #tpu.dot_dimension_numbers<[1], [0], [0], [1], [0, 0, 1, 1], [], []>} : vector<8x32xf32>, vector<32x96xf32>, vector<8x96xf32> -> vector<8x96xf32>
    %5 = vector.extract_strided_slice %4 {offsets = [0, 0], sizes = [8, 32], strides = [1, 1]} : vector<8x96xf32> to vector<8x32xf32>
    %6 = vector.extract_strided_slice %4 {offsets = [0, 32], sizes = [8, 64], strides = [1, 1]} : vector<8x96xf32> to vector<8x64xf32>
    %c0_7 = arith.constant 0 : index
    %c0_8 = arith.constant 0 : index
    %7 = vector.load %arg3[%c0_7, %c0_8] : memref<64x8xf32, #tpu.memory_space<vmem>>, vector<64x8xf32>
    %c0_9 = arith.constant 0 : index
    %c0_10 = arith.constant 0 : index
    %8 = vector.load %arg7[%c0_9, %c0_10] : memref<32x32xf32, #tpu.memory_space<vmem>>, vector<32x32xf32>
    %cst_11 = arith.constant dense<0.000000e+00> : vector<64x64xf32>
    %9 = tpu.matmul %7, %6, %cst_11 {dimension_numbers = #tpu.dot_dimension_numbers<[1], [0], [0], [1], [0, 0, 1, 1], [], []>} : vector<64x8xf32>, vector<8x64xf32>, vector<64x64xf32> -> vector<64x64xf32>
    %10 = vector.extract_strided_slice %9 {offsets = [0, 0], sizes = [32, 64], strides = [1, 1]} : vector<64x64xf32> to vector<32x64xf32>
    %11 = vector.extract_strided_slice %9 {offsets = [32, 0], sizes = [32, 64], strides = [1, 1]} : vector<64x64xf32> to vector<32x64xf32>
    %12 = tpu.concatenate %10, %11 in 1 : vector<32x64xf32>, vector<32x64xf32> -> vector<32x128xf32>
    %13 = tpu.concatenate %5, %5, %5, %5 in 0 : vector<8x32xf32>, vector<8x32xf32>, vector<8x32xf32>, vector<8x32xf32> -> vector<32x32xf32>
    %14 = arith.mulf %13, %2 : vector<32x32xf32>
    %15 = tpu.iota {dimensions = array<i32: 1>} : vector<32x32xi32>
    %c1_i32 = arith.constant 1 : i32
    %16 = vector.broadcast %c1_i32 : i32 to vector<32x1xi32>
    %cst_12 = arith.constant 0.000000e+00 : f32
    %17 = vector.broadcast %cst_12 : f32 to vector<32x32xf32>
    %18 = vector.broadcast %16 : vector<32x1xi32> to vector<32x32xi32>
    %19 = arith.cmpi eq, %15, %18 : vector<32x32xi32>
    %20 = arith.extui %19 : vector<32x32xi1> to vector<32x32xi32>
    %21 = arith.sitofp %20 : vector<32x32xi32> to vector<32x32xf32>
    %cst_13 = arith.constant dense<0.000000e+00> : vector<32x128xf32>
    %22 = tpu.matmul %21, %12, %cst_13 {dimension_numbers = #tpu.dot_dimension_numbers<[1], [0], [0], [1], [0, 0, 1, 1], [], []>} : vector<32x32xf32>, vector<32x128xf32>, vector<32x128xf32> -> vector<32x128xf32>
    %23 = vector.extract_strided_slice %22 {offsets = [0, 0], sizes = [32, 32], strides = [1, 1]} : vector<32x128xf32> to vector<32x32xf32>
    %24 = vector.extract_strided_slice %22 {offsets = [0, 32], sizes = [32, 32], strides = [1, 1]} : vector<32x128xf32> to vector<32x32xf32>
    %25 = vector.extract_strided_slice %22 {offsets = [0, 64], sizes = [32, 32], strides = [1, 1]} : vector<32x128xf32> to vector<32x32xf32>
    %26 = vector.extract_strided_slice %22 {offsets = [0, 96], sizes = [32, 32], strides = [1, 1]} : vector<32x128xf32> to vector<32x32xf32>
    %27 = arith.mulf %14, %23 : vector<32x32xf32>
    %cst_14 = arith.constant dense<0.000000e+00> : vector<32xf32>
    %28 = vector.multi_reduction <add>, %27, %cst_14 [1] : vector<32x32xf32> to vector<32xf32>
    %29 = vector.shape_cast %28 : vector<32xf32> to vector<32x1xf32>
    %30 = arith.mulf %14, %25 : vector<32x32xf32>
    %cst_15 = arith.constant dense<0.000000e+00> : vector<32xf32>
    %31 = vector.multi_reduction <add>, %30, %cst_15 [1] : vector<32x32xf32> to vector<32xf32>
    %32 = vector.shape_cast %31 : vector<32xf32> to vector<32x1xf32>
    %33 = tpu.concatenate %29, %32 in 1 : vector<32x1xf32>, vector<32x1xf32> -> vector<32x2xf32>
    %34 = arith.negf %33 : vector<32x2xf32>
    %35 = math.exp %34 : vector<32x2xf32>
    %cst_16 = arith.constant 1.000000e+00 : f32
    %36 = vector.broadcast %cst_16 : f32 to vector<32x2xf32>
    %37 = arith.addf %36, %35 : vector<32x2xf32>
    %38 = arith.divf %36, %37 : vector<32x2xf32>
    %39 = vector.extract_strided_slice %38 {offsets = [0, 0], sizes = [32, 1], strides = [1, 1]} : vector<32x2xf32> to vector<32x1xf32>
    %40 = vector.extract_strided_slice %38 {offsets = [0, 1], sizes = [32, 1], strides = [1, 1]} : vector<32x2xf32> to vector<32x1xf32>
    %41 = arith.cmpf oge, %39, %40 : vector<32x1xf32>
    %cst_17 = arith.constant 6.250000e-02 : f32
    %42 = vector.broadcast %cst_17 : f32 to vector<32x1xf32>
    %43 = arith.mulf %40, %42 : vector<32x1xf32>
    %44 = vector.broadcast %43 : vector<32x1xf32> to vector<32x32xf32>
    %45 = arith.mulf %26, %44 : vector<32x32xf32>
    %cst_18 = arith.constant 6.250000e-02 : f32
    %46 = vector.broadcast %cst_18 : f32 to vector<32x1xf32>
    %47 = arith.mulf %39, %46 : vector<32x1xf32>
    %48 = vector.broadcast %47 : vector<32x1xf32> to vector<32x32xf32>
    %49 = arith.mulf %24, %48 : vector<32x32xf32>
    %50 = vector.shape_cast %41 : vector<32x1xi1> to vector<32x1xi1>
    %51 = vector.broadcast %50 : vector<32x1xi1> to vector<32x32xi1>
    %52 = arith.select %51, %45, %49 : vector<32x32xi1>, vector<32x32xf32>
    %53 = arith.addf %17, %52 : vector<32x32xf32>
    %c2_i32 = arith.constant 2 : i32
    %54 = vector.broadcast %c2_i32 : i32 to vector<32x1xi32>
    %55 = arith.muli %54, %16 : vector<32x1xi32>
    %c2_i32_19 = arith.constant 2 : i32
    %56 = vector.broadcast %c2_i32_19 : i32 to vector<32x1xi32>
    %57 = arith.muli %56, %16 : vector<32x1xi32>
    %c1_i32_20 = arith.constant 1 : i32
    %58 = vector.broadcast %c1_i32_20 : i32 to vector<32x1xi32>
    %59 = arith.addi %57, %58 : vector<32x1xi32>
    %60 = arith.select %41, %55, %59 : vector<32x1xi1>, vector<32x1xi32>
    %61 = vector.broadcast %60 : vector<32x1xi32> to vector<32x32xi32>
    %62 = arith.cmpi eq, %15, %61 : vector<32x32xi32>
    %63 = arith.extui %62 : vector<32x32xi1> to vector<32x32xi32>
    %64 = arith.sitofp %63 : vector<32x32xi32> to vector<32x32xf32>
    %cst_21 = arith.constant dense<0.000000e+00> : vector<32x128xf32>
    %65 = tpu.matmul %64, %12, %cst_21 {dimension_numbers = #tpu.dot_dimension_numbers<[1], [0], [0], [1], [0, 0, 1, 1], [], []>} : vector<32x32xf32>, vector<32x128xf32>, vector<32x128xf32> -> vector<32x128xf32>
    %66 = vector.extract_strided_slice %65 {offsets = [0, 0], sizes = [32, 32], strides = [1, 1]} : vector<32x128xf32> to vector<32x32xf32>
    %67 = vector.extract_strided_slice %65 {offsets = [0, 32], sizes = [32, 32], strides = [1, 1]} : vector<32x128xf32> to vector<32x32xf32>
    %68 = vector.extract_strided_slice %65 {offsets = [0, 64], sizes = [32, 32], strides = [1, 1]} : vector<32x128xf32> to vector<32x32xf32>
    %69 = vector.extract_strided_slice %65 {offsets = [0, 96], sizes = [32, 32], strides = [1, 1]} : vector<32x128xf32> to vector<32x32xf32>
    %70 = arith.mulf %14, %66 : vector<32x32xf32>
    %cst_22 = arith.constant dense<0.000000e+00> : vector<32xf32>
    %71 = vector.multi_reduction <add>, %70, %cst_22 [1] : vector<32x32xf32> to vector<32xf32>
    %72 = vector.shape_cast %71 : vector<32xf32> to vector<32x1xf32>
    %73 = arith.mulf %14, %68 : vector<32x32xf32>
    %cst_23 = arith.constant dense<0.000000e+00> : vector<32xf32>
    %74 = vector.multi_reduction <add>, %73, %cst_23 [1] : vector<32x32xf32> to vector<32xf32>
    %75 = vector.shape_cast %74 : vector<32xf32> to vector<32x1xf32>
    %76 = tpu.concatenate %72, %75 in 1 : vector<32x1xf32>, vector<32x1xf32> -> vector<32x2xf32>
    %77 = arith.negf %76 : vector<32x2xf32>
    %78 = math.exp %77 : vector<32x2xf32>
    %cst_24 = arith.constant 1.000000e+00 : f32
    %79 = vector.broadcast %cst_24 : f32 to vector<32x2xf32>
    %80 = arith.addf %79, %78 : vector<32x2xf32>
    %81 = arith.divf %79, %80 : vector<32x2xf32>
    %82 = vector.extract_strided_slice %81 {offsets = [0, 0], sizes = [32, 1], strides = [1, 1]} : vector<32x2xf32> to vector<32x1xf32>
    %83 = vector.extract_strided_slice %81 {offsets = [0, 1], sizes = [32, 1], strides = [1, 1]} : vector<32x2xf32> to vector<32x1xf32>
    %84 = arith.cmpf oge, %82, %83 : vector<32x1xf32>
    %cst_25 = arith.constant 1.250000e-01 : f32
    %85 = vector.broadcast %cst_25 : f32 to vector<32x1xf32>
    %86 = arith.mulf %83, %85 : vector<32x1xf32>
    %87 = vector.broadcast %86 : vector<32x1xf32> to vector<32x32xf32>
    %88 = arith.mulf %69, %87 : vector<32x32xf32>
    %cst_26 = arith.constant 1.250000e-01 : f32
    %89 = vector.broadcast %cst_26 : f32 to vector<32x1xf32>
    %90 = arith.mulf %82, %89 : vector<32x1xf32>
    %91 = vector.broadcast %90 : vector<32x1xf32> to vector<32x32xf32>
    %92 = arith.mulf %67, %91 : vector<32x32xf32>
    %93 = vector.shape_cast %84 : vector<32x1xi1> to vector<32x1xi1>
    %94 = vector.broadcast %93 : vector<32x1xi1> to vector<32x32xi1>
    %95 = arith.select %94, %88, %92 : vector<32x32xi1>, vector<32x32xf32>
    %96 = arith.addf %53, %95 : vector<32x32xf32>
    %c2_i32_27 = arith.constant 2 : i32
    %97 = vector.broadcast %c2_i32_27 : i32 to vector<32x1xi32>
    %98 = arith.muli %97, %60 : vector<32x1xi32>
    %c2_i32_28 = arith.constant 2 : i32
    %99 = vector.broadcast %c2_i32_28 : i32 to vector<32x1xi32>
    %100 = arith.muli %99, %60 : vector<32x1xi32>
    %c1_i32_29 = arith.constant 1 : i32
    %101 = vector.broadcast %c1_i32_29 : i32 to vector<32x1xi32>
    %102 = arith.addi %100, %101 : vector<32x1xi32>
    %103 = arith.select %84, %98, %102 : vector<32x1xi1>, vector<32x1xi32>
    %104 = vector.broadcast %103 : vector<32x1xi32> to vector<32x32xi32>
    %105 = arith.cmpi eq, %15, %104 : vector<32x32xi32>
    %106 = arith.extui %105 : vector<32x32xi1> to vector<32x32xi32>
    %107 = arith.sitofp %106 : vector<32x32xi32> to vector<32x32xf32>
    %cst_30 = arith.constant dense<0.000000e+00> : vector<32x128xf32>
    %108 = tpu.matmul %107, %12, %cst_30 {dimension_numbers = #tpu.dot_dimension_numbers<[1], [0], [0], [1], [0, 0, 1, 1], [], []>} : vector<32x32xf32>, vector<32x128xf32>, vector<32x128xf32> -> vector<32x128xf32>
    %109 = vector.extract_strided_slice %108 {offsets = [0, 0], sizes = [32, 32], strides = [1, 1]} : vector<32x128xf32> to vector<32x32xf32>
    %110 = vector.extract_strided_slice %108 {offsets = [0, 32], sizes = [32, 32], strides = [1, 1]} : vector<32x128xf32> to vector<32x32xf32>
    %111 = vector.extract_strided_slice %108 {offsets = [0, 64], sizes = [32, 32], strides = [1, 1]} : vector<32x128xf32> to vector<32x32xf32>
    %112 = vector.extract_strided_slice %108 {offsets = [0, 96], sizes = [32, 32], strides = [1, 1]} : vector<32x128xf32> to vector<32x32xf32>
    %113 = arith.mulf %14, %109 : vector<32x32xf32>
    %cst_31 = arith.constant dense<0.000000e+00> : vector<32xf32>
    %114 = vector.multi_reduction <add>, %113, %cst_31 [1] : vector<32x32xf32> to vector<32xf32>
    %115 = vector.shape_cast %114 : vector<32xf32> to vector<32x1xf32>
    %116 = arith.mulf %14, %111 : vector<32x32xf32>
    %cst_32 = arith.constant dense<0.000000e+00> : vector<32xf32>
    %117 = vector.multi_reduction <add>, %116, %cst_32 [1] : vector<32x32xf32> to vector<32xf32>
    %118 = vector.shape_cast %117 : vector<32xf32> to vector<32x1xf32>
    %119 = tpu.concatenate %115, %118 in 1 : vector<32x1xf32>, vector<32x1xf32> -> vector<32x2xf32>
    %120 = arith.negf %119 : vector<32x2xf32>
    %121 = math.exp %120 : vector<32x2xf32>
    %cst_33 = arith.constant 1.000000e+00 : f32
    %122 = vector.broadcast %cst_33 : f32 to vector<32x2xf32>
    %123 = arith.addf %122, %121 : vector<32x2xf32>
    %124 = arith.divf %122, %123 : vector<32x2xf32>
    %125 = vector.extract_strided_slice %124 {offsets = [0, 0], sizes = [32, 1], strides = [1, 1]} : vector<32x2xf32> to vector<32x1xf32>
    %126 = vector.extract_strided_slice %124 {offsets = [0, 1], sizes = [32, 1], strides = [1, 1]} : vector<32x2xf32> to vector<32x1xf32>
    %127 = arith.cmpf oge, %125, %126 : vector<32x1xf32>
    %cst_34 = arith.constant 2.500000e-01 : f32
    %128 = vector.broadcast %cst_34 : f32 to vector<32x1xf32>
    %129 = arith.mulf %126, %128 : vector<32x1xf32>
    %130 = vector.broadcast %129 : vector<32x1xf32> to vector<32x32xf32>
    %131 = arith.mulf %112, %130 : vector<32x32xf32>
    %cst_35 = arith.constant 2.500000e-01 : f32
    %132 = vector.broadcast %cst_35 : f32 to vector<32x1xf32>
    %133 = arith.mulf %125, %132 : vector<32x1xf32>
    %134 = vector.broadcast %133 : vector<32x1xf32> to vector<32x32xf32>
    %135 = arith.mulf %110, %134 : vector<32x32xf32>
    %136 = vector.shape_cast %127 : vector<32x1xi1> to vector<32x1xi1>
    %137 = vector.broadcast %136 : vector<32x1xi1> to vector<32x32xi1>
    %138 = arith.select %137, %131, %135 : vector<32x32xi1>, vector<32x32xf32>
    %139 = arith.addf %96, %138 : vector<32x32xf32>
    %c2_i32_36 = arith.constant 2 : i32
    %140 = vector.broadcast %c2_i32_36 : i32 to vector<32x1xi32>
    %141 = arith.muli %140, %103 : vector<32x1xi32>
    %c2_i32_37 = arith.constant 2 : i32
    %142 = vector.broadcast %c2_i32_37 : i32 to vector<32x1xi32>
    %143 = arith.muli %142, %103 : vector<32x1xi32>
    %c1_i32_38 = arith.constant 1 : i32
    %144 = vector.broadcast %c1_i32_38 : i32 to vector<32x1xi32>
    %145 = arith.addi %143, %144 : vector<32x1xi32>
    %146 = arith.select %127, %141, %145 : vector<32x1xi1>, vector<32x1xi32>
    %147 = vector.broadcast %146 : vector<32x1xi32> to vector<32x32xi32>
    %148 = arith.cmpi eq, %15, %147 : vector<32x32xi32>
    %149 = arith.extui %148 : vector<32x32xi1> to vector<32x32xi32>
    %150 = arith.sitofp %149 : vector<32x32xi32> to vector<32x32xf32>
    %cst_39 = arith.constant dense<0.000000e+00> : vector<32x128xf32>
    %151 = tpu.matmul %150, %12, %cst_39 {dimension_numbers = #tpu.dot_dimension_numbers<[1], [0], [0], [1], [0, 0, 1, 1], [], []>} : vector<32x32xf32>, vector<32x128xf32>, vector<32x128xf32> -> vector<32x128xf32>
    %152 = vector.extract_strided_slice %151 {offsets = [0, 0], sizes = [32, 32], strides = [1, 1]} : vector<32x128xf32> to vector<32x32xf32>
    %153 = vector.extract_strided_slice %151 {offsets = [0, 32], sizes = [32, 32], strides = [1, 1]} : vector<32x128xf32> to vector<32x32xf32>
    %154 = vector.extract_strided_slice %151 {offsets = [0, 64], sizes = [32, 32], strides = [1, 1]} : vector<32x128xf32> to vector<32x32xf32>
    %155 = vector.extract_strided_slice %151 {offsets = [0, 96], sizes = [32, 32], strides = [1, 1]} : vector<32x128xf32> to vector<32x32xf32>
    %156 = arith.mulf %14, %152 : vector<32x32xf32>
    %cst_40 = arith.constant dense<0.000000e+00> : vector<32xf32>
    %157 = vector.multi_reduction <add>, %156, %cst_40 [1] : vector<32x32xf32> to vector<32xf32>
    %158 = vector.shape_cast %157 : vector<32xf32> to vector<32x1xf32>
    %159 = arith.mulf %14, %154 : vector<32x32xf32>
    %cst_41 = arith.constant dense<0.000000e+00> : vector<32xf32>
    %160 = vector.multi_reduction <add>, %159, %cst_41 [1] : vector<32x32xf32> to vector<32xf32>
    %161 = vector.shape_cast %160 : vector<32xf32> to vector<32x1xf32>
    %162 = tpu.concatenate %158, %161 in 1 : vector<32x1xf32>, vector<32x1xf32> -> vector<32x2xf32>
    %163 = arith.negf %162 : vector<32x2xf32>
    %164 = math.exp %163 : vector<32x2xf32>
    %cst_42 = arith.constant 1.000000e+00 : f32
    %165 = vector.broadcast %cst_42 : f32 to vector<32x2xf32>
    %166 = arith.addf %165, %164 : vector<32x2xf32>
    %167 = arith.divf %165, %166 : vector<32x2xf32>
    %168 = vector.extract_strided_slice %167 {offsets = [0, 0], sizes = [32, 1], strides = [1, 1]} : vector<32x2xf32> to vector<32x1xf32>
    %169 = vector.extract_strided_slice %167 {offsets = [0, 1], sizes = [32, 1], strides = [1, 1]} : vector<32x2xf32> to vector<32x1xf32>
    %170 = arith.cmpf oge, %168, %169 : vector<32x1xf32>
    %cst_43 = arith.constant 5.000000e-01 : f32
    %171 = vector.broadcast %cst_43 : f32 to vector<32x1xf32>
    %172 = arith.mulf %169, %171 : vector<32x1xf32>
    %173 = vector.broadcast %172 : vector<32x1xf32> to vector<32x32xf32>
    %174 = arith.mulf %155, %173 : vector<32x32xf32>
    %cst_44 = arith.constant 5.000000e-01 : f32
    %175 = vector.broadcast %cst_44 : f32 to vector<32x1xf32>
    %176 = arith.mulf %168, %175 : vector<32x1xf32>
    %177 = vector.broadcast %176 : vector<32x1xf32> to vector<32x32xf32>
    %178 = arith.mulf %153, %177 : vector<32x32xf32>
    %179 = vector.shape_cast %170 : vector<32x1xi1> to vector<32x1xi1>
    %180 = vector.broadcast %179 : vector<32x1xi1> to vector<32x32xi1>
    %181 = arith.select %180, %174, %178 : vector<32x32xi1>, vector<32x32xf32>
    %182 = arith.addf %139, %181 : vector<32x32xf32>
    %c2_i32_45 = arith.constant 2 : i32
    %183 = vector.broadcast %c2_i32_45 : i32 to vector<32x1xi32>
    %184 = arith.muli %183, %146 : vector<32x1xi32>
    %c2_i32_46 = arith.constant 2 : i32
    %185 = vector.broadcast %c2_i32_46 : i32 to vector<32x1xi32>
    %186 = arith.muli %185, %146 : vector<32x1xi32>
    %c1_i32_47 = arith.constant 1 : i32
    %187 = vector.broadcast %c1_i32_47 : i32 to vector<32x1xi32>
    %188 = arith.addi %186, %187 : vector<32x1xi32>
    %189 = arith.select %170, %184, %188 : vector<32x1xi1>, vector<32x1xi32>
    %190 = vector.broadcast %189 : vector<32x1xi32> to vector<32x32xi32>
    %191 = arith.cmpi eq, %15, %190 : vector<32x32xi32>
    %192 = arith.extui %191 : vector<32x32xi1> to vector<32x32xi32>
    %193 = arith.sitofp %192 : vector<32x32xi32> to vector<32x32xf32>
    %cst_48 = arith.constant dense<0.000000e+00> : vector<32x128xf32>
    %194 = tpu.matmul %193, %12, %cst_48 {dimension_numbers = #tpu.dot_dimension_numbers<[1], [0], [0], [1], [0, 0, 1, 1], [], []>} : vector<32x32xf32>, vector<32x128xf32>, vector<32x128xf32> -> vector<32x128xf32>
    %195 = vector.extract_strided_slice %194 {offsets = [0, 0], sizes = [32, 32], strides = [1, 1]} : vector<32x128xf32> to vector<32x32xf32>
    %196 = vector.extract_strided_slice %194 {offsets = [0, 32], sizes = [32, 32], strides = [1, 1]} : vector<32x128xf32> to vector<32x32xf32>
    %197 = vector.extract_strided_slice %194 {offsets = [0, 64], sizes = [32, 32], strides = [1, 1]} : vector<32x128xf32> to vector<32x32xf32>
    %198 = vector.extract_strided_slice %194 {offsets = [0, 96], sizes = [32, 32], strides = [1, 1]} : vector<32x128xf32> to vector<32x32xf32>
    %199 = arith.mulf %14, %195 : vector<32x32xf32>
    %cst_49 = arith.constant dense<0.000000e+00> : vector<32xf32>
    %200 = vector.multi_reduction <add>, %199, %cst_49 [1] : vector<32x32xf32> to vector<32xf32>
    %201 = vector.shape_cast %200 : vector<32xf32> to vector<32x1xf32>
    %202 = arith.mulf %14, %197 : vector<32x32xf32>
    %cst_50 = arith.constant dense<0.000000e+00> : vector<32xf32>
    %203 = vector.multi_reduction <add>, %202, %cst_50 [1] : vector<32x32xf32> to vector<32xf32>
    %204 = vector.shape_cast %203 : vector<32xf32> to vector<32x1xf32>
    %205 = tpu.concatenate %201, %204 in 1 : vector<32x1xf32>, vector<32x1xf32> -> vector<32x2xf32>
    %206 = arith.negf %205 : vector<32x2xf32>
    %207 = math.exp %206 : vector<32x2xf32>
    %cst_51 = arith.constant 1.000000e+00 : f32
    %208 = vector.broadcast %cst_51 : f32 to vector<32x2xf32>
    %209 = arith.addf %208, %207 : vector<32x2xf32>
    %210 = arith.divf %208, %209 : vector<32x2xf32>
    %211 = vector.extract_strided_slice %210 {offsets = [0, 0], sizes = [32, 1], strides = [1, 1]} : vector<32x2xf32> to vector<32x1xf32>
    %212 = vector.extract_strided_slice %210 {offsets = [0, 1], sizes = [32, 1], strides = [1, 1]} : vector<32x2xf32> to vector<32x1xf32>
    %213 = arith.cmpf oge, %211, %212 : vector<32x1xf32>
    %cst_52 = arith.constant 1.000000e+00 : f32
    %214 = vector.broadcast %cst_52 : f32 to vector<32x1xf32>
    %215 = arith.mulf %212, %214 : vector<32x1xf32>
    %216 = vector.broadcast %215 : vector<32x1xf32> to vector<32x32xf32>
    %217 = arith.mulf %198, %216 : vector<32x32xf32>
    %cst_53 = arith.constant 1.000000e+00 : f32
    %218 = vector.broadcast %cst_53 : f32 to vector<32x1xf32>
    %219 = arith.mulf %211, %218 : vector<32x1xf32>
    %220 = vector.broadcast %219 : vector<32x1xf32> to vector<32x32xf32>
    %221 = arith.mulf %196, %220 : vector<32x32xf32>
    %222 = vector.shape_cast %213 : vector<32x1xi1> to vector<32x1xi1>
    %223 = vector.broadcast %222 : vector<32x1xi1> to vector<32x32xi1>
    %224 = arith.select %223, %217, %221 : vector<32x32xi1>, vector<32x32xf32>
    %225 = arith.addf %182, %224 : vector<32x32xf32>
    %226 = arith.mulf %225, %2 : vector<32x32xf32>
    %227 = vector.extract_strided_slice %226 {offsets = [0, 0], sizes = [8, 32], strides = [1, 1]} : vector<32x32xf32> to vector<8x32xf32>
    %228 = vector.extract_strided_slice %226 {offsets = [8, 0], sizes = [8, 32], strides = [1, 1]} : vector<32x32xf32> to vector<8x32xf32>
    %229 = arith.addf %227, %228 : vector<8x32xf32>
    %230 = vector.extract_strided_slice %226 {offsets = [16, 0], sizes = [8, 32], strides = [1, 1]} : vector<32x32xf32> to vector<8x32xf32>
    %231 = arith.addf %229, %230 : vector<8x32xf32>
    %232 = vector.extract_strided_slice %226 {offsets = [24, 0], sizes = [8, 32], strides = [1, 1]} : vector<32x32xf32> to vector<8x32xf32>
    %233 = arith.addf %231, %232 : vector<8x32xf32>
    %cst_54 = arith.constant dense<0.000000e+00> : vector<8x32xf32>
    %234 = tpu.matmul %233, %8, %cst_54 {dimension_numbers = #tpu.dot_dimension_numbers<[1], [0], [0], [1], [0, 0, 1, 1], [], []>} : vector<8x32xf32>, vector<32x32xf32>, vector<8x32xf32> -> vector<8x32xf32>
    %235 = arith.addf %0, %234 : vector<8x32xf32>
    %c0_55 = arith.constant 0 : index
    %c0_56 = arith.constant 0 : index
    %236 = vector.load %arg8[%c0_55, %c0_56] : memref<1x32xf32, #tpu.memory_space<vmem>>, vector<1x32xf32>
    %c0_57 = arith.constant 0 : index
    %c0_58 = arith.constant 0 : index
    %237 = vector.load %arg9[%c0_57, %c0_58] : memref<1x32xf32, #tpu.memory_space<vmem>>, vector<1x32xf32>
    %cst_59 = arith.constant dense<0.000000e+00> : vector<8xf32>
    %238 = vector.multi_reduction <add>, %235, %cst_59 [1] : vector<8x32xf32> to vector<8xf32>
    %239 = vector.shape_cast %238 : vector<8xf32> to vector<8x1xf32>
    %cst_60 = arith.constant 3.200000e+01 : f32
    %240 = vector.broadcast %cst_60 : f32 to vector<8x1xf32>
    %241 = arith.divf %239, %240 : vector<8x1xf32>
    %242 = vector.broadcast %241 : vector<8x1xf32> to vector<8x32xf32>
    %243 = arith.subf %235, %242 : vector<8x32xf32>
    %244 = vector.broadcast %241 : vector<8x1xf32> to vector<8x32xf32>
    %245 = arith.subf %235, %244 : vector<8x32xf32>
    %246 = arith.mulf %243, %245 : vector<8x32xf32>
    %cst_61 = arith.constant dense<0.000000e+00> : vector<8xf32>
    %247 = vector.multi_reduction <add>, %246, %cst_61 [1] : vector<8x32xf32> to vector<8xf32>
    %248 = vector.shape_cast %247 : vector<8xf32> to vector<8x1xf32>
    %cst_62 = arith.constant 3.200000e+01 : f32
    %249 = vector.broadcast %cst_62 : f32 to vector<8x1xf32>
    %250 = arith.divf %248, %249 : vector<8x1xf32>
    %251 = vector.broadcast %241 : vector<8x1xf32> to vector<8x32xf32>
    %252 = arith.subf %235, %251 : vector<8x32xf32>
    %cst_63 = arith.constant 9.99999974E-6 : f32
    %253 = vector.broadcast %cst_63 : f32 to vector<8x1xf32>
    %254 = arith.addf %250, %253 : vector<8x1xf32>
    %255 = math.rsqrt %254 : vector<8x1xf32>
    %256 = vector.broadcast %255 : vector<8x1xf32> to vector<8x32xf32>
    %257 = arith.mulf %252, %256 : vector<8x32xf32>
    %258 = vector.broadcast %236 : vector<1x32xf32> to vector<8x32xf32>
    %259 = arith.mulf %257, %258 : vector<8x32xf32>
    %260 = vector.broadcast %237 : vector<1x32xf32> to vector<8x32xf32>
    %261 = arith.addf %259, %260 : vector<8x32xf32>
    %c0_64 = arith.constant 0 : index
    %c0_65 = arith.constant 0 : index
    %262 = vector.load %arg10[%c0_64, %c0_65] : memref<32x32xf32, #tpu.memory_space<vmem>>, vector<32x32xf32>
    %cst_66 = arith.constant dense<0.000000e+00> : vector<8x32xf32>
    %263 = tpu.matmul %261, %262, %cst_66 {dimension_numbers = #tpu.dot_dimension_numbers<[1], [0], [0], [1], [0, 0, 1, 1], [], []>} : vector<8x32xf32>, vector<32x32xf32>, vector<8x32xf32> -> vector<8x32xf32>
    %c0_67 = arith.constant 0 : index
    %c0_68 = arith.constant 0 : index
    %264 = vector.load %arg11[%c0_67, %c0_68] : memref<32x64xf32, #tpu.memory_space<vmem>>, vector<32x64xf32>
    %cst_69 = arith.constant dense<0.000000e+00> : vector<8x64xf32>
    %265 = tpu.matmul %1, %264, %cst_69 {dimension_numbers = #tpu.dot_dimension_numbers<[1], [0], [0], [1], [0, 0, 1, 1], [], []>} : vector<8x32xf32>, vector<32x64xf32>, vector<8x64xf32> -> vector<8x64xf32>
    %c0_70 = arith.constant 0 : index
    %c0_71 = arith.constant 0 : index
    %266 = vector.load %arg4[%c0_70, %c0_71] : memref<64x8xf32, #tpu.memory_space<vmem>>, vector<64x8xf32>
    %c0_72 = arith.constant 0 : index
    %c0_73 = arith.constant 0 : index
    %267 = vector.load %arg12[%c0_72, %c0_73] : memref<32x32xf32, #tpu.memory_space<vmem>>, vector<32x32xf32>
    %cst_74 = arith.constant dense<0.000000e+00> : vector<64x64xf32>
    %268 = tpu.matmul %266, %265, %cst_74 {dimension_numbers = #tpu.dot_dimension_numbers<[1], [0], [0], [1], [0, 0, 1, 1], [], []>} : vector<64x8xf32>, vector<8x64xf32>, vector<64x64xf32> -> vector<64x64xf32>
    %269 = vector.extract_strided_slice %268 {offsets = [0, 0], sizes = [32, 64], strides = [1, 1]} : vector<64x64xf32> to vector<32x64xf32>
    %270 = vector.extract_strided_slice %268 {offsets = [32, 0], sizes = [32, 64], strides = [1, 1]} : vector<64x64xf32> to vector<32x64xf32>
    %271 = tpu.concatenate %269, %270 in 1 : vector<32x64xf32>, vector<32x64xf32> -> vector<32x128xf32>
    %272 = tpu.concatenate %263, %263, %263, %263 in 0 : vector<8x32xf32>, vector<8x32xf32>, vector<8x32xf32>, vector<8x32xf32> -> vector<32x32xf32>
    %273 = arith.mulf %272, %2 : vector<32x32xf32>
    %274 = tpu.iota {dimensions = array<i32: 1>} : vector<32x32xi32>
    %c1_i32_75 = arith.constant 1 : i32
    %275 = vector.broadcast %c1_i32_75 : i32 to vector<32x1xi32>
    %cst_76 = arith.constant 0.000000e+00 : f32
    %276 = vector.broadcast %cst_76 : f32 to vector<32x32xf32>
    %277 = vector.broadcast %275 : vector<32x1xi32> to vector<32x32xi32>
    %278 = arith.cmpi eq, %274, %277 : vector<32x32xi32>
    %279 = arith.extui %278 : vector<32x32xi1> to vector<32x32xi32>
    %280 = arith.sitofp %279 : vector<32x32xi32> to vector<32x32xf32>
    %cst_77 = arith.constant dense<0.000000e+00> : vector<32x128xf32>
    %281 = tpu.matmul %280, %271, %cst_77 {dimension_numbers = #tpu.dot_dimension_numbers<[1], [0], [0], [1], [0, 0, 1, 1], [], []>} : vector<32x32xf32>, vector<32x128xf32>, vector<32x128xf32> -> vector<32x128xf32>
    %282 = vector.extract_strided_slice %281 {offsets = [0, 0], sizes = [32, 32], strides = [1, 1]} : vector<32x128xf32> to vector<32x32xf32>
    %283 = vector.extract_strided_slice %281 {offsets = [0, 32], sizes = [32, 32], strides = [1, 1]} : vector<32x128xf32> to vector<32x32xf32>
    %284 = vector.extract_strided_slice %281 {offsets = [0, 64], sizes = [32, 32], strides = [1, 1]} : vector<32x128xf32> to vector<32x32xf32>
    %285 = vector.extract_strided_slice %281 {offsets = [0, 96], sizes = [32, 32], strides = [1, 1]} : vector<32x128xf32> to vector<32x32xf32>
    %286 = arith.mulf %273, %282 : vector<32x32xf32>
    %cst_78 = arith.constant dense<0.000000e+00> : vector<32xf32>
    %287 = vector.multi_reduction <add>, %286, %cst_78 [1] : vector<32x32xf32> to vector<32xf32>
    %288 = vector.shape_cast %287 : vector<32xf32> to vector<32x1xf32>
    %289 = arith.mulf %273, %284 : vector<32x32xf32>
    %cst_79 = arith.constant dense<0.000000e+00> : vector<32xf32>
    %290 = vector.multi_reduction <add>, %289, %cst_79 [1] : vector<32x32xf32> to vector<32xf32>
    %291 = vector.shape_cast %290 : vector<32xf32> to vector<32x1xf32>
    %292 = tpu.concatenate %288, %291 in 1 : vector<32x1xf32>, vector<32x1xf32> -> vector<32x2xf32>
    %293 = arith.negf %292 : vector<32x2xf32>
    %294 = math.exp %293 : vector<32x2xf32>
    %cst_80 = arith.constant 1.000000e+00 : f32
    %295 = vector.broadcast %cst_80 : f32 to vector<32x2xf32>
    %296 = arith.addf %295, %294 : vector<32x2xf32>
    %297 = arith.divf %295, %296 : vector<32x2xf32>
    %298 = vector.extract_strided_slice %297 {offsets = [0, 0], sizes = [32, 1], strides = [1, 1]} : vector<32x2xf32> to vector<32x1xf32>
    %299 = vector.extract_strided_slice %297 {offsets = [0, 1], sizes = [32, 1], strides = [1, 1]} : vector<32x2xf32> to vector<32x1xf32>
    %300 = arith.cmpf oge, %298, %299 : vector<32x1xf32>
    %cst_81 = arith.constant 6.250000e-02 : f32
    %301 = vector.broadcast %cst_81 : f32 to vector<32x1xf32>
    %302 = arith.mulf %299, %301 : vector<32x1xf32>
    %303 = vector.broadcast %302 : vector<32x1xf32> to vector<32x32xf32>
    %304 = arith.mulf %285, %303 : vector<32x32xf32>
    %cst_82 = arith.constant 6.250000e-02 : f32
    %305 = vector.broadcast %cst_82 : f32 to vector<32x1xf32>
    %306 = arith.mulf %298, %305 : vector<32x1xf32>
    %307 = vector.broadcast %306 : vector<32x1xf32> to vector<32x32xf32>
    %308 = arith.mulf %283, %307 : vector<32x32xf32>
    %309 = vector.shape_cast %300 : vector<32x1xi1> to vector<32x1xi1>
    %310 = vector.broadcast %309 : vector<32x1xi1> to vector<32x32xi1>
    %311 = arith.select %310, %304, %308 : vector<32x32xi1>, vector<32x32xf32>
    %312 = arith.addf %276, %311 : vector<32x32xf32>
    %c2_i32_83 = arith.constant 2 : i32
    %313 = vector.broadcast %c2_i32_83 : i32 to vector<32x1xi32>
    %314 = arith.muli %313, %275 : vector<32x1xi32>
    %c2_i32_84 = arith.constant 2 : i32
    %315 = vector.broadcast %c2_i32_84 : i32 to vector<32x1xi32>
    %316 = arith.muli %315, %275 : vector<32x1xi32>
    %c1_i32_85 = arith.constant 1 : i32
    %317 = vector.broadcast %c1_i32_85 : i32 to vector<32x1xi32>
    %318 = arith.addi %316, %317 : vector<32x1xi32>
    %319 = arith.select %300, %314, %318 : vector<32x1xi1>, vector<32x1xi32>
    %320 = vector.broadcast %319 : vector<32x1xi32> to vector<32x32xi32>
    %321 = arith.cmpi eq, %274, %320 : vector<32x32xi32>
    %322 = arith.extui %321 : vector<32x32xi1> to vector<32x32xi32>
    %323 = arith.sitofp %322 : vector<32x32xi32> to vector<32x32xf32>
    %cst_86 = arith.constant dense<0.000000e+00> : vector<32x128xf32>
    %324 = tpu.matmul %323, %271, %cst_86 {dimension_numbers = #tpu.dot_dimension_numbers<[1], [0], [0], [1], [0, 0, 1, 1], [], []>} : vector<32x32xf32>, vector<32x128xf32>, vector<32x128xf32> -> vector<32x128xf32>
    %325 = vector.extract_strided_slice %324 {offsets = [0, 0], sizes = [32, 32], strides = [1, 1]} : vector<32x128xf32> to vector<32x32xf32>
    %326 = vector.extract_strided_slice %324 {offsets = [0, 32], sizes = [32, 32], strides = [1, 1]} : vector<32x128xf32> to vector<32x32xf32>
    %327 = vector.extract_strided_slice %324 {offsets = [0, 64], sizes = [32, 32], strides = [1, 1]} : vector<32x128xf32> to vector<32x32xf32>
    %328 = vector.extract_strided_slice %324 {offsets = [0, 96], sizes = [32, 32], strides = [1, 1]} : vector<32x128xf32> to vector<32x32xf32>
    %329 = arith.mulf %273, %325 : vector<32x32xf32>
    %cst_87 = arith.constant dense<0.000000e+00> : vector<32xf32>
    %330 = vector.multi_reduction <add>, %329, %cst_87 [1] : vector<32x32xf32> to vector<32xf32>
    %331 = vector.shape_cast %330 : vector<32xf32> to vector<32x1xf32>
    %332 = arith.mulf %273, %327 : vector<32x32xf32>
    %cst_88 = arith.constant dense<0.000000e+00> : vector<32xf32>
    %333 = vector.multi_reduction <add>, %332, %cst_88 [1] : vector<32x32xf32> to vector<32xf32>
    %334 = vector.shape_cast %333 : vector<32xf32> to vector<32x1xf32>
    %335 = tpu.concatenate %331, %334 in 1 : vector<32x1xf32>, vector<32x1xf32> -> vector<32x2xf32>
    %336 = arith.negf %335 : vector<32x2xf32>
    %337 = math.exp %336 : vector<32x2xf32>
    %cst_89 = arith.constant 1.000000e+00 : f32
    %338 = vector.broadcast %cst_89 : f32 to vector<32x2xf32>
    %339 = arith.addf %338, %337 : vector<32x2xf32>
    %340 = arith.divf %338, %339 : vector<32x2xf32>
    %341 = vector.extract_strided_slice %340 {offsets = [0, 0], sizes = [32, 1], strides = [1, 1]} : vector<32x2xf32> to vector<32x1xf32>
    %342 = vector.extract_strided_slice %340 {offsets = [0, 1], sizes = [32, 1], strides = [1, 1]} : vector<32x2xf32> to vector<32x1xf32>
    %343 = arith.cmpf oge, %341, %342 : vector<32x1xf32>
    %cst_90 = arith.constant 1.250000e-01 : f32
    %344 = vector.broadcast %cst_90 : f32 to vector<32x1xf32>
    %345 = arith.mulf %342, %344 : vector<32x1xf32>
    %346 = vector.broadcast %345 : vector<32x1xf32> to vector<32x32xf32>
    %347 = arith.mulf %328, %346 : vector<32x32xf32>
    %cst_91 = arith.constant 1.250000e-01 : f32
    %348 = vector.broadcast %cst_91 : f32 to vector<32x1xf32>
    %349 = arith.mulf %341, %348 : vector<32x1xf32>
    %350 = vector.broadcast %349 : vector<32x1xf32> to vector<32x32xf32>
    %351 = arith.mulf %326, %350 : vector<32x32xf32>
    %352 = vector.shape_cast %343 : vector<32x1xi1> to vector<32x1xi1>
    %353 = vector.broadcast %352 : vector<32x1xi1> to vector<32x32xi1>
    %354 = arith.select %353, %347, %351 : vector<32x32xi1>, vector<32x32xf32>
    %355 = arith.addf %312, %354 : vector<32x32xf32>
    %c2_i32_92 = arith.constant 2 : i32
    %356 = vector.broadcast %c2_i32_92 : i32 to vector<32x1xi32>
    %357 = arith.muli %356, %319 : vector<32x1xi32>
    %c2_i32_93 = arith.constant 2 : i32
    %358 = vector.broadcast %c2_i32_93 : i32 to vector<32x1xi32>
    %359 = arith.muli %358, %319 : vector<32x1xi32>
    %c1_i32_94 = arith.constant 1 : i32
    %360 = vector.broadcast %c1_i32_94 : i32 to vector<32x1xi32>
    %361 = arith.addi %359, %360 : vector<32x1xi32>
    %362 = arith.select %343, %357, %361 : vector<32x1xi1>, vector<32x1xi32>
    %363 = vector.broadcast %362 : vector<32x1xi32> to vector<32x32xi32>
    %364 = arith.cmpi eq, %274, %363 : vector<32x32xi32>
    %365 = arith.extui %364 : vector<32x32xi1> to vector<32x32xi32>
    %366 = arith.sitofp %365 : vector<32x32xi32> to vector<32x32xf32>
    %cst_95 = arith.constant dense<0.000000e+00> : vector<32x128xf32>
    %367 = tpu.matmul %366, %271, %cst_95 {dimension_numbers = #tpu.dot_dimension_numbers<[1], [0], [0], [1], [0, 0, 1, 1], [], []>} : vector<32x32xf32>, vector<32x128xf32>, vector<32x128xf32> -> vector<32x128xf32>
    %368 = vector.extract_strided_slice %367 {offsets = [0, 0], sizes = [32, 32], strides = [1, 1]} : vector<32x128xf32> to vector<32x32xf32>
    %369 = vector.extract_strided_slice %367 {offsets = [0, 32], sizes = [32, 32], strides = [1, 1]} : vector<32x128xf32> to vector<32x32xf32>
    %370 = vector.extract_strided_slice %367 {offsets = [0, 64], sizes = [32, 32], strides = [1, 1]} : vector<32x128xf32> to vector<32x32xf32>
    %371 = vector.extract_strided_slice %367 {offsets = [0, 96], sizes = [32, 32], strides = [1, 1]} : vector<32x128xf32> to vector<32x32xf32>
    %372 = arith.mulf %273, %368 : vector<32x32xf32>
    %cst_96 = arith.constant dense<0.000000e+00> : vector<32xf32>
    %373 = vector.multi_reduction <add>, %372, %cst_96 [1] : vector<32x32xf32> to vector<32xf32>
    %374 = vector.shape_cast %373 : vector<32xf32> to vector<32x1xf32>
    %375 = arith.mulf %273, %370 : vector<32x32xf32>
    %cst_97 = arith.constant dense<0.000000e+00> : vector<32xf32>
    %376 = vector.multi_reduction <add>, %375, %cst_97 [1] : vector<32x32xf32> to vector<32xf32>
    %377 = vector.shape_cast %376 : vector<32xf32> to vector<32x1xf32>
    %378 = tpu.concatenate %374, %377 in 1 : vector<32x1xf32>, vector<32x1xf32> -> vector<32x2xf32>
    %379 = arith.negf %378 : vector<32x2xf32>
    %380 = math.exp %379 : vector<32x2xf32>
    %cst_98 = arith.constant 1.000000e+00 : f32
    %381 = vector.broadcast %cst_98 : f32 to vector<32x2xf32>
    %382 = arith.addf %381, %380 : vector<32x2xf32>
    %383 = arith.divf %381, %382 : vector<32x2xf32>
    %384 = vector.extract_strided_slice %383 {offsets = [0, 0], sizes = [32, 1], strides = [1, 1]} : vector<32x2xf32> to vector<32x1xf32>
    %385 = vector.extract_strided_slice %383 {offsets = [0, 1], sizes = [32, 1], strides = [1, 1]} : vector<32x2xf32> to vector<32x1xf32>
    %386 = arith.cmpf oge, %384, %385 : vector<32x1xf32>
    %cst_99 = arith.constant 2.500000e-01 : f32
    %387 = vector.broadcast %cst_99 : f32 to vector<32x1xf32>
    %388 = arith.mulf %385, %387 : vector<32x1xf32>
    %389 = vector.broadcast %388 : vector<32x1xf32> to vector<32x32xf32>
    %390 = arith.mulf %371, %389 : vector<32x32xf32>
    %cst_100 = arith.constant 2.500000e-01 : f32
    %391 = vector.broadcast %cst_100 : f32 to vector<32x1xf32>
    %392 = arith.mulf %384, %391 : vector<32x1xf32>
    %393 = vector.broadcast %392 : vector<32x1xf32> to vector<32x32xf32>
    %394 = arith.mulf %369, %393 : vector<32x32xf32>
    %395 = vector.shape_cast %386 : vector<32x1xi1> to vector<32x1xi1>
    %396 = vector.broadcast %395 : vector<32x1xi1> to vector<32x32xi1>
    %397 = arith.select %396, %390, %394 : vector<32x32xi1>, vector<32x32xf32>
    %398 = arith.addf %355, %397 : vector<32x32xf32>
    %c2_i32_101 = arith.constant 2 : i32
    %399 = vector.broadcast %c2_i32_101 : i32 to vector<32x1xi32>
    %400 = arith.muli %399, %362 : vector<32x1xi32>
    %c2_i32_102 = arith.constant 2 : i32
    %401 = vector.broadcast %c2_i32_102 : i32 to vector<32x1xi32>
    %402 = arith.muli %401, %362 : vector<32x1xi32>
    %c1_i32_103 = arith.constant 1 : i32
    %403 = vector.broadcast %c1_i32_103 : i32 to vector<32x1xi32>
    %404 = arith.addi %402, %403 : vector<32x1xi32>
    %405 = arith.select %386, %400, %404 : vector<32x1xi1>, vector<32x1xi32>
    %406 = vector.broadcast %405 : vector<32x1xi32> to vector<32x32xi32>
    %407 = arith.cmpi eq, %274, %406 : vector<32x32xi32>
    %408 = arith.extui %407 : vector<32x32xi1> to vector<32x32xi32>
    %409 = arith.sitofp %408 : vector<32x32xi32> to vector<32x32xf32>
    %cst_104 = arith.constant dense<0.000000e+00> : vector<32x128xf32>
    %410 = tpu.matmul %409, %271, %cst_104 {dimension_numbers = #tpu.dot_dimension_numbers<[1], [0], [0], [1], [0, 0, 1, 1], [], []>} : vector<32x32xf32>, vector<32x128xf32>, vector<32x128xf32> -> vector<32x128xf32>
    %411 = vector.extract_strided_slice %410 {offsets = [0, 0], sizes = [32, 32], strides = [1, 1]} : vector<32x128xf32> to vector<32x32xf32>
    %412 = vector.extract_strided_slice %410 {offsets = [0, 32], sizes = [32, 32], strides = [1, 1]} : vector<32x128xf32> to vector<32x32xf32>
    %413 = vector.extract_strided_slice %410 {offsets = [0, 64], sizes = [32, 32], strides = [1, 1]} : vector<32x128xf32> to vector<32x32xf32>
    %414 = vector.extract_strided_slice %410 {offsets = [0, 96], sizes = [32, 32], strides = [1, 1]} : vector<32x128xf32> to vector<32x32xf32>
    %415 = arith.mulf %273, %411 : vector<32x32xf32>
    %cst_105 = arith.constant dense<0.000000e+00> : vector<32xf32>
    %416 = vector.multi_reduction <add>, %415, %cst_105 [1] : vector<32x32xf32> to vector<32xf32>
    %417 = vector.shape_cast %416 : vector<32xf32> to vector<32x1xf32>
    %418 = arith.mulf %273, %413 : vector<32x32xf32>
    %cst_106 = arith.constant dense<0.000000e+00> : vector<32xf32>
    %419 = vector.multi_reduction <add>, %418, %cst_106 [1] : vector<32x32xf32> to vector<32xf32>
    %420 = vector.shape_cast %419 : vector<32xf32> to vector<32x1xf32>
    %421 = tpu.concatenate %417, %420 in 1 : vector<32x1xf32>, vector<32x1xf32> -> vector<32x2xf32>
    %422 = arith.negf %421 : vector<32x2xf32>
    %423 = math.exp %422 : vector<32x2xf32>
    %cst_107 = arith.constant 1.000000e+00 : f32
    %424 = vector.broadcast %cst_107 : f32 to vector<32x2xf32>
    %425 = arith.addf %424, %423 : vector<32x2xf32>
    %426 = arith.divf %424, %425 : vector<32x2xf32>
    %427 = vector.extract_strided_slice %426 {offsets = [0, 0], sizes = [32, 1], strides = [1, 1]} : vector<32x2xf32> to vector<32x1xf32>
    %428 = vector.extract_strided_slice %426 {offsets = [0, 1], sizes = [32, 1], strides = [1, 1]} : vector<32x2xf32> to vector<32x1xf32>
    %429 = arith.cmpf oge, %427, %428 : vector<32x1xf32>
    %cst_108 = arith.constant 5.000000e-01 : f32
    %430 = vector.broadcast %cst_108 : f32 to vector<32x1xf32>
    %431 = arith.mulf %428, %430 : vector<32x1xf32>
    %432 = vector.broadcast %431 : vector<32x1xf32> to vector<32x32xf32>
    %433 = arith.mulf %414, %432 : vector<32x32xf32>
    %cst_109 = arith.constant 5.000000e-01 : f32
    %434 = vector.broadcast %cst_109 : f32 to vector<32x1xf32>
    %435 = arith.mulf %427, %434 : vector<32x1xf32>
    %436 = vector.broadcast %435 : vector<32x1xf32> to vector<32x32xf32>
    %437 = arith.mulf %412, %436 : vector<32x32xf32>
    %438 = vector.shape_cast %429 : vector<32x1xi1> to vector<32x1xi1>
    %439 = vector.broadcast %438 : vector<32x1xi1> to vector<32x32xi1>
    %440 = arith.select %439, %433, %437 : vector<32x32xi1>, vector<32x32xf32>
    %441 = arith.addf %398, %440 : vector<32x32xf32>
    %c2_i32_110 = arith.constant 2 : i32
    %442 = vector.broadcast %c2_i32_110 : i32 to vector<32x1xi32>
    %443 = arith.muli %442, %405 : vector<32x1xi32>
    %c2_i32_111 = arith.constant 2 : i32
    %444 = vector.broadcast %c2_i32_111 : i32 to vector<32x1xi32>
    %445 = arith.muli %444, %405 : vector<32x1xi32>
    %c1_i32_112 = arith.constant 1 : i32
    %446 = vector.broadcast %c1_i32_112 : i32 to vector<32x1xi32>
    %447 = arith.addi %445, %446 : vector<32x1xi32>
    %448 = arith.select %429, %443, %447 : vector<32x1xi1>, vector<32x1xi32>
    %449 = vector.broadcast %448 : vector<32x1xi32> to vector<32x32xi32>
    %450 = arith.cmpi eq, %274, %449 : vector<32x32xi32>
    %451 = arith.extui %450 : vector<32x32xi1> to vector<32x32xi32>
    %452 = arith.sitofp %451 : vector<32x32xi32> to vector<32x32xf32>
    %cst_113 = arith.constant dense<0.000000e+00> : vector<32x128xf32>
    %453 = tpu.matmul %452, %271, %cst_113 {dimension_numbers = #tpu.dot_dimension_numbers<[1], [0], [0], [1], [0, 0, 1, 1], [], []>} : vector<32x32xf32>, vector<32x128xf32>, vector<32x128xf32> -> vector<32x128xf32>
    %454 = vector.extract_strided_slice %453 {offsets = [0, 0], sizes = [32, 32], strides = [1, 1]} : vector<32x128xf32> to vector<32x32xf32>
    %455 = vector.extract_strided_slice %453 {offsets = [0, 32], sizes = [32, 32], strides = [1, 1]} : vector<32x128xf32> to vector<32x32xf32>
    %456 = vector.extract_strided_slice %453 {offsets = [0, 64], sizes = [32, 32], strides = [1, 1]} : vector<32x128xf32> to vector<32x32xf32>
    %457 = vector.extract_strided_slice %453 {offsets = [0, 96], sizes = [32, 32], strides = [1, 1]} : vector<32x128xf32> to vector<32x32xf32>
    %458 = arith.mulf %273, %454 : vector<32x32xf32>
    %cst_114 = arith.constant dense<0.000000e+00> : vector<32xf32>
    %459 = vector.multi_reduction <add>, %458, %cst_114 [1] : vector<32x32xf32> to vector<32xf32>
    %460 = vector.shape_cast %459 : vector<32xf32> to vector<32x1xf32>
    %461 = arith.mulf %273, %456 : vector<32x32xf32>
    %cst_115 = arith.constant dense<0.000000e+00> : vector<32xf32>
    %462 = vector.multi_reduction <add>, %461, %cst_115 [1] : vector<32x32xf32> to vector<32xf32>
    %463 = vector.shape_cast %462 : vector<32xf32> to vector<32x1xf32>
    %464 = tpu.concatenate %460, %463 in 1 : vector<32x1xf32>, vector<32x1xf32> -> vector<32x2xf32>
    %465 = arith.negf %464 : vector<32x2xf32>
    %466 = math.exp %465 : vector<32x2xf32>
    %cst_116 = arith.constant 1.000000e+00 : f32
    %467 = vector.broadcast %cst_116 : f32 to vector<32x2xf32>
    %468 = arith.addf %467, %466 : vector<32x2xf32>
    %469 = arith.divf %467, %468 : vector<32x2xf32>
    %470 = vector.extract_strided_slice %469 {offsets = [0, 0], sizes = [32, 1], strides = [1, 1]} : vector<32x2xf32> to vector<32x1xf32>
    %471 = vector.extract_strided_slice %469 {offsets = [0, 1], sizes = [32, 1], strides = [1, 1]} : vector<32x2xf32> to vector<32x1xf32>
    %472 = arith.cmpf oge, %470, %471 : vector<32x1xf32>
    %cst_117 = arith.constant 1.000000e+00 : f32
    %473 = vector.broadcast %cst_117 : f32 to vector<32x1xf32>
    %474 = arith.mulf %471, %473 : vector<32x1xf32>
    %475 = vector.broadcast %474 : vector<32x1xf32> to vector<32x32xf32>
    %476 = arith.mulf %457, %475 : vector<32x32xf32>
    %cst_118 = arith.constant 1.000000e+00 : f32
    %477 = vector.broadcast %cst_118 : f32 to vector<32x1xf32>
    %478 = arith.mulf %470, %477 : vector<32x1xf32>
    %479 = vector.broadcast %478 : vector<32x1xf32> to vector<32x32xf32>
    %480 = arith.mulf %455, %479 : vector<32x32xf32>
    %481 = vector.shape_cast %472 : vector<32x1xi1> to vector<32x1xi1>
    %482 = vector.broadcast %481 : vector<32x1xi1> to vector<32x32xi1>
    %483 = arith.select %482, %476, %480 : vector<32x32xi1>, vector<32x32xf32>
    %484 = arith.addf %441, %483 : vector<32x32xf32>
    %485 = arith.mulf %484, %2 : vector<32x32xf32>
    %486 = vector.extract_strided_slice %485 {offsets = [0, 0], sizes = [8, 32], strides = [1, 1]} : vector<32x32xf32> to vector<8x32xf32>
    %487 = vector.extract_strided_slice %485 {offsets = [8, 0], sizes = [8, 32], strides = [1, 1]} : vector<32x32xf32> to vector<8x32xf32>
    %488 = arith.addf %486, %487 : vector<8x32xf32>
    %489 = vector.extract_strided_slice %485 {offsets = [16, 0], sizes = [8, 32], strides = [1, 1]} : vector<32x32xf32> to vector<8x32xf32>
    %490 = arith.addf %488, %489 : vector<8x32xf32>
    %491 = vector.extract_strided_slice %485 {offsets = [24, 0], sizes = [8, 32], strides = [1, 1]} : vector<32x32xf32> to vector<8x32xf32>
    %492 = arith.addf %490, %491 : vector<8x32xf32>
    %cst_119 = arith.constant dense<0.000000e+00> : vector<8x32xf32>
    %493 = tpu.matmul %492, %267, %cst_119 {dimension_numbers = #tpu.dot_dimension_numbers<[1], [0], [0], [1], [0, 0, 1, 1], [], []>} : vector<8x32xf32>, vector<32x32xf32>, vector<8x32xf32> -> vector<8x32xf32>
    %494 = arith.addf %261, %493 : vector<8x32xf32>
    %c0_120 = arith.constant 0 : index
    %c0_121 = arith.constant 0 : index
    %495 = vector.load %arg13[%c0_120, %c0_121] : memref<1x32xf32, #tpu.memory_space<vmem>>, vector<1x32xf32>
    %c0_122 = arith.constant 0 : index
    %c0_123 = arith.constant 0 : index
    %496 = vector.load %arg14[%c0_122, %c0_123] : memref<1x32xf32, #tpu.memory_space<vmem>>, vector<1x32xf32>
    %cst_124 = arith.constant dense<0.000000e+00> : vector<8xf32>
    %497 = vector.multi_reduction <add>, %494, %cst_124 [1] : vector<8x32xf32> to vector<8xf32>
    %498 = vector.shape_cast %497 : vector<8xf32> to vector<8x1xf32>
    %cst_125 = arith.constant 3.200000e+01 : f32
    %499 = vector.broadcast %cst_125 : f32 to vector<8x1xf32>
    %500 = arith.divf %498, %499 : vector<8x1xf32>
    %501 = vector.broadcast %500 : vector<8x1xf32> to vector<8x32xf32>
    %502 = arith.subf %494, %501 : vector<8x32xf32>
    %503 = vector.broadcast %500 : vector<8x1xf32> to vector<8x32xf32>
    %504 = arith.subf %494, %503 : vector<8x32xf32>
    %505 = arith.mulf %502, %504 : vector<8x32xf32>
    %cst_126 = arith.constant dense<0.000000e+00> : vector<8xf32>
    %506 = vector.multi_reduction <add>, %505, %cst_126 [1] : vector<8x32xf32> to vector<8xf32>
    %507 = vector.shape_cast %506 : vector<8xf32> to vector<8x1xf32>
    %cst_127 = arith.constant 3.200000e+01 : f32
    %508 = vector.broadcast %cst_127 : f32 to vector<8x1xf32>
    %509 = arith.divf %507, %508 : vector<8x1xf32>
    %510 = vector.broadcast %500 : vector<8x1xf32> to vector<8x32xf32>
    %511 = arith.subf %494, %510 : vector<8x32xf32>
    %cst_128 = arith.constant 9.99999974E-6 : f32
    %512 = vector.broadcast %cst_128 : f32 to vector<8x1xf32>
    %513 = arith.addf %509, %512 : vector<8x1xf32>
    %514 = math.rsqrt %513 : vector<8x1xf32>
    %515 = vector.broadcast %514 : vector<8x1xf32> to vector<8x32xf32>
    %516 = arith.mulf %511, %515 : vector<8x32xf32>
    %517 = vector.broadcast %495 : vector<1x32xf32> to vector<8x32xf32>
    %518 = arith.mulf %516, %517 : vector<8x32xf32>
    %519 = vector.broadcast %496 : vector<1x32xf32> to vector<8x32xf32>
    %520 = arith.addf %518, %519 : vector<8x32xf32>
    %c0_129 = arith.constant 0 : index
    %c0_130 = arith.constant 0 : index
    %521 = vector.load %arg15[%c0_129, %c0_130] : memref<32x64xf32, #tpu.memory_space<vmem>>, vector<32x64xf32>
    %cst_131 = arith.constant dense<0.000000e+00> : vector<8x64xf32>
    %522 = tpu.matmul %520, %521, %cst_131 {dimension_numbers = #tpu.dot_dimension_numbers<[1], [0], [0], [1], [0, 0, 1, 1], [], []>} : vector<8x32xf32>, vector<32x64xf32>, vector<8x64xf32> -> vector<8x64xf32>
    %c0_132 = arith.constant 0 : index
    %c0_133 = arith.constant 0 : index
    %523 = vector.load %arg16[%c0_132, %c0_133] : memref<1x64xf32, #tpu.memory_space<vmem>>, vector<1x64xf32>
    %524 = vector.broadcast %523 : vector<1x64xf32> to vector<8x64xf32>
    %525 = arith.addf %522, %524 : vector<8x64xf32>
    %cst_134 = arith.constant 0.000000e+00 : f32
    %526 = vector.broadcast %cst_134 : f32 to vector<8x64xf32>
    %527 = arith.maximumf %525, %526 : vector<8x64xf32>
    %c0_135 = arith.constant 0 : index
    %c0_136 = arith.constant 0 : index
    %528 = vector.load %arg17[%c0_135, %c0_136] : memref<64x32xf32, #tpu.memory_space<vmem>>, vector<64x32xf32>
    %cst_137 = arith.constant dense<0.000000e+00> : vector<8x32xf32>
    %529 = tpu.matmul %527, %528, %cst_137 {dimension_numbers = #tpu.dot_dimension_numbers<[1], [0], [0], [1], [0, 0, 1, 1], [], []>} : vector<8x64xf32>, vector<64x32xf32>, vector<8x32xf32> -> vector<8x32xf32>
    %c0_138 = arith.constant 0 : index
    %c0_139 = arith.constant 0 : index
    %530 = vector.load %arg18[%c0_138, %c0_139] : memref<1x32xf32, #tpu.memory_space<vmem>>, vector<1x32xf32>
    %531 = vector.broadcast %530 : vector<1x32xf32> to vector<8x32xf32>
    %532 = arith.addf %529, %531 : vector<8x32xf32>
    %533 = arith.addf %520, %532 : vector<8x32xf32>
    %c0_140 = arith.constant 0 : index
    %c0_141 = arith.constant 0 : index
    %534 = vector.load %arg19[%c0_140, %c0_141] : memref<1x32xf32, #tpu.memory_space<vmem>>, vector<1x32xf32>
    %c0_142 = arith.constant 0 : index
    %c0_143 = arith.constant 0 : index
    %535 = vector.load %arg20[%c0_142, %c0_143] : memref<1x32xf32, #tpu.memory_space<vmem>>, vector<1x32xf32>
    %cst_144 = arith.constant dense<0.000000e+00> : vector<8xf32>
    %536 = vector.multi_reduction <add>, %533, %cst_144 [1] : vector<8x32xf32> to vector<8xf32>
    %537 = vector.shape_cast %536 : vector<8xf32> to vector<8x1xf32>
    %cst_145 = arith.constant 3.200000e+01 : f32
    %538 = vector.broadcast %cst_145 : f32 to vector<8x1xf32>
    %539 = arith.divf %537, %538 : vector<8x1xf32>
    %540 = vector.broadcast %539 : vector<8x1xf32> to vector<8x32xf32>
    %541 = arith.subf %533, %540 : vector<8x32xf32>
    %542 = vector.broadcast %539 : vector<8x1xf32> to vector<8x32xf32>
    %543 = arith.subf %533, %542 : vector<8x32xf32>
    %544 = arith.mulf %541, %543 : vector<8x32xf32>
    %cst_146 = arith.constant dense<0.000000e+00> : vector<8xf32>
    %545 = vector.multi_reduction <add>, %544, %cst_146 [1] : vector<8x32xf32> to vector<8xf32>
    %546 = vector.shape_cast %545 : vector<8xf32> to vector<8x1xf32>
    %cst_147 = arith.constant 3.200000e+01 : f32
    %547 = vector.broadcast %cst_147 : f32 to vector<8x1xf32>
    %548 = arith.divf %546, %547 : vector<8x1xf32>
    %549 = vector.broadcast %539 : vector<8x1xf32> to vector<8x32xf32>
    %550 = arith.subf %533, %549 : vector<8x32xf32>
    %cst_148 = arith.constant 9.99999974E-6 : f32
    %551 = vector.broadcast %cst_148 : f32 to vector<8x1xf32>
    %552 = arith.addf %548, %551 : vector<8x1xf32>
    %553 = math.rsqrt %552 : vector<8x1xf32>
    %554 = vector.broadcast %553 : vector<8x1xf32> to vector<8x32xf32>
    %555 = arith.mulf %550, %554 : vector<8x32xf32>
    %556 = vector.broadcast %534 : vector<1x32xf32> to vector<8x32xf32>
    %557 = arith.mulf %555, %556 : vector<8x32xf32>
    %558 = vector.broadcast %535 : vector<1x32xf32> to vector<8x32xf32>
    %559 = arith.addf %557, %558 : vector<8x32xf32>
    %c0_149 = arith.constant 0 : index
    %c0_150 = arith.constant 0 : index
    %560 = vector.load %arg21[%c0_149, %c0_150] : memref<8x32xf32, #tpu.memory_space<vmem>>, vector<8x32xf32>
    tpu.vector_store %arg21[%c0_149, %c0_150], %559 {strides = array<i32>} : memref<8x32xf32, #tpu.memory_space<vmem>>, vector<8x32xf32>,
    return
  }
  func.func @transform_0(%arg0: i32) -> (i32, i32) {
    %c0_i32 = arith.constant 0 : i32
    %c0_i32_0 = arith.constant 0 : i32
    return %arg0, %c0_i32 : i32, i32
  }
  func.func @transform_1(%arg0: i32) -> (i32, i32) {
    %c0_i32 = arith.constant 0 : i32
    %c0_i32_0 = arith.constant 0 : i32
    return %arg0, %c0_i32 : i32, i32
  }
  func.func @transform_2(%arg0: i32) -> (i32, i32) {
    %c0_i32 = arith.constant 0 : i32
    %c0_i32_0 = arith.constant 0 : i32
    %c0_i32_1 = arith.constant 0 : i32
    return %c0_i32, %c0_i32_0 : i32, i32
  }
  func.func @transform_3(%arg0: i32) -> (i32, i32) {
    %c0_i32 = arith.constant 0 : i32
    %c0_i32_0 = arith.constant 0 : i32
    %c0_i32_1 = arith.constant 0 : i32
    return %c0_i32, %c0_i32_0 : i32, i32
  }
  func.func @transform_4(%arg0: i32) -> (i32, i32) {
    %c0_i32 = arith.constant 0 : i32
    %c0_i32_0 = arith.constant 0 : i32
    %c0_i32_1 = arith.constant 0 : i32
    return %c0_i32, %c0_i32_0 : i32, i32
  }
  func.func @transform_5(%arg0: i32) -> (i32, i32) {
    %c0_i32 = arith.constant 0 : i32
    %c0_i32_0 = arith.constant 0 : i32
    %c0_i32_1 = arith.constant 0 : i32
    return %c0_i32, %c0_i32_0 : i32, i32
  }
  func.func @transform_6(%arg0: i32) -> (i32, i32) {
    %c0_i32 = arith.constant 0 : i32
    %c0_i32_0 = arith.constant 0 : i32
    %c0_i32_1 = arith.constant 0 : i32
    return %c0_i32, %c0_i32_0 : i32, i32
  }
  func.func @transform_7(%arg0: i32) -> (i32, i32) {
    %c0_i32 = arith.constant 0 : i32
    %c0_i32_0 = arith.constant 0 : i32
    %c0_i32_1 = arith.constant 0 : i32
    return %c0_i32, %c0_i32_0 : i32, i32
  }
  func.func @transform_8(%arg0: i32) -> (i32, i32) {
    %c0_i32 = arith.constant 0 : i32
    %c0_i32_0 = arith.constant 0 : i32
    %c0_i32_1 = arith.constant 0 : i32
    return %c0_i32, %c0_i32_0 : i32, i32
  }
  func.func @transform_9(%arg0: i32) -> (i32, i32) {
    %c0_i32 = arith.constant 0 : i32
    %c0_i32_0 = arith.constant 0 : i32
    %c0_i32_1 = arith.constant 0 : i32
    return %c0_i32, %c0_i32_0 : i32, i32
  }
  func.func @transform_10(%arg0: i32) -> (i32, i32) {
    %c0_i32 = arith.constant 0 : i32
    %c0_i32_0 = arith.constant 0 : i32
    %c0_i32_1 = arith.constant 0 : i32
    return %c0_i32, %c0_i32_0 : i32, i32
  }
  func.func @transform_11(%arg0: i32) -> (i32, i32) {
    %c0_i32 = arith.constant 0 : i32
    %c0_i32_0 = arith.constant 0 : i32
    %c0_i32_1 = arith.constant 0 : i32
    return %c0_i32, %c0_i32_0 : i32, i32
  }
  func.func @transform_12(%arg0: i32) -> (i32, i32) {
    %c0_i32 = arith.constant 0 : i32
    %c0_i32_0 = arith.constant 0 : i32
    %c0_i32_1 = arith.constant 0 : i32
    return %c0_i32, %c0_i32_0 : i32, i32
  }
  func.func @transform_13(%arg0: i32) -> (i32, i32) {
    %c0_i32 = arith.constant 0 : i32
    %c0_i32_0 = arith.constant 0 : i32
    %c0_i32_1 = arith.constant 0 : i32
    return %c0_i32, %c0_i32_0 : i32, i32
  }
  func.func @transform_14(%arg0: i32) -> (i32, i32) {
    %c0_i32 = arith.constant 0 : i32
    %c0_i32_0 = arith.constant 0 : i32
    %c0_i32_1 = arith.constant 0 : i32
    return %c0_i32, %c0_i32_0 : i32, i32
  }
  func.func @transform_15(%arg0: i32) -> (i32, i32) {
    %c0_i32 = arith.constant 0 : i32
    %c0_i32_0 = arith.constant 0 : i32
    %c0_i32_1 = arith.constant 0 : i32
    return %c0_i32, %c0_i32_0 : i32, i32
  }
  func.func @transform_16(%arg0: i32) -> (i32, i32) {
    %c0_i32 = arith.constant 0 : i32
    %c0_i32_0 = arith.constant 0 : i32
    %c0_i32_1 = arith.constant 0 : i32
    return %c0_i32, %c0_i32_0 : i32, i32
  }
  func.func @transform_17(%arg0: i32) -> (i32, i32) {
    %c0_i32 = arith.constant 0 : i32
    %c0_i32_0 = arith.constant 0 : i32
    %c0_i32_1 = arith.constant 0 : i32
    return %c0_i32, %c0_i32_0 : i32, i32
  }
  func.func @transform_18(%arg0: i32) -> (i32, i32) {
    %c0_i32 = arith.constant 0 : i32
    %c0_i32_0 = arith.constant 0 : i32
    %c0_i32_1 = arith.constant 0 : i32
    return %c0_i32, %c0_i32_0 : i32, i32
  }
  func.func @transform_19(%arg0: i32) -> (i32, i32) {
    %c0_i32 = arith.constant 0 : i32
    %c0_i32_0 = arith.constant 0 : i32
    %c0_i32_1 = arith.constant 0 : i32
    return %c0_i32, %c0_i32_0 : i32, i32
  }
  func.func @transform_20(%arg0: i32) -> (i32, i32) {
    %c0_i32 = arith.constant 0 : i32
    %c0_i32_0 = arith.constant 0 : i32
    return %arg0, %c0_i32 : i32, i32
  }
}

</mosaic_0001>

<bundles_post_ra>
// kernel: decoder_block_forward.1
= control target key start
LH: loop header
LB: loop body
LE: loop exit
PB: predicated region body
PF: predicated region fallthrough
CT: control target
= control target key end

     0   :  { %s8128_s0 = inlined_call_operand.vmem [shape: f32[16,32], index: 0, kind: input, shape index: {}]   ;;  %s8129_s1 = inlined_call_operand.vmem [shape: f32[16,32], index: 1, kind: input, shape index: {}]   ;;  %s8130_s2 = inlined_call_operand.vmem [shape: f32[64,8], index: 2, kind: input, shape index: {}, may-alias: {2,3}]   ;;  %s8131_s3 = inlined_call_operand.vmem [shape: f32[64,8], index: 3, kind: input, shape index: {}, may-alias: {2,3}]   ;;  %s8132_s4 = inlined_call_operand.vmem [shape: f32[32,32], index: 4, kind: input, shape index: {}]   ;;  %s8133_s5 = inlined_call_operand.vmem [shape: f32[32,96], index: 5, kind: input, shape index: {}]   ;;  %s8134_s6 = inlined_call_operand.vmem [shape: f32[32,32], index: 6, kind: input, shape index: {}]   ;;  %s8135_s7 = inlined_call_operand.vmem [shape: f32[1,32], index: 7, kind: input, shape index: {}]   ;;  %s8136_s8 = inlined_call_operand.vmem [shape: f32[1,32], index: 8, kind: input, shape index: {}]   ;;  %s8137_s9 = inlined_call_operand.vmem [shape: f32[32,32], index: 9, kind: input, shape index: {}]   ;;  %s8138_s10 = inlined_call_operand.vmem [shape: f32[32,64], index: 10, kind: input, shape index: {}]   ;;  %s8139_s11 = inlined_call_operand.vmem [shape: f32[32,32], index: 11, kind: input, shape index: {}]   ;;  %s8140_s12 = inlined_call_operand.vmem [shape: f32[1,32], index: 12, kind: input, shape index: {}]   ;;  %s8141_s13 = inlined_call_operand.vmem [shape: f32[1,32], index: 13, kind: input, shape index: {}]   ;;  %s8142_s14 = inlined_call_operand.vmem [shape: f32[32,64], index: 14, kind: input, shape index: {}]   ;;  %s8143_s15 = inlined_call_operand.vmem [shape: f32[1,64], index: 15, kind: input, shape index: {}]   ;;  %s8144_s16 = inlined_call_operand.vmem [shape: f32[64,32], index: 16, kind: input, shape index: {}]   ;;  %s8145_s17 = inlined_call_operand.vmem [shape: f32[1,32], index: 17, kind: input, shape index: {}]   ;;  %s8146_s18 = inlined_call_operand.vmem [shape: f32[1,32], index: 18, kind: input, shape index: {}]   ;;  %s8147_s19 = inlined_call_operand.vmem [shape: f32[1,32], index: 19, kind: input, shape index: {}]   ;;  %s8148_s20 = inlined_call_operand.hbm [shape: f32[16,32], index: 20, kind: output, shape index: {}]  }
   0x1   :  { %8251 = sst [smem:[#allocation31_spill]] %s8128_s0 }
   0x2   :  { %8252 = sst [smem:[#allocation32_spill]] %s8129_s1 }
   0x3   :  { %8253 = sst [smem:[#allocation33_spill]] %s8130_s2 }
   0x4   :  { %8254 = sst [smem:[#allocation34_spill]] %s8131_s3 }
   0x5   :  { %8255 = sst [smem:[#allocation35_spill]] %s8132_s4 }
   0x6   :  { %8256 = sst [smem:[#allocation36_spill]] %s8133_s5 }
   0x7   :  { %8257 = sst [smem:[#allocation37_spill]] %s8134_s6 }
   0x8   :  { %25 = vsyncpa [#allocation3], 0 }
   0x9   :  { %27 = vsyncpa [#allocation3 + $0x1], 0  ;;  %s5966_s1 = smov 0   ;;  %s5968_s22 = smov 0  }
   0xa   :  { %s5970_s23 = smov 0   ;;  %s5972_s24 = smov 0  }
   0xb LB: > { %8258 = sst [smem:[#allocation5_spill]] %s5836_s1  ;;  %s5987_s2 = sadd.s32 4294967295, %s5848_s24   ;;  %s5848_s24 = sphi %s5972_s24, %s8406_s24   ;;  %s5844_s23 = sphi %s5970_s23, %s8408_s23   ;;  %s5840_s22 = sphi %s5968_s22, %s8410_s22   ;;  %s5836_s1 = sphi %s5966_s1, %s8409_s1  }
   0xc   : > { %8259 = sst [smem:[#allocation6_spill]] %s5844_s23  ;;  %s4837_s25 = sadd.s32 4294967294, %s5848_s24  }
   0xd   : > { %s5991_s3 = sadd.s32 1, %s5848_s24   ;;  %s470_s26 = sadd.s32 1, %s5844_s23 }
   0xe   : > { %8260 = sst [smem:[#allocation7_spill]] %s5991_s3  ;;  %s467_s27 = ssub.s32 %s5848_s24, %s5991_s3 }
   0xf   : > { %p480_p0 = scmp.ne.s32.totalorder %s5844_s23, %s5840_s22  ;;  %p468_p1 = scmp.eq.s32.totalorder %s467_s27, 0 }
  0x10   : > { %p481_p2 = scmp.eq.s32.totalorder %s5987_s2, 1  ;;  %p486_p3 = scmp.ne.s32.totalorder %s5840_s22, %s5836_s1 }
  0x11   : > { %p487_p4 = scmp.eq.s32.totalorder %s4837_s25, 1  ;;  %p4840_p7 = scmp.ge.s32.totalorder %s5848_s24, 1 }
  0x12   : > { %s6002_s28 = scalar_select %p468_p1, %s5844_s23, %s470_s26  }
  0x13   : > { %p6004_p5 = por %p481_p2, %p480_p0  ;;  %p6008_p6 = por %p487_p4, %p486_p3 }
  0x14   : > { %8261 = sst [smem:[#allocation8_spill]] %s6002_s28  ;;  %p573_p8 = scmp.lt.s32.totalorder %s5848_s24, 3 }
  0x15   : > { %s8263_s29 = scalar_select %p6008_p6, 1, 0 }
  0x16   : > { %p574_p9 = pnand %p4840_p7, %p573_p8 }
  0x17   : > { %8264 = sst [smem:[#allocation9_spill]] %s8263_s29 }
  0x18   : > { %577 = sbr.rel (%p574_p9) target bundleno = 10797 (0x2a2d), region = 100 }
  0x1f   : > { %s8265_s5 = sld [smem:[#allocation36_spill]]  ;;  %v8165_v3 = vmov 0.0|0.0   ;;  %vm5851_vm0 = vmmov 0   ;;  %v8169_v6 = vmov 0.0   ;;  %p634_p10 = scmp.lt.s32.totalorder %s5987_s2, 1  ;;  %vm652_vm1 = vcmask 261120  }
  0x20   : > { %5382 = vmatprep.subr.bf16.mxu0 %v8165_v3  ;;  %5137 = vmatprep.mubr.msk.f32.mxu0 %vm5851_vm0, %v8169_v6  ;;  %s8266_s23 = sld [smem:[#allocation31_spill]]  ;;  %vm8159_vm2 = vcmask 64512   ;;  %s5853_s21 = smov 96   ;;  %v897_v20 = vlaneseq  ;;  %vm8158_vm4 = vcmask 523264   ;;  %vm8178_vm5 = vcmask 7168  }
  0x21   : > { %s6031_s30 = scalar_select %p634_p10, %s5987_s2, 1 }
  0x22   : > { %v6080_v21 = vand.u32 127, %v897_v20  ;;  %s8202_s1 = smov 64   ;;  %s8270_s29 = sld [smem:[#allocation35_spill]] }
  0x23   : > { %s8156_s0 = sshll.u32 %s6031_s30, 3  ;;  %s8200_s25 = smov 127  }
  0x24   : > { %8268 = vst [vmem:[#allocation10_spill] sm:$0xff] %v6080_v21  ;;  %vm899_vm3 = vcmp.eq.s32.totalorder %v6080_v21, 1  ;;  %s8304_s6 = sld [smem:[#allocation37_spill]] }
  0x25   : > { %v648_v0 = vld [vmem:[%s8265_s5] sm:$0xff]  ;;  %v649_v1 = vld [vmem:[%s8265_s5 + $0x8] sm:$0xff]  ;;  %v650_v2 = vld [vmem:[%s8265_s5 + $0x10] sm:$0xff]  ;;  %v6084_v27 = vsel %vm899_vm3, 1.0, %v8169_v6 }
  0x26   : > { %v5383_v4 = vpack.c.bf16 %v649_v1, %v648_v0  ;;  %v651_v5 = vld [vmem:[%s8265_s5 + $0x18] sm:$0xff]  ;;  %s6040_s28 = scalar_lea.vmem %s8266_s23, %s8156_s0  ;;  %s8267_s5 = sld [smem:[#allocation33_spill]]  ;;  %8269 = vst [vmem:[#allocation11_spill] sm:$0xff] %v6084_v27 }
  0x27   : > { %v5386_v7 = vpack.c.bf16 %v651_v5, %v650_v2  ;;  %v642_v8 = vld [vmem:[%s6040_s28] sm:$0xff] }
  0x28   : > { %5384 = vmatpush3.bf16.msra.mxu0 %v5383_v4  ;;  %v645_v49 = vld [vmem:[%s8270_s29 + $0x8] sm:$0xff]  ;;  %v644_v52 = vld [vmem:[%s8270_s29] sm:$0xff]  ;;  %v646_v57 = vld [vmem:[%s8270_s29 + $0x10] sm:$0xff] }
  0x29   : > { %5385 = vmatprep.subr.bf16.mxu0 %v8165_v3  ;;  %v647_v63 = vld [vmem:[%s8270_s29 + $0x18] sm:$0xff] }
  0x2c   : > { %5387 = vmatpush3.bf16.msra.mxu0 %v5386_v7  ;;  %v730_v9 = vld [vmem:[%s8267_s5 + $0x20] sm:$0xff]  ;;  %v731_v14 = vld [vmem:[%s8267_s5 + $0x28] sm:$0xff]  ;;  %v732_v16 = vld [vmem:[%s8267_s5 + $0x30] sm:$0xff] }
  0x2d   : > { %5148 = vmatprep.mubr.msk.f32.mxu1 %vm8159_vm2, %v730_v9  ;;  %v726_v10 = vld [vmem:[%s8267_s5] sm:$0xff]  ;;  %v727_v15 = vld [vmem:[%s8267_s5 + $0x8] sm:$0xff]  ;;  %v728_v17 = vld [vmem:[%s8267_s5 + $0x10] sm:$0xff] }
  0x2e   : > { %v733_v18 = vld [vmem:[%s8267_s5 + $0x38] sm:$0xff] }
  0x2f   : > { %5138 = vmatmul.mubr.msk.f32.vlgmr.msra.gmra.mrb[0].mxu0 %vm652_vm1, %v642_v8  ;;  %v729_v19 = vld [vmem:[%s8267_s5 + $0x18] sm:$0xff]  ;;  %s8311_s5 = sshll.u32 %s6031_s30, 3  ;;  %s8400_s30 = smov 32  }
  0x30   : > { %5142 = vmatprep.mubr.msk.f32.mxu0 %vm8159_vm2, %v726_v10 }
 0x102   : > { %v6052_v11 = vpop.f32.mrb[0].mxu0 }
 0x103   : > { %739 = vrot.lane.b32.xlu0 %v6052_v11, %s5853_s21  ;;  %v5139_v12 = vpop.f32.mrb[1].mxu0  ;;  %v6138_v50 = vmul.f32 %v6052_v11, %v645_v49  ;;  %v6146_v53 = vmul.f32 %v6052_v11, %v644_v52  ;;  %v6157_v61 = vmul.f32 %v6052_v11, %v646_v57  ;;  %v6168_v7 = vmul.f32 %v6052_v11, %v647_v63 }
 0x104   : > { %v8167_v11 = vmov 0  }
 0x105   : > { %5571 = vset.pattern.permute.xlu0 %v8167_v11  ;;  %5572 = vset.pattern.permute.xlu1 %v8167_v11 }
 0x175   : > { %v740_v13 = vpop.permute.xlu0 %739 }
 0x176   : > { %5140 = vmatprep.subr.mxu0 %v740_v13  ;;  %5510 = vmatprep.subr.mxu1 %v740_v13 }
 0x177   : > { %5141 = vmatpush3.msra.mxu0 %v740_v13  ;;  %5511 = vmatpush3.msra.mxu1 %v740_v13 }
 0x178   : > { %5149 = vmatmul.mubr.msk.f32.vlgmr.msra.gmra.mrb[0].mxu1 %vm8159_vm2, %v731_v14  ;;  %5143 = vmatmul.mubr.msk.f32.vlgmr.msra.gmra.mrb[2].mxu0 %vm8159_vm2, %v727_v15 }
 0x179   : > { %5151 = vmatprep.mubr.msk.f32.mxu1 %vm8159_vm2, %v732_v16  ;;  %5145 = vmatprep.mubr.msk.f32.mxu0 %vm8159_vm2, %v728_v17 }
 0x17c   : > { %5152 = vmatmul.mubr.msk.f32.gmra.mrb[2].mxu1 %vm8159_vm2, %v733_v18  ;;  %5146 = vmatmul.mubr.msk.f32.gmra.mrb[4].mxu0 %vm8159_vm2, %v729_v19 }
 0x17d   : > { %5162 = vmatprep.mubr.msk.f32.mxu0 %vm652_vm1, %v6084_v27 }
 0x24b   : > { %v5150_v22 = vpop.f32.mrb[0].mxu1  ;;  %v5144_v23 = vpop.f32.mrb[2].mxu0 }
 0x24c   : > { %v853_v24 = vpop.f32.mrb[1].mxu1  ;;  %v833_v25 = vpop.f32.mrb[3].mxu0 }
 0x24d   : > { %v5561_v26 = vpack.i.bf16 %v5150_v22, %v853_v24 }
 0x24f   : > { %5562 = vrot.lane.b32.xlu0 %v5561_v26, %s8202_s1  ;;  %v5153_v28 = vpop.f32.mrb[2].mxu1  ;;  %v5147_v29 = vpop.f32.mrb[4].mxu0 }
 0x250   : > { %v863_v30 = vpop.f32.mrb[3].mxu1  ;;  %v843_v31 = vpop.f32.mrb[5].mxu0 }
 0x251   : > { %v5566_v32 = vpack.i.bf16 %v5153_v28, %v863_v30 }
 0x253   : > { %5567 = vrot.lane.b32.xlu1 %v5566_v32, %s8202_s1 }
 0x2c1   : > { %v5563_v33 = vpop.permute.xlu0 %5562 }
 0x2c2   : > { %v5565_v34 = vunpack.i.h.bf16 %v5563_v33  ;;  %v5564_v35 = vunpack.i.l.bf16 %v5563_v33 }
 0x2c4   : > { %v890_v36 = vsel %vm8158_vm4, %v5144_v23, %v5565_v34  ;;  %v889_v37 = vsel %vm8158_vm4, %v833_v25, %v5564_v35 }
 0x2c5   : > { %v6092_v38 = vpack.c.bf16 %v890_v36, %v889_v37  ;;  %v5568_v39 = vpop.permute.xlu1 %5567 }
 0x2c6   : > { %v5570_v40 = vunpack.i.h.bf16 %v5568_v39  ;;  %v5569_v41 = vunpack.i.l.bf16 %v5568_v39 }
 0x2c7   : > { %5389 = vmatprep.subr.bf16.mxu0 %v6092_v38  ;;  %5397 = vmatprep.subr.bf16.mxu1 %v6092_v38 }
 0x2c8   : > { %v892_v42 = vsel %vm8158_vm4, %v5147_v29, %v5570_v40  ;;  %v891_v43 = vsel %vm8158_vm4, %v843_v31, %v5569_v41  ;;  %5391 = vmatpush3.bf16.msra.mxu0 %v6092_v38  ;;  %5399 = vmatpush3.bf16.msra.mxu1 %v6092_v38 }
 0x2c9   : > { %v6100_v44 = vpack.c.bf16 %v892_v42, %v891_v43 }
 0x2cb   : > { %5393 = vmatprep.subr.bf16.mxu0 %v6100_v44  ;;  %5401 = vmatprep.subr.bf16.mxu1 %v6100_v44 }
 0x2cc   : > { %5395 = vmatpush3.bf16.msra.mxu0 %v6100_v44  ;;  %5403 = vmatpush3.bf16.msra.mxu1 %v6100_v44 }
 0x2cd   : > { %5405 = vmatprep.subr.bf16.mxu0 %v6092_v38  ;;  %5413 = vmatprep.subr.bf16.mxu1 %v6092_v38 }
 0x2cf   : > { %5163 = vmatmul.mubr.msk.f32.vlgmr.msra.gmra.mrb[6].mxu0 %vm652_vm1, %v6084_v27 }
 0x2d0   : > { %5407 = vmatpush3.bf16.msra.mxu0 %v6092_v38  ;;  %5165 = vmatprep.mubr.msk.f32.mxu0 %vm652_vm1, %v6084_v27 }
 0x2d1   : > { %5409 = vmatprep.subr.bf16.mxu0 %v6100_v44 }
 0x2d3   : > { %5166 = vmatmul.mubr.msk.f32.gmra.mrb[8].mxu0 %vm652_vm1, %v6084_v27 }
 0x2d4   : > { %5411 = vmatpush3.bf16.msra.mxu0 %v6100_v44 }
 0x2d5   : > { %5421 = vmatprep.subr.bf16.mxu0 %v6092_v38 }
 0x3a2   : > { %v6118_v45 = vpop.f32.mrb[6].mxu0 }
 0x3a3   : > { %1012 = vrot.lane.b32.xlu0 %v6118_v45, %s8202_s1  ;;  %v6122_v46 = vpop.f32.mrb[7].mxu0  ;;  %v991_v51 = vmul.f32 %v6118_v45, %v6138_v50 }
 0x3a4   : > { %1010 = vrot.lane.b32.xlu1 %v6122_v46, %s8202_s1  ;;  %v990_v55 = vmul.f32 %v6122_v46, %v6146_v53 }
 0x3a5   : > { %v997_v54 = vsel %vm652_vm1, %v991_v51, 0.0 }
 0x3a6   : > { %v6126_v47 = vpop.f32.mrb[8].mxu0  ;;  %v994_v56 = vsel %vm652_vm1, %v990_v55, 0.0 }
 0x3a7   : > { %1016 = vrot.lane.b32.xlu0 %v6126_v47, %s8202_s1  ;;  %v6130_v48 = vpop.f32.mrb[9].mxu0  ;;  %v993_v13 = vmul.f32 %v6126_v47, %v6168_v7 }
 0x3a8   : > { %1014 = vrot.lane.b32.xlu1 %v6130_v48, %s8202_s1  ;;  %v992_v2 = vmul.f32 %v6130_v48, %v6157_v61 }
 0x3a9   : > { %v1003_v15 = vsel %vm652_vm1, %v993_v13, 0.0 }
 0x3aa   : > { %v1000_v12 = vsel %vm652_vm1, %v992_v2, 0.0 }
 0x3c6   : > { %998 = vadd.xlane.f32.xlu0 %v997_v54 }
 0x3cc   : > { %995 = vadd.xlane.f32.xlu1 %v994_v56  ;;  %v8163_v56 = vmov 3  }
 0x415   : > { %v1013_v58 = vpop.permute.xlu0 %1012 }
 0x416   : > { %v1023_v59 = vmul.f32 %v1013_v58, %v6138_v50  ;;  %v1011_v60 = vpop.permute.xlu1 %1010 }
 0x417   : > { %v1022_v62 = vmul.f32 %v1011_v60, %v6146_v53 }
 0x418   : > { %v1029_v0 = vsel %vm652_vm1, %v1023_v59, 0.0 }
 0x419   : > { %1030 = vadd.xlane.f32.xlu1 %v1029_v0  ;;  %v1026_v1 = vsel %vm652_vm1, %v1022_v62, 0.0  ;;  %v1017_v4 = vpop.permute.xlu0 %1016 }
 0x41a   : > { %1027 = vadd.xlane.f32.xlu0 %v1026_v1  ;;  %v1015_v5 = vpop.permute.xlu1 %1014  ;;  %v1025_v9 = vmul.f32 %v1017_v4, %v6168_v7 }
 0x41b   : > { %v1024_v8 = vmul.f32 %v1015_v5, %v6157_v61 }
 0x41c   : > { %v1035_v14 = vsel %vm652_vm1, %v1025_v9, 0.0 }
 0x41d   : > { %v1032_v10 = vsel %vm652_vm1, %v1024_v8, 0.0 }
 0x41e   : > { %1033 = vadd.xlane.f32.xlu1 %v1032_v10  ;;  %1001 = vadd.xlane.f32.xlu0 %v1000_v12 }
 0x422   : > { %1036 = vadd.xlane.f32.xlu1 %v1035_v14  ;;  %1004 = vadd.xlane.f32.xlu0 %v1003_v15 }
 0x453   : > { %v999_v17 = vpop.xlane.xlu0 %998 }
 0x459   : > { %v996_v16 = vpop.xlane.xlu1 %995 }
 0x4a6   : > { %v1031_v18 = vpop.xlane.xlu1 %1030 }
 0x4a7   : > { %v1040_v19 = vsel %vm8178_vm5, %v999_v17, %v1031_v18  ;;  %v1028_v20 = vpop.xlane.xlu0 %1027 }
 0x4a8   : > { %v4859_v22 = vmul.f32 -1.442695, %v1040_v19  ;;  %v1039_v23 = vsel %vm8178_vm5, %v996_v16, %v1028_v20 }
 0x4a9   : > { %v4858_v24 = vmul.f32 -1.442695, %v1039_v23 }
 0x4aa   : > { %5615 = vpow2.f32 %v4859_v22 }
 0x4ab   : > { %5617 = vpow2.f32 %v4858_v24  ;;  %v1034_v25 = vpop.xlane.xlu1 %1033  ;;  %v1002_v26 = vpop.xlane.xlu0 %1001 }
 0x4ac   : > { %v1041_v28 = vsel %vm8178_vm5, %v1002_v26, %v1034_v25 }
 0x4ad   : > { %v4860_v29 = vmul.f32 -1.442695, %v1041_v28 }
 0x4af   : > { %5619 = vpow2.f32 %v4860_v29  ;;  %v1037_v30 = vpop.xlane.xlu1 %1036  ;;  %v1005_v31 = vpop.xlane.xlu0 %1004 }
 0x4b0   : > { %v1042_v32 = vsel %vm8178_vm5, %v1005_v31, %v1037_v30 }
 0x4b1   : > { %v4861_v33 = vmul.f32 -1.442695, %v1042_v32 }
 0x4b3   : > { %5621 = vpow2.f32 %v4861_v33 }
 0x4b4   : > { %v5616_v34 = vpop.eup %5615 }
 0x4b5   : > { %v5618_v35 = vpop.eup %5617  ;;  %v1056_v36 = vadd.f32 1.0, %v5616_v34 }
 0x4b6   : > { %v1055_v37 = vadd.f32 1.0, %v5618_v35 }
 0x4b7   : > { %5623 = vrcp.f32 %v1056_v36 }
 0x4b8   : > { %5625 = vrcp.f32 %v1055_v37 }
 0x4b9   : > { %v5620_v39 = vpop.eup %5619 }
 0x4ba   : > { %v1057_v40 = vadd.f32 1.0, %v5620_v39 }
 0x4bc   : > { %5627 = vrcp.f32 %v1057_v40 }
 0x4bd   : > { %v5622_v41 = vpop.eup %5621 }
 0x4be   : > { %v1058_v42 = vadd.f32 1.0, %v5622_v41 }
 0x4c0   : > { %5629 = vrcp.f32 %v1058_v42 }
 0x4c1   : > { %v6184_v43 = vpop.eup %5623 }
 0x4c2   : > { %v6186_v49 = vpop.eup %5625  ;;  %1073 = vrot.lane.b32.xlu1 %v6184_v43, %s8200_s25 }
 0x4c3   : > { %1071 = vrot.lane.b32.xlu0 %v6186_v49, %s8200_s25 }
 0x4c6   : > { %v6192_v51 = vpop.eup %5627 }
 0x4c7   : > { %1075 = vrot.lane.b32.xlu1 %v6192_v51, %s8200_s25 }
 0x4ca   : > { %v6196_v52 = vpop.eup %5629 }
 0x4cb   : > { %1077 = vrot.lane.b32.xlu0 %v6196_v52, %s8200_s25 }
 0x534   : > { %v6200_v54 = vpop.permute.xlu1 %1073 }
 0x535   : > { %vm8162_vm6 = vcmp.ge.f32.partialorder %v6184_v43, %v6200_v54  ;;  %v6204_v55 = vpop.permute.xlu0 %1071 }
 0x536   : > { %vm1083_vm7 = vcmp.ge.f32.partialorder %v6186_v49, %v6204_v55  ;;  %v6212_v57 = vsel %vm8162_vm6, 2, %v8163_v56 }
 0x537   : > { %1187 = vperm.xlu0 %5571, %v6212_v57   ;;  %v6219_v58 = vsel %vm1083_vm7, 2, %v8163_v56 }
 0x538   : > { %1184 = vperm.xlu1 %5572, %v6219_v58  }
 0x539   : > { %v6222_v59 = vpop.permute.xlu1 %1075 }
 0x53a   : > { %vm1085_vm8 = vcmp.ge.f32.partialorder %v6192_v51, %v6222_v59 }
 0x53b   : > { %v6230_v60 = vsel %vm1085_vm8, 2, %v8163_v56 }
 0x53c   : > { %1190 = vperm.xlu1 %5572, %v6230_v60  }
 0x53d   : > { %v6233_v62 = vpop.permute.xlu0 %1077 }
 0x53e   : > { %vm8160_vm9 = vcmp.ge.f32.partialorder %v6196_v52, %v6233_v62 }
 0x53f   : > { %v6241_v63 = vsel %vm8160_vm9, 2, %v8163_v56 }
 0x540   : > { %1193 = vperm.xlu1 %5572, %v6241_v63  }
 0x5b6   : > { %v1188_v0 = vpop.permute.xlu0 %1187 }
 0x5b7   : > { %vm1196_vm10 = vcmp.eq.s32.totalorder %v6080_v21, %v1188_v0  ;;  %v1185_v1 = vpop.permute.xlu1 %1184 }
 0x5b8   : > { %vm1195_vm11 = vcmp.eq.s32.totalorder %v6080_v21, %v1185_v1  ;;  %v4863_v4 = vsel %vm1196_vm10, 1.0, %v8169_v6 }
 0x5b9   : > { %v4862_v2 = vsel %vm1195_vm11, 1.0, %v8169_v6 }
 0x5ba   : > { %5176 = vmatprep.mubr.msk.f32.mxu1 %vm652_vm1, %v4862_v2 }
 0x5bb   : > { %v1191_v5 = vpop.permute.xlu1 %1190  ;;  %5177 = vmatmul.mubr.msk.f32.vlgmr.msra.gmra.mrb[4].mxu1 %vm652_vm1, %v4863_v4 }
 0x5bc   : > { %vm1197_vm12 = vcmp.eq.s32.totalorder %v6080_v21, %v1191_v5  ;;  %5415 = vmatpush3.bf16.msra.mxu1 %v6092_v38 }
 0x5bd   : > { %v4864_v8 = vsel %vm1197_vm12, 1.0, %v8169_v6  ;;  %5417 = vmatprep.subr.bf16.mxu1 %v6100_v44 }
 0x5be   : > { %5179 = vmatprep.mubr.msk.f32.mxu1 %vm652_vm1, %v4864_v8 }
 0x5bf   : > { %v1194_v9 = vpop.permute.xlu1 %1193 }
 0x5c0   : > { %vm1198_vm13 = vcmp.eq.s32.totalorder %v6080_v21, %v1194_v9  ;;  %5419 = vmatpush3.bf16.msra.mxu1 %v6100_v44 }
 0x5c1   : > { %v4865_v10 = vsel %vm1198_vm13, 1.0, %v8169_v6  ;;  %5428 = vmatprep.subr.bf16.mxu1 %v8165_v3 }
 0x5c2   : > { %5180 = vmatmul.mubr.msk.f32.gmra.mrb[6].mxu1 %vm652_vm1, %v4865_v10 }
 0x68e   : > { %v6260_v12 = vpop.f32.mrb[4].mxu1 }
 0x68f   : > { %1326 = vrot.lane.b32.xlu1 %v6260_v12, %s8202_s1  ;;  %v6264_v13 = vpop.f32.mrb[5].mxu1  ;;  %v1305_v18 = vmul.f32 %v6260_v12, %v6138_v50 }
 0x690   : > { %1324 = vrot.lane.b32.xlu0 %v6264_v13, %s8202_s1  ;;  %v1304_v16 = vmul.f32 %v6264_v13, %v6146_v53 }
 0x691   : > { %v1311_v19 = vsel %vm652_vm1, %v1305_v18, 0.0 }
 0x692   : > { %v1308_v17 = vsel %vm652_vm1, %v1304_v16, 0.0 }
 0x695   : > { %v6268_v14 = vpop.f32.mrb[6].mxu1 }
 0x696   : > { %1330 = vrot.lane.b32.xlu1 %v6268_v14, %s8202_s1  ;;  %v6272_v15 = vpop.f32.mrb[7].mxu1  ;;  %v1307_v32 = vmul.f32 %v6268_v14, %v6168_v7 }
 0x697   : > { %1328 = vrot.lane.b32.xlu0 %v6272_v15, %s8202_s1  ;;  %v1306_v28 = vmul.f32 %v6272_v15, %v6157_v61 }
 0x698   : > { %v1317_v36 = vsel %vm652_vm1, %v1307_v32, 0.0 }
 0x699   : > { %v1314_v31 = vsel %vm652_vm1, %v1306_v28, 0.0 }
 0x6b6   : > { %1309 = vadd.xlane.f32.xlu0 %v1308_v17 }
 0x6ba   : > { %1312 = vadd.xlane.f32.xlu0 %v1311_v19 }
 0x701   : > { %v1327_v20 = vpop.permute.xlu1 %1326 }
 0x702   : > { %v1337_v22 = vmul.f32 %v1327_v20, %v6138_v50  ;;  %v1325_v23 = vpop.permute.xlu0 %1324 }
 0x703   : > { %v1336_v24 = vmul.f32 %v1325_v23, %v6146_v53 }
 0x704   : > { %v1343_v25 = vsel %vm652_vm1, %v1337_v22, 0.0 }
 0x705   : > { %1344 = vadd.xlane.f32.xlu0 %v1343_v25  ;;  %v1340_v26 = vsel %vm652_vm1, %v1336_v24, 0.0 }
 0x706   : > { %1341 = vadd.xlane.f32.xlu1 %v1340_v26 }
 0x708   : > { %v1331_v29 = vpop.permute.xlu1 %1330 }
 0x709   : > { %v1329_v30 = vpop.permute.xlu0 %1328  ;;  %v1339_v34 = vmul.f32 %v1331_v29, %v6168_v7 }
 0x70a   : > { %v1338_v33 = vmul.f32 %v1329_v30, %v6157_v61  ;;  %1315 = vadd.xlane.f32.xlu1 %v1314_v31 }
 0x70b   : > { %v1349_v37 = vsel %vm652_vm1, %v1339_v34, 0.0  ;;  %v1493_v34 = vmul.u32 2, %v6212_v57 }
 0x70c   : > { %v1346_v35 = vsel %vm652_vm1, %v1338_v33, 0.0 }
 0x70d   : > { %1347 = vadd.xlane.f32.xlu0 %v1346_v35  ;;  %v1492_v35 = vmul.u32 2, %v6219_v58  ;;  %v1494_v58 = vmul.u32 2, %v6230_v60 }
 0x70e   : > { %1318 = vadd.xlane.f32.xlu1 %v1317_v36  ;;  %v1497_v36 = vadd.s32 1, %v1493_v34 }
 0x711   : > { %1350 = vadd.xlane.f32.xlu0 %v1349_v37 }
 0x743   : > { %v1310_v39 = vpop.xlane.xlu0 %1309 }
 0x747   : > { %v1313_v40 = vpop.xlane.xlu0 %1312 }
 0x792   : > { %v1345_v41 = vpop.xlane.xlu0 %1344 }
 0x793   : > { %v1353_v42 = vsel %vm8178_vm5, %v1313_v40, %v1345_v41  ;;  %v1342_v0 = vpop.xlane.xlu1 %1341 }
 0x794   : > { %v4871_v1 = vmul.f32 -1.442695, %v1353_v42  ;;  %v1352_v2 = vsel %vm8178_vm5, %v1310_v39, %v1342_v0  ;;  %v1496_v39 = vadd.s32 1, %v1492_v35  ;;  %v1498_v42 = vadd.s32 1, %v1494_v58 }
 0x795   : > { %v4870_v4 = vmul.f32 -1.442695, %v1352_v2  ;;  %v1495_v0 = vmul.u32 2, %v6241_v63 }
 0x796   : > { %5631 = vpow2.f32 %v4871_v1 }
 0x797   : > { %5633 = vpow2.f32 %v4870_v4  ;;  %v1316_v5 = vpop.xlane.xlu1 %1315  ;;  %v1499_v4 = vadd.s32 1, %v1495_v0 }
 0x79a   : > { %v1348_v8 = vpop.xlane.xlu0 %1347 }
 0x79b   : > { %v1354_v9 = vsel %vm8178_vm5, %v1316_v5, %v1348_v8  ;;  %v1319_v16 = vpop.xlane.xlu1 %1318 }
 0x79c   : > { %v4872_v10 = vmul.f32 -1.442695, %v1354_v9 }
 0x79e   : > { %5635 = vpow2.f32 %v4872_v10  ;;  %v1351_v17 = vpop.xlane.xlu0 %1350 }
 0x79f   : > { %v1355_v18 = vsel %vm8178_vm5, %v1319_v16, %v1351_v17 }
 0x7a0   : > { %v5632_v19 = vpop.eup %5631  ;;  %v4873_v20 = vmul.f32 -1.442695, %v1355_v18 }
 0x7a1   : > { %v5634_v22 = vpop.eup %5633  ;;  %v1369_v23 = vadd.f32 1.0, %v5632_v19 }
 0x7a2   : > { %v1368_v24 = vadd.f32 1.0, %v5634_v22  ;;  %5637 = vpow2.f32 %v4873_v20 }
 0x7a3   : > { %5639 = vrcp.f32 %v1369_v23 }
 0x7a4   : > { %5641 = vrcp.f32 %v1368_v24 }
 0x7a8   : > { %v5636_v25 = vpop.eup %5635 }
 0x7a9   : > { %v1370_v26 = vadd.f32 1.0, %v5636_v25 }
 0x7ab   : > { %5643 = vrcp.f32 %v1370_v26 }
 0x7ac   : > { %v5638_v28 = vpop.eup %5637 }
 0x7ad   : > { %v6300_v29 = vpop.eup %5639  ;;  %v1371_v30 = vadd.f32 1.0, %v5638_v28 }
 0x7ae   : > { %v6302_v31 = vpop.eup %5641  ;;  %1386 = vrot.lane.b32.xlu0 %v6300_v29, %s8200_s25 }
 0x7af   : > { %5645 = vrcp.f32 %v1371_v30  ;;  %1384 = vrot.lane.b32.xlu1 %v6302_v31, %s8200_s25 }
 0x7b5   : > { %v6308_v32 = vpop.eup %5643 }
 0x7b6   : > { %1388 = vrot.lane.b32.xlu1 %v6308_v32, %s8200_s25 }
 0x7b9   : > { %v6312_v33 = vpop.eup %5645 }
 0x7ba   : > { %1390 = vrot.lane.b32.xlu1 %v6312_v33, %s8200_s25 }
 0x820   : > { %v6318_v37 = vpop.permute.xlu0 %1386 }
 0x821   : > { %vm1397_vm14 = vcmp.ge.f32.partialorder %v6300_v29, %v6318_v37  ;;  %v6322_v40 = vpop.permute.xlu1 %1384 }
 0x822   : > { %vm1396_vm15 = vcmp.ge.f32.partialorder %v6302_v31, %v6322_v40  ;;  %v6329_v41 = vsel %vm1397_vm14, %v1493_v34, %v1497_v36 }
 0x823   : > { %1508 = vperm.xlu1 %5572, %v6329_v41   ;;  %v6335_v57 = vsel %vm1396_vm15, %v1492_v35, %v1496_v39 }
 0x824   : > { %1505 = vperm.xlu0 %5571, %v6335_v57  }
 0x828   : > { %v6340_v1 = vpop.permute.xlu1 %1388 }
 0x829   : > { %vm8161_vm3 = vcmp.ge.f32.partialorder %v6308_v32, %v6340_v1 }
 0x82a   : > { %v6347_v2 = vsel %vm8161_vm3, %v1494_v58, %v1498_v42 }
 0x82b   : > { %1511 = vperm.xlu0 %5571, %v6347_v2  }
 0x82c   : > { %v6350_v5 = vpop.permute.xlu1 %1390 }
 0x82d   : > { %vm1399_vm10 = vcmp.ge.f32.partialorder %v6312_v33, %v6350_v5 }
 0x82e   : > { %v6357_v60 = vsel %vm1399_vm10, %v1495_v0, %v1499_v4 }
 0x82f   : > { %1514 = vperm.xlu1 %5572, %v6357_v60  }
 0x8a2   : > { %v1509_v63 = vpop.permute.xlu1 %1508 }
 0x8a3   : > { %vm1517_vm11 = vcmp.eq.s32.totalorder %v6080_v21, %v1509_v63  ;;  %v1506_v8 = vpop.permute.xlu0 %1505 }
 0x8a4   : > { %vm1516_vm12 = vcmp.eq.s32.totalorder %v6080_v21, %v1506_v8  ;;  %v4875_v10 = vsel %vm1517_vm11, 1.0, %v8169_v6 }
 0x8a5   : > { %v4874_v9 = vsel %vm1516_vm12, 1.0, %v8169_v6 }
 0x8a6   : > { %5190 = vmatprep.mubr.msk.f32.mxu0 %vm652_vm1, %v4874_v9 }
 0x8a7   : > { %5191 = vmatmul.mubr.msk.f32.vlgmr.msra.gmra.mrb[10].mxu0 %vm652_vm1, %v4875_v10 }
 0x8a8   : > { %5423 = vmatpush3.bf16.msra.mxu0 %v6092_v38 }
 0x8a9   : > { %5425 = vmatprep.subr.bf16.mxu0 %v6100_v44 }
 0x8aa   : > { %v1512_v16 = vpop.permute.xlu0 %1511 }
 0x8ab   : > { %vm1518_vm13 = vcmp.eq.s32.totalorder %v6080_v21, %v1512_v16 }
 0x8ac   : > { %v4876_v17 = vsel %vm1518_vm13, 1.0, %v8169_v6  ;;  %5427 = vmatpush3.bf16.msra.mxu0 %v6100_v44 }
 0x8ad   : > { %5193 = vmatprep.mubr.msk.f32.mxu0 %vm652_vm1, %v4876_v17  ;;  %5434 = vmatprep.subr.bf16.mxu0 %v8165_v3 }
 0x8ae   : > { %v1515_v18 = vpop.permute.xlu1 %1514 }
 0x8af   : > { %vm1519_vm11 = vcmp.eq.s32.totalorder %v6080_v21, %v1515_v18 }
 0x8b0   : > { %v4877_v19 = vsel %vm1519_vm11, 1.0, %v8169_v6 }
 0x8b1   : > { %5194 = vmatmul.mubr.msk.f32.gmra.mrb[12].mxu0 %vm652_vm1, %v4877_v19 }
 0x97a   : > { %v6376_v38 = vpop.f32.mrb[10].mxu0 }
 0x97b   : > { %1647 = vrot.lane.b32.xlu1 %v6376_v38, %s8202_s1  ;;  %v6380_v20 = vpop.f32.mrb[11].mxu0  ;;  %v1626_v25 = vmul.f32 %v6376_v38, %v6138_v50 }
 0x97c   : > { %1645 = vrot.lane.b32.xlu0 %v6380_v20, %s8202_s1  ;;  %v1625_v23 = vmul.f32 %v6380_v20, %v6146_v53 }
 0x97d   : > { %v1632_v26 = vsel %vm652_vm1, %v1626_v25, 0.0 }
 0x97e   : > { %v1629_v24 = vsel %vm652_vm1, %v1625_v23, 0.0 }
 0x984   : > { %v6384_v44 = vpop.f32.mrb[12].mxu0 }
 0x985   : > { %8271 = vst [vmem:[#allocation12_spill] sm:$0xff] %v6384_v44  ;;  %1651 = vrot.lane.b32.xlu1 %v6384_v44, %s8202_s1  ;;  %v6388_v22 = vpop.f32.mrb[13].mxu0  ;;  %v1628_v0 = vmul.f32 %v6384_v44, %v6168_v7 }
 0x986   : > { %8272 = vst [vmem:[#allocation13_spill] sm:$0xff] %v6388_v22  ;;  %1649 = vrot.lane.b32.xlu0 %v6388_v22, %s8202_s1  ;;  %v1627_v58 = vmul.f32 %v6388_v22, %v6157_v61 }
 0x987   : > { %v1638_v9 = vsel %vm652_vm1, %v1628_v0, 0.0 }
 0x988   : > { %v1635_v42 = vsel %vm652_vm1, %v1627_v58, 0.0 }
 0x9a5   : > { %1630 = vadd.xlane.f32.xlu0 %v1629_v24 }
 0x9a9   : > { %1633 = vadd.xlane.f32.xlu0 %v1632_v26 }
 0x9ed   : > { %v1648_v28 = vpop.permute.xlu1 %1647 }
 0x9ee   : > { %v1658_v30 = vmul.f32 %v1648_v28, %v6138_v50  ;;  %v1646_v34 = vpop.permute.xlu0 %1645 }
 0x9ef   : > { %v1657_v35 = vmul.f32 %v1646_v34, %v6146_v53 }
 0x9f0   : > { %v1664_v36 = vsel %vm652_vm1, %v1658_v30, 0.0 }
 0x9f1   : > { %1665 = vadd.xlane.f32.xlu0 %v1664_v36  ;;  %v1661_v39 = vsel %vm652_vm1, %v1657_v35, 0.0 }
 0x9f2   : > { %1662 = vadd.xlane.f32.xlu1 %v1661_v39 }
 0x9f6   : > { %1636 = vadd.xlane.f32.xlu1 %v1635_v42 }
 0x9f7   : > { %v1652_v4 = vpop.permute.xlu1 %1651 }
 0x9f8   : > { %v1650_v63 = vpop.permute.xlu0 %1649  ;;  %v1660_v10 = vmul.f32 %v1652_v4, %v6168_v7 }
 0x9f9   : > { %v1659_v8 = vmul.f32 %v1650_v63, %v6157_v61 }
 0x9fa   : > { %1639 = vadd.xlane.f32.xlu1 %v1638_v9  ;;  %v1670_v17 = vsel %vm652_vm1, %v1660_v10, 0.0 }
 0x9fb   : > { %v1667_v16 = vsel %vm652_vm1, %v1659_v8, 0.0 }
 0x9fc   : > { %1668 = vadd.xlane.f32.xlu0 %v1667_v16 }
 0xa00   : > { %1671 = vadd.xlane.f32.xlu0 %v1670_v17 }
 0xa32   : > { %v1631_v18 = vpop.xlane.xlu0 %1630 }
 0xa36   : > { %v1634_v19 = vpop.xlane.xlu0 %1633 }
 0xa7e   : > { %v1666_v23 = vpop.xlane.xlu0 %1665 }
 0xa7f   : > { %v1674_v24 = vsel %vm8178_vm5, %v1634_v19, %v1666_v23  ;;  %v1663_v25 = vpop.xlane.xlu1 %1662 }
 0xa80   : > { %v4883_v26 = vmul.f32 -1.442695, %v1674_v24  ;;  %v1673_v28 = vsel %vm8178_vm5, %v1631_v18, %v1663_v25 }
 0xa81   : > { %v4882_v30 = vmul.f32 -1.442695, %v1673_v28  ;;  %v1814_v28 = vmul.u32 2, %v6329_v41 }
 0xa82   : > { %5647 = vpow2.f32 %v4883_v26 }
 0xa83   : > { %5649 = vpow2.f32 %v4882_v30  ;;  %v1637_v34 = vpop.xlane.xlu1 %1636  ;;  %v1813_v30 = vmul.u32 2, %v6335_v57  ;;  %v1815_v57 = vmul.u32 2, %v6347_v2 }
 0xa87   : > { %v1640_v4 = vpop.xlane.xlu1 %1639 }
 0xa89   : > { %v1669_v35 = vpop.xlane.xlu0 %1668 }
 0xa8a   : > { %v1675_v36 = vsel %vm8178_vm5, %v1637_v34, %v1669_v35  ;;  %v1818_v34 = vadd.s32 1, %v1814_v28 }
 0xa8b   : > { %v4884_v39 = vmul.f32 -1.442695, %v1675_v36  ;;  %v1817_v36 = vadd.s32 1, %v1813_v30 }
 0xa8c   : > { %v5648_v58 = vpop.eup %5647 }
 0xa8d   : > { %v5650_v42 = vpop.eup %5649  ;;  %v1690_v0 = vadd.f32 1.0, %v5648_v58  ;;  %5651 = vpow2.f32 %v4884_v39  ;;  %v1672_v63 = vpop.xlane.xlu0 %1671 }
 0xa8e   : > { %v1689_v8 = vadd.f32 1.0, %v5650_v42  ;;  %v1676_v9 = vsel %vm8178_vm5, %v1640_v4, %v1672_v63  ;;  %v1819_v42 = vadd.s32 1, %v1815_v57 }
 0xa8f   : > { %5653 = vrcp.f32 %v1690_v0  ;;  %v4885_v10 = vmul.f32 -1.442695, %v1676_v9  ;;  %v1816_v0 = vmul.u32 2, %v6357_v60 }
 0xa90   : > { %5655 = vrcp.f32 %v1689_v8 }
 0xa91   : > { %5657 = vpow2.f32 %v4885_v10  ;;  %v1820_v8 = vadd.s32 1, %v1816_v0 }
 0xa97   : > { %v5652_v16 = vpop.eup %5651 }
 0xa98   : > { %v1691_v17 = vadd.f32 1.0, %v5652_v16 }
 0xa99   : > { %v6416_v18 = vpop.eup %5653 }
 0xa9a   : > { %v6418_v19 = vpop.eup %5655  ;;  %5659 = vrcp.f32 %v1691_v17  ;;  %1707 = vrot.lane.b32.xlu0 %v6416_v18, %s8200_s25 }
 0xa9b   : > { %v5658_v23 = vpop.eup %5657  ;;  %1705 = vrot.lane.b32.xlu1 %v6418_v19, %s8200_s25 }
 0xa9c   : > { %v1692_v24 = vadd.f32 1.0, %v5658_v23 }
 0xa9e   : > { %5661 = vrcp.f32 %v1692_v24 }
 0xaa4   : > { %v6424_v25 = vpop.eup %5659 }
 0xaa5   : > { %1709 = vrot.lane.b32.xlu1 %v6424_v25, %s8200_s25 }
 0xaa8   : > { %v6428_v26 = vpop.eup %5661 }
 0xaa9   : > { %1711 = vrot.lane.b32.xlu1 %v6428_v26, %s8200_s25 }
 0xb0c   : > { %v6434_v35 = vpop.permute.xlu0 %1707 }
 0xb0d   : > { %vm1718_vm12 = vcmp.ge.f32.partialorder %v6416_v18, %v6434_v35  ;;  %v6438_v39 = vpop.permute.xlu1 %1705 }
 0xb0e   : > { %vm1717_vm13 = vcmp.ge.f32.partialorder %v6418_v19, %v6438_v39  ;;  %v6445_v58 = vsel %vm1718_vm12, %v1814_v28, %v1818_v34 }
 0xb0f   : > { %1829 = vperm.xlu1 %5572, %v6445_v58   ;;  %v6451_v41 = vsel %vm1717_vm13, %v1813_v30, %v1817_v36 }
 0xb10   : > { %1826 = vperm.xlu0 %5571, %v6451_v41  }
 0xb17   : > { %v6456_v4 = vpop.permute.xlu1 %1709 }
 0xb18   : > { %vm1719_vm11 = vcmp.ge.f32.partialorder %v6424_v25, %v6456_v4 }
 0xb19   : > { %v6463_v63 = vsel %vm1719_vm11, %v1815_v57, %v1819_v42 }
 0xb1a   : > { %1832 = vperm.xlu0 %5571, %v6463_v63  }
 0xb1b   : > { %v6466_v9 = vpop.permute.xlu1 %1711 }
 0xb1c   : > { %vm1720_vm4 = vcmp.ge.f32.partialorder %v6428_v26, %v6466_v9 }
 0xb1d   : > { %v6473_v2 = vsel %vm1720_vm4, %v1816_v0, %v1820_v8 }
 0xb1e   : > { %1835 = vperm.xlu1 %5572, %v6473_v2  }
 0xb8e   : > { %v1830_v60 = vpop.permute.xlu1 %1829 }
 0xb8f   : > { %vm1838_vm2 = vcmp.eq.s32.totalorder %v6080_v21, %v1830_v60  ;;  %v1827_v10 = vpop.permute.xlu0 %1826 }
 0xb90   : > { %vm1837_vm9 = vcmp.eq.s32.totalorder %v6080_v21, %v1827_v10  ;;  %v4887_v17 = vsel %vm1838_vm2, 1.0, %v8169_v6 }
 0xb91   : > { %v4886_v16 = vsel %vm1837_vm9, 1.0, %v8169_v6 }
 0xb92   : > { %5204 = vmatprep.mubr.msk.f32.mxu1 %vm652_vm1, %v4886_v16 }
 0xb93   : > { %5205 = vmatmul.mubr.msk.f32.vlgmr.msra.gmra.mrb[8].mxu1 %vm652_vm1, %v4887_v17 }
 0xb99   : > { %v1833_v23 = vpop.permute.xlu0 %1832 }
 0xb9a   : > { %vm1839_vm3 = vcmp.eq.s32.totalorder %v6080_v21, %v1833_v23 }
 0xb9b   : > { %v4888_v24 = vsel %vm1839_vm3, 1.0, %v8169_v6 }
 0xb9c   : > { %5207 = vmatprep.mubr.msk.f32.mxu1 %vm652_vm1, %v4888_v24 }
 0xb9d   : > { %v1836_v28 = vpop.permute.xlu1 %1835 }
 0xb9e   : > { %vm1840_vm6 = vcmp.eq.s32.totalorder %v6080_v21, %v1836_v28 }
 0xb9f   : > { %v4889_v30 = vsel %vm1840_vm6, 1.0, %v8169_v6 }
 0xba0   : > { %5208 = vmatmul.mubr.msk.f32.gmra.mrb[10].mxu1 %vm652_vm1, %v4889_v30 }
 0xba1   : > { %5232 = vmatprep.mubr.msk.f32.mxu1 %vm5851_vm0, %v8169_v6 }
 0xc66   : > { %v6490_v34 = vpop.f32.mrb[8].mxu1 }
 0xc67   : > { %8273 = vst [vmem:[#allocation14_spill] sm:$0xff] %v6490_v34  ;;  %1968 = vrot.lane.b32.xlu1 %v6490_v34, %s8202_s1  ;;  %v6494_v36 = vpop.f32.mrb[9].mxu1  ;;  %v1947_v60 = vmul.f32 %v6490_v34, %v6138_v50 }
 0xc68   : > { %8274 = vst [vmem:[#allocation15_spill] sm:$0xff] %v6494_v36  ;;  %1966 = vrot.lane.b32.xlu0 %v6494_v36, %s8202_s1  ;;  %v1946_v0 = vmul.f32 %v6494_v36, %v6146_v53 }
 0xc69   : > { %v1953_v10 = vsel %vm652_vm1, %v1947_v60, 0.0 }
 0xc6a   : > { %v1950_v8 = vsel %vm652_vm1, %v1946_v0, 0.0 }
 0xc73   : > { %v6498_v57 = vpop.f32.mrb[10].mxu1 }
 0xc74   : > { %8275 = vst [vmem:[#allocation16_spill] sm:$0xff] %v6498_v57  ;;  %1972 = vrot.lane.b32.xlu1 %v6498_v57, %s8202_s1  ;;  %v6502_v42 = vpop.f32.mrb[11].mxu1  ;;  %v1949_v60 = vmul.f32 %v6498_v57, %v6168_v7 }
 0xc75   : > { %8276 = vst [vmem:[#allocation17_spill] sm:$0xff] %v6502_v42  ;;  %1970 = vrot.lane.b32.xlu0 %v6502_v42, %s8202_s1  ;;  %v1948_v0 = vmul.f32 %v6502_v42, %v6157_v61 }
 0xc94   : > { %1951 = vadd.xlane.f32.xlu0 %v1950_v8  ;;  %v1956_v8 = vsel %vm652_vm1, %v1948_v0, 0.0 }
 0xc98   : > { %1954 = vadd.xlane.f32.xlu0 %v1953_v10  ;;  %v1959_v10 = vsel %vm652_vm1, %v1949_v60, 0.0 }
 0xcd9   : > { %v1969_v16 = vpop.permute.xlu1 %1968 }
 0xcda   : > { %v1979_v17 = vmul.f32 %v1969_v16, %v6138_v50  ;;  %v1967_v23 = vpop.permute.xlu0 %1966 }
 0xcdb   : > { %v1978_v24 = vmul.f32 %v1967_v23, %v6146_v53 }
 0xcdc   : > { %v1985_v28 = vsel %vm652_vm1, %v1979_v17, 0.0 }
 0xcdd   : > { %1986 = vadd.xlane.f32.xlu0 %v1985_v28  ;;  %v1982_v30 = vsel %vm652_vm1, %v1978_v24, 0.0 }
 0xcde   : > { %1983 = vadd.xlane.f32.xlu1 %v1982_v30 }
 0xce2   : > { %1957 = vadd.xlane.f32.xlu1 %v1956_v8 }
 0xce6   : > { %1960 = vadd.xlane.f32.xlu1 %v1959_v10  ;;  %v1973_v16 = vpop.permute.xlu1 %1972 }
 0xce7   : > { %v1971_v23 = vpop.permute.xlu0 %1970  ;;  %v1981_v28 = vmul.f32 %v1973_v16, %v6168_v7 }
 0xce8   : > { %v1980_v17 = vmul.f32 %v1971_v23, %v6157_v61 }
 0xce9   : > { %v1991_v30 = vsel %vm652_vm1, %v1981_v28, 0.0 }
 0xcea   : > { %v1988_v24 = vsel %vm652_vm1, %v1980_v17, 0.0 }
 0xceb   : > { %1989 = vadd.xlane.f32.xlu0 %v1988_v24 }
 0xcef   : > { %1992 = vadd.xlane.f32.xlu0 %v1991_v30 }
 0xd21   : > { %v1952_v0 = vpop.xlane.xlu0 %1951 }
 0xd25   : > { %v1955_v56 = vpop.xlane.xlu0 %1954 }
 0xd6a   : > { %v1987_v3 = vpop.xlane.xlu0 %1986 }
 0xd6b   : > { %v1995_v8 = vsel %vm8178_vm5, %v1955_v56, %v1987_v3  ;;  %v1984_v11 = vpop.xlane.xlu1 %1983 }
 0xd6c   : > { %v4895_v60 = vmul.f32 -1.442695, %v1995_v8  ;;  %v1994_v10 = vsel %vm8178_vm5, %v1952_v0, %v1984_v11 }
 0xd6d   : > { %v4894_v6 = vmul.f32 -1.442695, %v1994_v10 }
 0xd6e   : > { %5663 = vpow2.f32 %v4895_v60 }
 0xd6f   : > { %5665 = vpow2.f32 %v4894_v6  ;;  %v1958_v23 = vpop.xlane.xlu1 %1957 }
 0xd73   : > { %v1961_v57 = vpop.xlane.xlu1 %1960 }
 0xd78   : > { %v5664_v16 = vpop.eup %5663  ;;  %v1990_v27 = vpop.xlane.xlu0 %1989 }
 0xd79   : > { %v5666_v17 = vpop.eup %5665  ;;  %v2011_v24 = vadd.f32 1.0, %v5664_v16  ;;  %v1996_v28 = vsel %vm8178_vm5, %v1958_v23, %v1990_v27  ;;  %v2135_v23 = vmul.u32 2, %v6445_v58  ;;  %v2134_v16 = vmul.u32 2, %v6451_v41 }
 0xd7a   : > { %v2010_v30 = vadd.f32 1.0, %v5666_v17  ;;  %v4896_v42 = vmul.f32 -1.442695, %v1996_v28  ;;  %v2136_v41 = vmul.u32 2, %v6463_v63 }
 0xd7b   : > { %5667 = vrcp.f32 %v2011_v24  ;;  %v2139_v17 = vadd.s32 1, %v2135_v23  ;;  %v2138_v28 = vadd.s32 1, %v2134_v16 }
 0xd7c   : > { %5669 = vrcp.f32 %v2010_v30  ;;  %v1993_v3 = vpop.xlane.xlu0 %1992 }
 0xd7d   : > { %5671 = vpow2.f32 %v4896_v42  ;;  %v1997_v56 = vsel %vm8178_vm5, %v1961_v57, %v1993_v3 }
 0xd7e   : > { %v4897_v11 = vmul.f32 -1.442695, %v1997_v56  ;;  %v2140_v56 = vadd.s32 1, %v2136_v41 }
 0xd80   : > { %5673 = vpow2.f32 %v4897_v11  ;;  %v2137_v11 = vmul.u32 2, %v6473_v2 }
 0xd85   : > { %v6530_v0 = vpop.eup %5667 }
 0xd86   : > { %v6532_v6 = vpop.eup %5669  ;;  %2028 = vrot.lane.b32.xlu0 %v6530_v0, %s8200_s25 }
 0xd87   : > { %v5672_v8 = vpop.eup %5671  ;;  %2026 = vrot.lane.b32.xlu1 %v6532_v6, %s8200_s25 }
 0xd88   : > { %v2012_v27 = vadd.f32 1.0, %v5672_v8 }
 0xd8a   : > { %v5674_v60 = vpop.eup %5673  ;;  %5675 = vrcp.f32 %v2012_v27 }
 0xd8b   : > { %v2013_v10 = vadd.f32 1.0, %v5674_v60  ;;  %v2141_v60 = vadd.s32 1, %v2137_v11 }
 0xd8d   : > { %5677 = vrcp.f32 %v2013_v10 }
 0xd94   : > { %v6538_v42 = vpop.eup %5675 }
 0xd95   : > { %2030 = vrot.lane.b32.xlu1 %v6538_v42, %s8200_s25 }
 0xd97   : > { %v6542_v57 = vpop.eup %5677 }
 0xd99   : > { %2032 = vrot.lane.b32.xlu1 %v6542_v57, %s8200_s25 }
 0xdf8   : > { %v6548_v24 = vpop.permute.xlu0 %2028 }
 0xdf9   : > { %vm2039_vm2 = vcmp.ge.f32.partialorder %v6530_v0, %v6548_v24  ;;  %v6552_v30 = vpop.permute.xlu1 %2026 }
 0xdfa   : > { %vm8177_vm6 = vcmp.ge.f32.partialorder %v6532_v6, %v6552_v30  ;;  %v2143_v3 = vsel %vm2039_vm2, %v2135_v23, %v2139_v17 }
 0xdfb   : > { %2150 = vperm.xlu1 %5572, %v2143_v3   ;;  %v2142_v58 = vsel %vm8177_vm6, %v2134_v16, %v2138_v28  ;;  %v8277_v16 = vmov 0.0  }
 0xdfc   : > { %2147 = vperm.xlu0 %5571, %v2142_v58  }
 0xe07   : > { %v6564_v8 = vpop.permute.xlu1 %2030 }
 0xe08   : > { %vm8179_vm9 = vcmp.ge.f32.partialorder %v6538_v42, %v6564_v8 }
 0xe09   : > { %v2144_v27 = vsel %vm8179_vm9, %v2136_v41, %v2140_v56 }
 0xe0a   : > { %2153 = vperm.xlu0 %5571, %v2144_v27  }
 0xe0b   : > { %v6571_v10 = vpop.permute.xlu1 %2032 }
 0xe0c   : > { %vm8180_vm3 = vcmp.ge.f32.partialorder %v6542_v57, %v6571_v10 }
 0xe0d   : > { %v2145_v63 = vsel %vm8180_vm3, %v2137_v11, %v2141_v60  ;;  %v8181_v11 = vmov 1  }
 0xe0e   : > { %2156 = vperm.xlu1 %5572, %v2145_v63   ;;  %5573 = vset.pattern.permute.xlu0 %v8181_v11  ;;  %v1089_v11 = vmul.f32 0.0625, %v6192_v51  ;;  %v2044_v51 = vmul.f32 0.5, %v6538_v42 }
 0xe7a   : > { %v2151_v2 = vpop.permute.xlu1 %2150 }
 0xe7b   : > { %vm2159_vm6 = vcmp.eq.s32.totalorder %v6080_v21, %v2151_v2  ;;  %v2148_v23 = vpop.permute.xlu0 %2147 }
 0xe7c   : > { %vm2158_vm5 = vcmp.eq.s32.totalorder %v6080_v21, %v2148_v23  ;;  %v4899_v28 = vsel %vm2159_vm6, 1.0, %v8277_v16 }
 0xe7d   : > { %v4898_v17 = vsel %vm2158_vm5, 1.0, %v8277_v16 }
 0xe7e   : > { %5218 = vmatprep.mubr.msk.f32.mxu0 %vm652_vm1, %v4898_v17 }
 0xe7f   : > { %5219 = vmatmul.mubr.msk.f32.vlgmr.msra.gmra.mrb[14].mxu0 %vm652_vm1, %v4899_v28 }
 0xe89   : > { %v2154_v3 = vpop.permute.xlu0 %2153 }
 0xe8a   : > { %vm2160_vm9 = vcmp.eq.s32.totalorder %v6080_v21, %v2154_v3 }
 0xe8b   : > { %v4900_v58 = vsel %vm2160_vm9, 1.0, %v8277_v16 }
 0xe8c   : > { %5221 = vmatprep.mubr.msk.f32.mxu0 %vm652_vm1, %v4900_v58  ;;  %v1087_v58 = vmul.f32 0.0625, %v6186_v49 }
 0xe8d   : > { %v2157_v41 = vpop.permute.xlu1 %2156 }
 0xe8e   : > { %vm2161_vm3 = vcmp.eq.s32.totalorder %v6080_v21, %v2157_v41  ;;  %v1400_v41 = vmul.f32 0.125, %v6302_v31  ;;  %v1088_v21 = vmul.f32 0.0625, %v6184_v43 }
 0xe8f   : > { %v4901_v56 = vsel %vm2161_vm3, 1.0, %v8277_v16 }
 0xe90   : > { %5222 = vmatmul.mubr.msk.f32.gmra.mrb[16].mxu0 %vm652_vm1, %v4901_v56  ;;  %v1401_v56 = vmul.f32 0.125, %v6300_v29 }
 0xe91   : > { %5243 = vmatprep.mubr.msk.f32.mxu0 %vm5851_vm0, %v8277_v16  ;;  %v8280_v16 = vmov 1  }
 0xf52   : > { %v6593_v27 = vpop.f32.mrb[14].mxu0 }
 0xf53   : > { %8278 = vst [vmem:[#allocation18_spill] sm:$0xff] %v6593_v27  ;;  %2289 = vrot.lane.b32.xlu1 %v6593_v27, %s8202_s1  ;;  %v6597_v60 = vpop.f32.mrb[15].mxu0  ;;  %v2268_v28 = vmul.f32 %v6593_v27, %v6138_v50  ;;  %v8281_v27 = vmov 0  }
 0xf54   : > { %8279 = vst [vmem:[#allocation19_spill] sm:$0xff] %v6597_v60  ;;  %2287 = vrot.lane.b32.xlu0 %v6597_v60, %s8202_s1  ;;  %v2267_v23 = vmul.f32 %v6597_v60, %v6146_v53  ;;  %v1448_v34 = vsel %vm1396_vm15, 1, %v8281_v27  ;;  %v1449_v49 = vsel %vm1397_vm14, 1, %v8281_v27  ;;  %v1451_v59 = vsel %vm1399_vm10, 1, %v8281_v27 }
 0xf55   : > { %v2274_v3 = vsel %vm652_vm1, %v2268_v28, 0.0  ;;  %v1090_v28 = vmul.f32 0.0625, %v6196_v52  ;;  %v2091_v39 = vsel %vm2039_vm2, 1, %v8281_v27  ;;  %vm8286_vm14 = vcmp.ge.f32.partialorder %v6184_v43, %v6200_v54 }
 0xf56   : > { %v2271_v17 = vsel %vm652_vm1, %v2267_v23, 0.0  ;;  %v1402_v23 = vmul.f32 0.125, %v6308_v32  ;;  %vm8287_vm15 = vcmp.ge.f32.partialorder %v6308_v32, %v6340_v1  ;;  %vm8288_vm10 = vcmp.ge.f32.partialorder %v6196_v52, %v6233_v62 }
 0xf57   : > { %v1138_v43 = vsel %vm8288_vm10, 1, %v8281_v27 }
 0xf63   : > { %v6601_v63 = vpop.f32.mrb[16].mxu0 }
 0xf64   : > { %2293 = vrot.lane.b32.xlu1 %v6601_v63, %s8202_s1  ;;  %v6605_v2 = vpop.f32.mrb[17].mxu0 }
 0xf65   : > { %2291 = vrot.lane.b32.xlu0 %v6605_v2, %s8202_s1 }
 0xf84   : > { %2272 = vadd.xlane.f32.xlu0 %v2271_v17  ;;  %v1722_v17 = vmul.f32 0.25, %v6416_v18 }
 0xf88   : > { %2275 = vadd.xlane.f32.xlu1 %v2274_v3  ;;  %v6623_v3 = vmul.f32 0.125, %v6312_v33 }
 0xf99   : > { %1116 = vperm.xlu1 %5572, %v1087_v58  }
 0xf9a   : > { %1093 = vperm.xlu0 %5573, %v1087_v58   ;;  %v2042_v58 = vmul.f32 0.5, %v6532_v6 }
 0xf9d   : > { %1429 = vperm.xlu1 %5572, %v1400_v41  }
 0xf9e   : > { %1411 = vperm.xlu0 %5573, %v1401_v56  }
 0xfa1   : > { %1433 = vperm.xlu1 %5572, %v1401_v56   ;;  %v1724_v56 = vmul.f32 0.25, %v6428_v26 }
 0xfa2   : > { %1103 = vperm.xlu0 %5573, %v1089_v11  }
 0xfa5   : > { %1437 = vperm.xlu1 %5572, %v1402_v23  }
 0xfa6   : > { %1732 = vperm.xlu0 %5573, %v1722_v17  }
 0xfa9   : > { %1754 = vperm.xlu1 %5572, %v1722_v17   ;;  %v1135_v17 = vsel %vm1083_vm7, 1, %v8281_v27 }
 0xfaa   : > { %1108 = vperm.xlu0 %5573, %v1090_v28  }
 0xfad   : > { %1441 = vperm.xlu1 %5572, %v6623_v3  }
 0xfb1   : > { %2071 = vperm.xlu1 %5572, %v2042_v58  }
 0xfb5   : > { %1762 = vperm.xlu1 %5572, %v1724_v56  }
 0xfb9   : > { %5574 = vset.pattern.permute.xlu1 %v8280_v16 }
 0xfba   : > { %1098 = vperm.xlu1 %5574, %v1088_v21  }
 0xfbe   : > { %1406 = vperm.xlu1 %5574, %v1400_v41  }
 0xfc2   : > { %5575 = vset.pattern.permute.xlu1 %v8281_v27 }
 0xfc3   : > { %1140 = vperm.xlu1 %5575, %v1135_v17  }
 0xfc5   : > { %v2290_v60 = vpop.permute.xlu1 %2289 }
 0xfc6   : > { %v2300_v44 = vmul.f32 %v2290_v60, %v6138_v50  ;;  %v2288_v22 = vpop.permute.xlu0 %2287  ;;  %v1721_v50 = vmul.f32 0.25, %v6418_v19  ;;  %v2045_v60 = vmul.f32 0.5, %v6542_v57  ;;  %v1771_v19 = vsel %vm1719_vm11, 1, %v8281_v27 }
 0xfc7   : > { %1453 = vperm.xlu1 %5575, %v1448_v34   ;;  %v2299_v41 = vmul.f32 %v2288_v22, %v6146_v53  ;;  %v2270_v22 = vmul.f32 %v6601_v63, %v6168_v7  ;;  %vm8291_vm11 = vcmp.ge.f32.partialorder %v6542_v57, %v6571_v10 }
 0xfc8   : > { %v2306_v36 = vsel %vm652_vm1, %v2300_v44, 0.0  ;;  %v2093_v62 = vsel %vm8291_vm11, 1, %v8281_v27 }
 0xfc9   : > { %2307 = vadd.xlane.f32.xlu0 %v2306_v36  ;;  %v2303_v55 = vsel %vm652_vm1, %v2299_v41, 0.0  ;;  %v2280_v34 = vsel %vm652_vm1, %v2270_v22, 0.0  ;;  %v2269_v36 = vmul.f32 %v6605_v2, %v6157_v61 }
 0xfcb   : > { %1456 = vperm.xlu1 %5575, %v1449_v49  }
 0xfcd   : > { %2304 = vadd.xlane.f32.xlu0 %v2303_v55 }
 0xfcf   : > { %5576 = vset.pattern.permute.xlu1 %v8280_v16 }
 0xfd0   : > { %1416 = vperm.xlu1 %5576, %v1402_v23   ;;  %v2277_v23 = vsel %vm652_vm1, %v2269_v36, 0.0 }
 0xfd4   : > { %1727 = vperm.xlu1 %5576, %v1721_v50  }
 0xfd6   : > { %v2294_v31 = vpop.permute.xlu1 %2293 }
 0xfd7   : > { %v2302_v53 = vmul.f32 %v2294_v31, %v6168_v7  ;;  %v2292_v40 = vpop.permute.xlu0 %2291  ;;  %v1137_v7 = vsel %vm1085_vm8, 1, %v8281_v27 }
 0xfd8   : > { %5577 = vset.pattern.permute.xlu1 %v8281_v27  ;;  %v2301_v44 = vmul.f32 %v2292_v40, %v6157_v61  ;;  %v1723_v61 = vmul.f32 0.25, %v6424_v25  ;;  %v1772_v25 = vsel %vm1720_vm4, 1, %v8281_v27  ;;  %vm8282_vm4 = vcmask 7168  }
 0xfd9   : > { %v2312_v29 = vsel %vm652_vm1, %v2302_v53, 0.0  ;;  %vm8283_vm5 = vmmov %vm8282_vm4 }
 0xfda   : > { %2313 = vadd.xlane.f32.xlu0 %v2312_v29  ;;  %v2309_v37 = vsel %vm652_vm1, %v2301_v44, 0.0  ;;  %vm8284_vm7 = vmmov %vm8282_vm4 }
 0xfdb   : > { %vm8285_vm8 = vmmov %vm8282_vm4 }
 0xfde   : > { %2310 = vadd.xlane.f32.xlu0 %v2309_v37 }
 0xff4   : > { %2048 = vperm.xlu0 %5573, %v2042_v58   ;;  %v1769_v58 = vsel %vm1717_vm13, 1, %v8281_v27  ;;  %vm8290_vm13 = vcmp.ge.f32.partialorder %v6538_v42, %v6564_v8 }
 0xff5   : > { %v2092_v52 = vsel %vm8290_vm13, 1, %v8281_v27 }
 0xff8   : > { %2281 = vadd.xlane.f32.xlu1 %v2280_v34  ;;  %1742 = vperm.xlu0 %5573, %v1724_v56  }
 0xffc   : > { %2278 = vadd.xlane.f32.xlu1 %v2277_v23  ;;  %2063 = vperm.xlu0 %5573, %v2045_v60  }
0x1000   : > { %5582 = vset.pattern.permute.xlu0 %v8281_v27 }
0x1001   : > { %1120 = vperm.xlu0 %5582, %v1088_v21   ;;  %v2043_v21 = vmul.f32 0.5, %v6530_v0 }
0x1005   : > { %1124 = vperm.xlu0 %5582, %v1089_v11   ;;  %v1770_v11 = vsel %vm1718_vm12, 1, %v8281_v27  ;;  %vm8289_vm12 = vcmp.ge.f32.partialorder %v6532_v6, %v6552_v30 }
0x1009   : > { %1750 = vperm.xlu0 %5582, %v1721_v50  }
0x100d   : > { %1146 = vperm.xlu1 %5577, %v1137_v7   ;;  %1128 = vperm.xlu0 %5582, %v1090_v28  }
0x1011   : > { %1774 = vperm.xlu1 %5577, %v1769_v58   ;;  %1758 = vperm.xlu0 %5582, %v1723_v61   ;;  %v2273_v5 = vpop.xlane.xlu0 %2272 }
0x1015   : > { %1777 = vperm.xlu1 %5577, %v1770_v11   ;;  %2075 = vperm.xlu0 %5582, %v2043_v21   ;;  %v2276_v18 = vpop.xlane.xlu1 %2275 }
0x1019   : > { %5578 = vset.pattern.permute.xlu1 %v8280_v16  ;;  %2079 = vperm.xlu0 %5582, %v2044_v51   ;;  %v6688_v35 = vpop.permute.xlu1 %1116  ;;  %v6704_v28 = vpop.permute.xlu0 %1093 }
0x101a   : > { %1421 = vperm.xlu1 %5578, %v6623_v3  }
0x101d   : > { %2083 = vperm.xlu0 %5582, %v2045_v60   ;;  %v6694_v33 = vpop.permute.xlu1 %1429  ;;  %v6708_v24 = vpop.permute.xlu0 %1411 }
0x101e   : > { %1737 = vperm.xlu1 %5578, %v1723_v61   ;;  %v1444_v32 = vmul.f32 %v6694_v33, %v6264_v13 }
0x1021   : > { %v6702_v4 = vpop.permute.xlu1 %1433  ;;  %v6712_v56 = vpop.permute.xlu0 %1103 }
0x1022   : > { %2053 = vperm.xlu1 %5578, %v2043_v21   ;;  %v1445_v42 = vmul.f32 %v6260_v12, %v6702_v4 }
0x1025   : > { %v6706_v0 = vpop.permute.xlu1 %1437  ;;  %v6716_v41 = vpop.permute.xlu0 %1732 }
0x1026   : > { %5579 = vset.pattern.permute.xlu1 %v8281_v27  ;;  %v1446_v10 = vmul.f32 %v6706_v0, %v6272_v15 }
0x1027   : > { %1462 = vperm.xlu1 %5579, %v1451_v59  }
0x1029   : > { %v6710_v3 = vpop.permute.xlu1 %1754  ;;  %v6720_v9 = vpop.permute.xlu0 %1108 }
0x102a   : > { %v1766_v4 = vmul.f32 %v6376_v38, %v6710_v3  ;;  %v8293_v3 = vld [vmem:[#allocation13_spill] sm:$0xff] }
0x102b   : > { %1780 = vperm.xlu1 %5579, %v1771_v19  }
0x102d   : > { %v6714_v17 = vpop.permute.xlu1 %1441 }
0x102f   : > { %2098 = vperm.xlu1 %5579, %v2091_v39  }
0x1031   : > { %v6718_v26 = vpop.permute.xlu1 %2071 }
0x1033   : > { %5580 = vset.pattern.permute.xlu1 %v8280_v16 }
0x1034   : > { %2058 = vperm.xlu1 %5580, %v2044_v51  }
0x1035   : > { %v6722_v55 = vpop.permute.xlu1 %1762 }
0x1038   : > { %5581 = vset.pattern.permute.xlu1 %v8281_v27 }
0x1039   : > { %1783 = vperm.xlu1 %5581, %v1772_v25   ;;  %v6726_v29 = vpop.permute.xlu1 %1098 }
0x103d   : > { %v6728_v37 = vpop.permute.xlu1 %1406 }
0x1042   : > { %v6730_v60 = vpop.permute.xlu1 %1140 }
0x1046   : > { %v6732_v7 = vpop.permute.xlu1 %1453 }
0x104a   : > { %v6740_v21 = vpop.permute.xlu1 %1456 }
0x104f   : > { %v6747_v11 = vpop.permute.xlu1 %1416 }
0x1053   : > { %v6753_v51 = vpop.permute.xlu1 %1727 }
0x1056   : > { %v2308_v49 = vpop.xlane.xlu0 %2307 }
0x1057   : > { %v2316_v50 = vsel %vm8282_vm4, %v2276_v18, %v2308_v49  ;;  %vm1151_vm4 = vcmp.eq.s32.totalorder %v6730_v60, 1  ;;  %v734_v60 = vld [vmem:[%s8304_s6] sm:$0xff] }
0x1058   : > { %v4907_v31 = vmul.f32 -1.442695, %v2316_v50 }
0x105a   : > { %5679 = vpow2.f32 %v4907_v31  ;;  %v2305_v53 = vpop.xlane.xlu0 %2304 }
0x105b   : > { %v2315_v40 = vsel %vm8283_vm5, %v2273_v5, %v2305_v53  ;;  %vm1464_vm5 = vcmp.eq.s32.totalorder %v6732_v7, 1  ;;  %v736_v7 = vld [vmem:[%s8304_s6 + $0x10] sm:$0xff] }
0x105c   : > { %v4906_v44 = vmul.f32 -1.442695, %v2315_v40 }
0x105e   : > { %5681 = vpow2.f32 %v4906_v44 }
0x1064   : > { %v5680_v22 = vpop.eup %5679 }
0x1065   : > { %v2332_v34 = vadd.f32 1.0, %v5680_v22 }
0x1067   : > { %5683 = vrcp.f32 %v2332_v34  ;;  %v2314_v59 = vpop.xlane.xlu0 %2313 }
0x1068   : > { %v5682_v36 = vpop.eup %5681 }
0x1069   : > { %v2331_v23 = vadd.f32 1.0, %v5682_v36 }
0x106b   : > { %5685 = vrcp.f32 %v2331_v23  ;;  %v2311_v5 = vpop.xlane.xlu0 %2310 }
0x1071   : > { %v6734_v61 = vpop.eup %5683 }
0x1072   : > { %2349 = vrot.lane.b32.xlu0 %v6734_v61, %s8200_s25 }
0x1073   : > { %v6758_v31 = vpop.permute.xlu0 %2048 }
0x1075   : > { %v6738_v58 = vpop.eup %5685 }
0x1076   : > { %2347 = vrot.lane.b32.xlu1 %v6738_v58, %s8200_s25  ;;  %2388 = vperm.xlu0 %5582, %v6734_v61  }
0x1077   : > { %v6760_v22 = vpop.permute.xlu0 %1742 }
0x107a   : > { %2384 = vperm.xlu1 %5581, %v6738_v58   ;;  %5583 = vset.pattern.permute.xlu0 %v8280_v16 }
0x107b   : > { %2368 = vperm.xlu0 %5583, %v6734_v61   ;;  %v6762_v36 = vpop.permute.xlu0 %2063 }
0x107e   : > { %5584 = vset.pattern.permute.xlu1 %v8280_v16 }
0x107f   : > { %2364 = vperm.xlu1 %5584, %v6738_v58   ;;  %5585 = vset.pattern.permute.xlu0 %v8281_v27 }
0x1083   : > { %5586 = vset.pattern.permute.xlu1 %v8281_v27 }
0x1085   : > { %v2282_v18 = vpop.xlane.xlu1 %2281 }
0x1086   : > { %v2318_v19 = vsel %vm8284_vm7, %v2282_v18, %v2314_v59  ;;  %v1121_v59 = vpop.permute.xlu0 %1120  ;;  %vm1465_vm7 = vcmp.eq.s32.totalorder %v6740_v21, 1 }
0x1087   : > { %v4909_v39 = vmul.f32 -1.442695, %v2318_v19  ;;  %v1136_v19 = vsel %vm8286_vm14, 1, %v8281_v27  ;;  %v1132_v6 = vmul.f32 %v6118_v45, %v1121_v59 }
0x1089   : > { %5687 = vpow2.f32 %v4909_v39  ;;  %v2279_v25 = vpop.xlane.xlu1 %2278  ;;  %v1450_v39 = vsel %vm8287_vm15, 1, %v8281_v27 }
0x108a   : > { %v2317_v49 = vsel %vm8285_vm8, %v2279_v25, %v2311_v5  ;;  %v1125_v25 = vpop.permute.xlu0 %1124 }
0x108b   : > { %v4908_v50 = vmul.f32 -1.442695, %v2317_v49  ;;  %v1131_v49 = vmul.f32 %v6688_v35, %v6122_v46  ;;  %v1133_v8 = vmul.f32 %v1125_v25, %v6130_v48 }
0x108d   : > { %5689 = vpow2.f32 %v4908_v50  ;;  %v6781_v5 = vpop.permute.xlu1 %1146  ;;  %v2090_v50 = vsel %vm8289_vm12, 1, %v8281_v27 }
0x108e   : > { %v1751_v1 = vpop.permute.xlu0 %1750  ;;  %vm1153_vm14 = vcmp.eq.s32.totalorder %v6781_v5, 1 }
0x1091   : > { %v6791_v54 = vpop.permute.xlu1 %1774 }
0x1092   : > { %v1129_v33 = vpop.permute.xlu0 %1128  ;;  %vm1785_vm10 = vcmp.eq.s32.totalorder %v6791_v54, 1  ;;  %v1114_v54 = vmul.f32 %v6126_v47, %v6720_v9 }
0x1093   : > { %v5688_v53 = vpop.eup %5687  ;;  %v1134_v0 = vmul.f32 %v6126_v47, %v1129_v33 }
0x1094   : > { %v2334_v40 = vadd.f32 1.0, %v5688_v53  ;;  %v1765_v53 = vmul.f32 %v1751_v1, %v6380_v20 }
0x1095   : > { %v6808_v35 = vpop.permute.xlu1 %1777 }
0x1096   : > { %5691 = vrcp.f32 %v2334_v40  ;;  %v1759_v57 = vpop.permute.xlu0 %1758  ;;  %vm1786_vm12 = vcmp.eq.s32.totalorder %v6808_v35, 1 }
0x1097   : > { %v5690_v44 = vpop.eup %5689 }
0x1098   : > { %v2333_v34 = vadd.f32 1.0, %v5690_v44 }
0x1099   : > { %v6813_v30 = vpop.permute.xlu1 %1421 }
0x109a   : > { %5693 = vrcp.f32 %v2333_v34  ;;  %v2076_v44 = vpop.permute.xlu0 %2075  ;;  %v1447_v34 = vmul.f32 %v6268_v14, %v6714_v17  ;;  %v8294_v17 = vld [vmem:[#allocation12_spill] sm:$0xff] }
0x109d   : > { %v6824_v40 = vpop.permute.xlu1 %1737 }
0x109e   : > { %v1747_v47 = vmul.f32 %v6824_v40, %v8293_v3 }
0x10a0   : > { %v6764_v23 = vpop.eup %5691 }
0x10a1   : > { %2396 = vperm.xlu1 %5586, %v6764_v23   ;;  %2353 = vrot.lane.b32.xlu0 %v6764_v23, %s8200_s25  ;;  %v6833_v59 = vpop.permute.xlu1 %2053 }
0x10a4   : > { %v6769_v18 = vpop.eup %5693 }
0x10a5   : > { %1143 = vperm.xlu0 %5585, %v1136_v19   ;;  %2351 = vrot.lane.b32.xlu1 %v6769_v18, %s8200_s25  ;;  %v2080_v19 = vpop.permute.xlu0 %2079  ;;  %s8312_s25 = sld [smem:[#allocation32_spill]] }
0x10a9   : > { %1459 = vperm.xlu0 %5585, %v1450_v39   ;;  %2392 = vperm.xlu1 %5586, %v6769_v18   ;;  %v8292_v39 = vld [vmem:[#allocation15_spill] sm:$0xff]  ;;  %v2084_v1 = vpop.permute.xlu0 %2083 }
0x10aa   : > { %v2086_v25 = vmul.f32 %v6718_v26, %v8292_v39 }
0x10ab   : > { %s641_s0 = scalar_lea.vmem %s8312_s25, %s8311_s5  ;;  %s631_s25 = sand.u32 1, %s5840_s22  }
0x10ac   : > { %s4753_s5 = scalar_lea.sflag [#allocation3], %s631_s25 }
0x10ad   : > { %1149 = vperm.xlu0 %5585, %v1138_v43   ;;  %1159 = vrot.lane.b32.xlu1 %v1131_v49, %s8202_s1  ;;  %v1767_v49 = vmul.f32 %v1759_v57, %v8293_v3  ;;  %v1768_v43 = vmul.f32 %v8294_v17, %v6722_v55  ;;  %v6859_v55 = vld [vmem:[%s8270_s29] sm:$0xff] }
0x10ae   : > { %8298 = vst [vmem:[#allocation15_spill] sm:$0xff] %v6859_v55 }
0x10b1   : > { %2095 = vperm.xlu0 %5585, %v2090_v50   ;;  %1472 = vrot.lane.b32.xlu1 %v1444_v32, %s8202_s1  ;;  %v6844_v32 = vpop.permute.xlu1 %1462  ;;  %v8295_v50 = vld [vmem:[#allocation14_spill] sm:$0xff] }
0x10b2   : > { %vm1467_vm13 = vcmp.eq.s32.totalorder %v6844_v32, 1 }
0x10b5   : > { %2101 = vperm.xlu0 %5585, %v2092_v52   ;;  %2104 = vperm.xlu1 %5586, %v2093_v62   ;;  %v2087_v52 = vmul.f32 %v8295_v50, %v2076_v44  ;;  %v8296_v62 = vld [vmem:[#allocation16_spill] sm:$0xff]  ;;  %v6851_v33 = vpop.permute.xlu1 %1780 }
0x10b6   : > { %v2089_v26 = vmul.f32 %v8296_v62, %v2084_v1  ;;  %v2069_v40 = vmul.f32 %v8296_v62, %v6762_v36 }
0x10b9   : > { %1161 = vrot.lane.b32.xlu0 %v1132_v6, %s8202_s1  ;;  %5587 = vset.pattern.permute.xlu1 %v8280_v16  ;;  %v8297_v6 = vld [vmem:[#allocation17_spill] sm:$0xff]  ;;  %v6863_v57 = vpop.permute.xlu1 %2098 }
0x10ba   : > { %2376 = vperm.xlu1 %5587, %v6764_v23  }
0x10bd   : > { %1474 = vrot.lane.b32.xlu0 %v1445_v42, %s8202_s1  ;;  %v2088_v42 = vmul.f32 %v2080_v19, %v8297_v6 }
0x10be   : > { %1163 = vrot.lane.b32.xlu1 %v1133_v8, %s8202_s1  ;;  %v6868_v8 = vld [vmem:[%s8270_s29 + $0x8] sm:$0xff] }
0x10bf   : > { %8299 = vst [vmem:[#allocation13_spill] sm:$0xff] %v6868_v8 }
0x10c1   : > { %1476 = vrot.lane.b32.xlu0 %v1446_v10, %s8202_s1  ;;  %v6873_v10 = vpop.permute.xlu1 %2058 }
0x10c2   : > { %1793 = vrot.lane.b32.xlu1 %v1765_v53, %s8202_s1 }
0x10c5   : > { %1795 = vrot.lane.b32.xlu0 %v1766_v4, %s8202_s1  ;;  %v6876_v53 = vpop.permute.xlu1 %1783 }
0x10c6   : > { %1478 = vrot.lane.b32.xlu1 %v1447_v34, %s8202_s1 }
0x10c9   : > { %1165 = vrot.lane.b32.xlu0 %v1134_v0, %s8202_s1 }
0x10ca   : > { %2114 = vrot.lane.b32.xlu1 %v2086_v25, %s8202_s1 }
0x10cd   : > { %1797 = vrot.lane.b32.xlu0 %v1767_v49, %s8202_s1 }
0x10ce   : > { %1799 = vrot.lane.b32.xlu1 %v1768_v43, %s8202_s1 }
0x10d1   : > { %2116 = vrot.lane.b32.xlu0 %v2087_v52, %s8202_s1 }
0x10d2   : > { %2120 = vrot.lane.b32.xlu1 %v2089_v26, %s8202_s1 }
0x10d5   : > { %2118 = vrot.lane.b32.xlu0 %v2088_v42, %s8202_s1 }
0x10d6   : > { %2451 = vrot.lane.b32.xlu1 %v6859_v55, %s5853_s21 }
0x10d9   : > { %2453 = vrot.lane.b32.xlu0 %v6868_v8, %s5853_s21  ;;  %v1113_v8 = vmul.f32 %v6712_v56, %v6130_v48 }
0x10da   : > { %2372 = vperm.xlu1 %5587, %v6769_v18  }
0x10de   : > { %5588 = vset.pattern.permute.xlu1 %v8281_v27 }
0x10e4   : > { %v2350_v44 = vpop.permute.xlu0 %2349 }
0x10e5   : > { %vm2360_vm2 = vcmp.ge.f32.partialorder %v6734_v61, %v2350_v44  ;;  %v8300_v61 = vld [vmem:[#allocation19_spill] sm:$0xff] }
0x10e6   : > { %v2404_v4 = vsel %vm2360_vm2, 1, %v8281_v27 }
0x10e7   : > { %2411 = vperm.xlu1 %5588, %v2404_v4  }
0x10e8   : > { %v2348_v34 = vpop.permute.xlu1 %2347 }
0x10e9   : > { %vm2359_vm6 = vcmp.ge.f32.partialorder %v6738_v58, %v2348_v34  ;;  %v6897_v34 = vld [vmem:[%s8270_s29 + $0x18] sm:$0xff] }
0x10ea   : > { %v2403_v0 = vsel %vm2359_vm6, 1, %v8281_v27  ;;  %8301 = vst [vmem:[#allocation12_spill] sm:$0xff] %v6897_v34  ;;  %vm1787_vm6 = vcmp.eq.s32.totalorder %v6851_v33, 1 }
0x10eb   : > { %2408 = vperm.xlu1 %5588, %v2403_v0  }
0x10f5   : > { %v2389_v19 = vpop.permute.xlu0 %2388 }
0x10f9   : > { %v2385_v43 = vpop.permute.xlu1 %2384 }
0x10fa   : > { %v6882_v25 = vpop.permute.xlu0 %2368  ;;  %v2399_v52 = vmul.f32 %v2385_v43, %v8300_v61  ;;  %v8302_v43 = vld [vmem:[#allocation18_spill] sm:$0xff] }
0x10fe   : > { %v6888_v26 = vpop.permute.xlu1 %2364 }
0x1113   : > { %v2354_v49 = vpop.permute.xlu0 %2353 }
0x1114   : > { %vm2362_vm9 = vcmp.ge.f32.partialorder %v6764_v23, %v2354_v49 }
0x1115   : > { %v2406_v1 = vsel %vm2362_vm9, 1, %v8281_v27  ;;  %vm1788_vm9 = vcmp.eq.s32.totalorder %v6876_v53, 1 }
0x1116   : > { %2417 = vperm.xlu1 %5588, %v2406_v1   ;;  %v2400_v1 = vmul.f32 %v8302_v43, %v2389_v19 }
0x111a   : > { %2427 = vrot.lane.b32.xlu1 %v2399_v52, %s8202_s1 }
0x1120   : > { %v2397_v58 = vpop.permute.xlu1 %2396 }
0x1121   : > { %v2402_v42 = vmul.f32 %v6601_v63, %v2397_v58 }
0x1123   : > { %2433 = vrot.lane.b32.xlu1 %v2402_v42, %s8202_s1  ;;  %v1111_v42 = vmul.f32 %v6704_v28, %v6122_v46 }
0x1124   : > { %v1144_v44 = vpop.permute.xlu0 %1143  ;;  %v2352_v4 = vpop.permute.xlu1 %2351 }
0x1125   : > { %vm2361_vm3 = vcmp.ge.f32.partialorder %v6769_v18, %v2352_v4  ;;  %v1424_v4 = vmul.f32 %v6728_v37, %v6264_v13  ;;  %vm1152_vm8 = vcmp.eq.s32.totalorder %v1144_v44, 1 }
0x1126   : > { %v2405_v23 = vsel %vm2361_vm3, 1, %v8281_v27  ;;  %vm2107_vm3 = vcmp.eq.s32.totalorder %v6863_v57, 1 }
0x1127   : > { %2414 = vperm.xlu0 %5585, %v2405_v23   ;;  %2457 = vrot.lane.b32.xlu1 %v6897_v34, %s5853_s21 }
0x1128   : > { %v1460_v0 = vpop.permute.xlu0 %1459  ;;  %v2393_v49 = vpop.permute.xlu1 %2392 }
0x1129   : > { %v2401_v58 = vmul.f32 %v2393_v49, %v6605_v2  ;;  %v6916_v49 = vld [vmem:[%s8270_s29 + $0x10] sm:$0xff]  ;;  %vm1466_vm15 = vcmp.eq.s32.totalorder %v1460_v0, 1 }
0x112a   : > { %8303 = vst [vmem:[#allocation14_spill] sm:$0xff] %v6916_v49 }
0x112b   : > { %2429 = vrot.lane.b32.xlu0 %v2400_v1, %s8202_s1 }
0x112c   : > { %v6903_v52 = vpop.permute.xlu0 %1149  ;;  %v1160_v18 = vpop.permute.xlu1 %1159 }
0x112d   : > { %v1171_v1 = vsel %vm1151_vm4, %v1111_v42, %v1160_v18  ;;  %v1425_v42 = vmul.f32 %v6260_v12, %v6708_v24  ;;  %v1426_v12 = vmul.f32 %v6747_v11, %v6272_v15  ;;  %v1746_v15 = vmul.f32 %v6376_v38, %v6716_v41 }
0x112e   : > { %vm1154_vm11 = vcmp.eq.s32.totalorder %v6903_v52, 1 }
0x112f   : > { %2431 = vrot.lane.b32.xlu0 %v2401_v58, %s8202_s1  ;;  %v737_v58 = vld [vmem:[%s8304_s6 + $0x18] sm:$0xff]  ;;  %s8208_s1 = smov 32  }
0x1130   : > { %v2096_v19 = vpop.permute.xlu0 %2095  ;;  %v1473_v23 = vpop.permute.xlu1 %1472 }
0x1131   : > { %v1484_v27 = vsel %vm1464_vm5, %v1424_v4, %v1473_v23  ;;  %v1112_v4 = vmul.f32 %v6118_v45, %v6726_v29  ;;  %v1745_v45 = vmul.f32 %v6753_v51, %v6380_v20  ;;  %vm2106_vm2 = vcmp.eq.s32.totalorder %v2096_v19, 1 }
0x1132   : > { %v1488_v16 = vadd.f32 %v1484_v27, %v1171_v1  ;;  %v735_v27 = vld [vmem:[%s8304_s6 + $0x8] sm:$0xff]  ;;  %v5432_v1 = vpack.c.bf16 %v737_v58, %v736_v7  ;;  %v2067_v19 = vmul.f32 %v8295_v50, %v6833_v59  ;;  %v2068_v7 = vmul.f32 %v6873_v10, %v8297_v6  ;;  %s8315_s6 = sld [smem:[#allocation34_spill]] }
0x1133   : > { %2455 = vrot.lane.b32.xlu0 %v6916_v49, %s5853_s21  ;;  %v5429_v18 = vpack.c.bf16 %v735_v27, %v734_v60  ;;  %v8305_v60 = vmov 0.0|0.0  }
0x1134   : > { %v6920_v46 = vpop.permute.xlu0 %2101  ;;  %v6922_v13 = vpop.permute.xlu1 %2104 }
0x1135   : > { %5430 = vmatpush3.bf16.msra.mxu1 %v5429_v18  ;;  %vm2109_vm4 = vcmp.eq.s32.totalorder %v6922_v13, 1  ;;  %vm2108_vm5 = vcmp.eq.s32.totalorder %v6920_v46, 1  ;;  %v2379_v13 = vmul.f32 %v6888_v26, %v8300_v61 }
0x1136   : > { %5431 = vmatprep.subr.bf16.mxu1 %v8305_v60 }
0x1138   : > { %v1162_v28 = vpop.permute.xlu0 %1161 }
0x1139   : > { %v6924_v37 = vpop.permute.xlu1 %2376  ;;  %v1172_v34 = vsel %vm1152_vm8, %v1112_v4, %v1162_v28  ;;  %5433 = vmatpush3.bf16.msra.mxu1 %v5432_v1 }
0x113a   : > { %5440 = vmatprep.subr.bf16.mxu1 %v8305_v60  ;;  %v2382_v6 = vmul.f32 %v6601_v63, %v6924_v37 }
0x113c   : > { %v1475_v23 = vpop.permute.xlu0 %1474 }
0x113d   : > { %v1485_v49 = vsel %vm1465_vm7, %v1425_v42, %v1475_v23  ;;  %v1164_v55 = vpop.permute.xlu1 %1163 }
0x113e   : > { %v1489_v27 = vadd.f32 %v1485_v49, %v1172_v34  ;;  %v1173_v29 = vsel %vm1153_vm14, %v1113_v8, %v1164_v55  ;;  %v1427_v55 = vmul.f32 %v6268_v14, %v6813_v30  ;;  %v2066_v8 = vmul.f32 %v6758_v31, %v8292_v39 }
0x113f   : > { %v1748_v14 = vmul.f32 %v8294_v17, %v6760_v22 }
0x1140   : > { %v1477_v24 = vpop.permute.xlu0 %1476 }
0x1141   : > { %v1486_v21 = vsel %vm1466_vm15, %v1426_v12, %v1477_v24  ;;  %v1794_v44 = vpop.permute.xlu1 %1793 }
0x1142   : > { %v1490_v34 = vadd.f32 %v1486_v21, %v1173_v29  ;;  %v1805_v48 = vsel %vm1785_vm10, %v1745_v45, %v1794_v44  ;;  %v2380_v29 = vmul.f32 %v8302_v43, %v6882_v25  ;;  %vm8316_vm10 = vcmask 64512  }
0x1143   : > { %v1809_v56 = vadd.f32 %v1805_v48, %v1488_v16 }
0x1144   : > { %v1796_v20 = vpop.permute.xlu0 %1795 }
0x1145   : > { %v1806_v11 = vsel %vm1786_vm12, %v1746_v15, %v1796_v20  ;;  %v1479_v51 = vpop.permute.xlu1 %1478  ;;  %vm8317_vm12 = vmmov %vm8316_vm10 }
0x1146   : > { %v1810_v5 = vadd.f32 %v1806_v11, %v1489_v27  ;;  %v1487_v16 = vsel %vm1467_vm13, %v1427_v55, %v1479_v51  ;;  %v2653_v55 = vld [vmem:[%s8138_s10] sm:$0xff]  ;;  %vm8318_vm13 = vmmov %vm8316_vm10 }
0x1148   : > { %v1166_v38 = vpop.permute.xlu0 %1165 }
0x1149   : > { %v1174_v41 = vsel %vm1154_vm11, %v1114_v54, %v1166_v38  ;;  %v2115_v35 = vpop.permute.xlu1 %2114  ;;  %v8310_v54 = vmov 0.0   ;;  %v2655_v38 = vld [vmem:[%s8138_s10 + $0x10] sm:$0xff]  ;;  %vm8319_vm11 = vmmov %vm8316_vm10 }
0x114a   : > { %v1491_v0 = vadd.f32 %v1487_v16, %v1174_v41  ;;  %v2126_v49 = vsel %vm2106_vm2, %v2066_v8, %v2115_v35  ;;  %v2654_v8 = vld [vmem:[%s8138_s10 + $0x8] sm:$0xff]  ;;  %v2656_v41 = vld [vmem:[%s8138_s10 + $0x18] sm:$0xff]  ;;  %vm8320_vm2 = vmmov %vm8316_vm10 }
0x114b   : > { %v2130_v9 = vadd.f32 %v2126_v49, %v1809_v56  ;;  %v5441_v16 = vpack.c.bf16 %v2654_v8, %v2653_v55  ;;  %v5444_v35 = vpack.c.bf16 %v2656_v41, %v2655_v38  ;;  %v8313_v49 = vld [vmem:[#allocation11_spill] sm:$0xff] }
0x114c   : > { %v1798_v31 = vpop.permute.xlu0 %1797 }
0x114d   : > { %v1807_v30 = vsel %vm1787_vm6, %v1747_v47, %v1798_v31  ;;  %v1800_v39 = vpop.permute.xlu1 %1799  ;;  %vm8321_vm6 = vmmov %vm8320_vm2 }
0x114e   : > { %v1811_v32 = vadd.f32 %v1807_v30, %v1490_v34  ;;  %v1808_v52 = vsel %vm1788_vm9, %v1748_v14, %v1800_v39  ;;  %vm8322_vm9 = vmmov %vm8320_vm2 }
0x114f   : > { %v1812_v28 = vadd.f32 %v1808_v52, %v1491_v0  ;;  %v643_v0 = vld [vmem:[%s641_s0] sm:$0xff]  ;;  %s4841_s0 = sshll.u32 %s631_s25, 3 }
0x1150   : > { %v2117_v3 = vpop.permute.xlu0 %2116  ;;  %s633_s3 = scalar_lea.vmem [#allocation2], %s4841_s0 }
0x1151   : > { %v2127_v22 = vsel %vm2107_vm3, %v2067_v19, %v2117_v3  ;;  %v2121_v17 = vpop.permute.xlu1 %2120  ;;  %v2577_v3 = vld [vmem:[%s8137_s9 + $0x8] sm:$0xff]  ;;  %vm8323_vm3 = vmmov %vm8320_vm2  ;;  %s4766_s23 = sshll.u32 %s633_s3, 4  ;;  %s8087_s23 = int_to_ptr.vmem [resolvable:$true] %s4766_s23 }
0x1152   : > { %v2131_v33 = vadd.f32 %v2127_v22, %v1810_v5  ;;  %v2129_v53 = vsel %vm2109_vm4, %v2069_v40, %v2121_v17  ;;  %v2576_v40 = vld [vmem:[%s8137_s9] sm:$0xff]  ;;  %v2578_v17 = vld [vmem:[%s8137_s9 + $0x10] sm:$0xff]  ;;  %vm8325_vm4 = vcmask 523264  }
0x1153   : > { %v2133_v18 = vadd.f32 %v2129_v53, %v1812_v28  ;;  %v5435_v22 = vpack.c.bf16 %v2577_v3, %v2576_v40 }
0x1154   : > { %v2119_v59 = vpop.permute.xlu0 %2118 }
0x1155   : > { %v2128_v50 = vsel %vm2108_vm5, %v2068_v7, %v2119_v59  ;;  %v6979_v42 = vpop.permute.xlu1 %2451  ;;  %5436 = vmatpush3.bf16.msra.mxu0 %v5435_v22  ;;  %vm8326_vm5 = vmmov %vm8325_vm4 }
0x1156   : > { %v2132_v58 = vadd.f32 %v2128_v50, %v1811_v32  ;;  %8306 = vst [vmem:[#allocation16_spill] sm:$0xff] %v6979_v42  ;;  %5437 = vmatprep.subr.bf16.mxu0 %v8305_v60 }
0x1158   : > { %v6985_v45 = vpop.permute.xlu0 %2453 }
0x1159   : > { %v2373_v36 = vpop.permute.xlu1 %2372  ;;  %8307 = vst [vmem:[#allocation17_spill] sm:$0xff] %v6985_v45 }
0x115a   : > { %v2381_v44 = vmul.f32 %v2373_v36, %v6605_v2 }
0x1166   : > { %v2412_v62 = vpop.permute.xlu1 %2411 }
0x1167   : > { %vm2420_vm14 = vcmp.eq.s32.totalorder %v2412_v62, 1  ;;  %v4911_v62 = vld [vmem:[%s8135_s7] ss:$0 sm:$0xff] }
0x116a   : > { %v2409_v57 = vpop.permute.xlu1 %2408 }
0x116b   : > { %vm2419_vm7 = vcmp.eq.s32.totalorder %v2409_v57, 1 }
0x1195   : > { %v2418_v4 = vpop.permute.xlu1 %2417 }
0x1196   : > { %vm2422_vm8 = vcmp.eq.s32.totalorder %v2418_v4, 1  ;;  %v4912_v4 = vld [vmem:[%s8136_s8] ss:$0 sm:$0xff] }
0x1199   : > { %v2428_v23 = vpop.permute.xlu1 %2427 }
0x119a   : > { %v2439_v1 = vsel %vm2419_vm7, %v2379_v13, %v2428_v23  ;;  %vm8327_vm7 = vmmov %vm8325_vm4 }
0x119b   : > { %v2443_v27 = vadd.f32 %v2439_v1, %v2130_v9  ;;  %v5785_v9 = vld [vmem:[%s6040_s28] sm:$0xff]  ;;  %s8324_s28 = smov 64  }
0x119c   : > { %v2730_v1 = vld [vmem:[%s8315_s6] sm:$0xff] }
0x119d   : > { %v2434_v10 = vpop.permute.xlu1 %2433  ;;  %v2463_v34 = vmul.f32 %v6979_v42, %v2443_v27  ;;  %v2731_v27 = vld [vmem:[%s8315_s6 + $0x8] sm:$0xff] }
0x119e   : > { %v2442_v46 = vsel %vm2422_vm8, %v2382_v6, %v2434_v10  ;;  %v2732_v6 = vld [vmem:[%s8315_s6 + $0x10] sm:$0xff]  ;;  %v2733_v10 = vld [vmem:[%s8315_s6 + $0x18] sm:$0xff]  ;;  %vm8328_vm8 = vmmov %vm8325_vm4 }
0x119f   : > { %v2446_v12 = vadd.f32 %v2442_v46, %v2133_v18  ;;  %v2734_v46 = vld [vmem:[%s8315_s6 + $0x20] sm:$0xff] }
0x11a1   : > { %v6992_v20 = vpop.permute.xlu1 %2457 }
0x11a2   : > { %8308 = vst [vmem:[#allocation19_spill] sm:$0xff] %v6992_v20  ;;  %v2466_v43 = vmul.f32 %v6992_v20, %v2446_v12  ;;  %v2735_v12 = vld [vmem:[%s8315_s6 + $0x28] sm:$0xff] }
0x11a6   : > { %v2415_v24 = vpop.permute.xlu0 %2414 }
0x11a7   : > { %vm2421_vm15 = vcmp.eq.s32.totalorder %v2415_v24, 1  ;;  %v2736_v24 = vld [vmem:[%s8315_s6 + $0x30] sm:$0xff] }
0x11aa   : > { %v2430_v21 = vpop.permute.xlu0 %2429 }
0x11ab   : > { %v2440_v61 = vsel %vm2420_vm14, %v2380_v29, %v2430_v21  ;;  %v2737_v29 = vld [vmem:[%s8315_s6 + $0x38] sm:$0xff]  ;;  %vm8335_vm14 = vcmask 7168  }
0x11ac   : > { %v2444_v26 = vadd.f32 %v2440_v61, %v2131_v33  ;;  %v2579_v33 = vld [vmem:[%s8137_s9 + $0x18] sm:$0xff] }
0x11ad   : > { %v5438_v53 = vpack.c.bf16 %v2579_v33, %v2578_v17 }
0x11ae   : > { %v2464_v63 = vmul.f32 %v6985_v45, %v2444_v26  ;;  %v2432_v37 = vpop.permute.xlu0 %2431 }
0x11af   : > { %v2441_v48 = vsel %vm2421_vm15, %v2381_v44, %v2432_v37  ;;  %5439 = vmatpush3.bf16.msra.mxu0 %v5438_v53  ;;  %vm8336_vm15 = vmmov %vm8335_vm14 }
0x11b0   : > { %v2467_v15 = vadd.f32 %v2464_v63, %v2463_v34  ;;  %v2445_v56 = vadd.f32 %v2441_v48, %v2132_v58 }
0x11b2   : > { %v6994_v11 = vpop.permute.xlu0 %2455 }
0x11b3   : > { %8309 = vst [vmem:[#allocation18_spill] sm:$0xff] %v6994_v11  ;;  %v2465_v25 = vmul.f32 %v6994_v11, %v2445_v56 }
0x11b5   : > { %v2468_v51 = vadd.f32 %v2467_v15, %v2465_v25 }
0x11b7   : > { %v2469_v2 = vadd.f32 %v2468_v51, %v2466_v43 }
0x11b9   : > { %2471 = vrot.lane.b32.xlu0 %v2469_v2, %s8208_s1  ;;  %s8339_s1 = smov 127  }
0x122b   : > { %v2472_v5 = vpop.permute.xlu0 %2471 }
0x122c   : > { %5233 = vmatmul.mubr.msk.f32.vlgmr.msra.gmra.mrb[12].mxu1 %vm652_vm1, %v2472_v5 }
0x122d   : > { %5254 = vmatprep.mubr.msk.f32.mxu1 %vm5851_vm0, %v8310_v54  ;;  %5442 = vmatpush3.bf16.msra.mxu1 %v5441_v16 }
0x122e   : > { %5443 = vmatprep.subr.bf16.mxu1 %v8305_v60 }
0x1231   : > { %5445 = vmatpush3.bf16.msra.mxu1 %v5444_v35 }
0x1234   : > { %5255 = vmatmul.mubr.msk.f32.vlgmr.msra.gmra.mrb[14].mxu1 %vm652_vm1, %v643_v0 }
0x1235   : > { %5279 = vmatprep.mubr.msk.f32.mxu1 %vm652_vm1, %v8313_v49 }
0x12ff   : > { %v2541_v47 = vpop.f32.mrb[12].mxu1 }
0x1300   : > { %v2545_v14 = vadd.f32 %v5785_v9, %v2541_v47  ;;  %v5234_v31 = vpop.f32.mrb[13].mxu1 }
0x1302   : > { %v2548_v30 = vsel %vm652_vm1, %v2545_v14, 0.0 }
0x1303   : > { %2549 = vadd.xlane.f32.xlu1 %v2548_v30 }
0x1307   : > { %v2726_v7 = vpop.f32.mrb[14].mxu1 }
0x1308   : > { %v5256_v18 = vpop.f32.mrb[15].mxu1  ;;  %5257 = vmatprep.subr.mxu0 %v2726_v7 }
0x1390   : > { %v2550_v39 = vpop.xlane.xlu1 %2549 }
0x1391   : > { %v2552_v32 = vmul.f32 0.03125, %v2550_v39  ;;  %v8331_v39 = vld [vmem:[#allocation13_spill] sm:$0xff] }
0x1393   : > { %v2553_v52 = vsub.f32 %v2545_v14, %v2552_v32 }
0x1395   : > { %v2554_v19 = vmul.f32 %v2553_v52, %v2553_v52 }
0x1397   : > { %v2555_v28 = vsel %vm652_vm1, %v2554_v19, 0.0  ;;  %v8332_v19 = vld [vmem:[#allocation15_spill] sm:$0xff] }
0x1398   : > { %2556 = vadd.xlane.f32.xlu0 %v2555_v28 }
0x1425   : > { %v2557_v59 = vpop.xlane.xlu0 %2556 }
0x1426   : > { %v2558_v50 = vmul.f32 0.03125, %v2557_v59 }
0x1428   : > { %v2559_v58 = vadd.f32 1e-05, %v2558_v50 }
0x142a   : > { %5695 = vrsqrt.f32 %v2559_v58 }
0x1434   : > { %v5696_v36 = vpop.eup %5695 }
0x1435   : > { %v2561_v57 = vmul.f32 %v5696_v36, %v2553_v52 }
0x1437   : > { %v2568_v13 = vmul.f32 %v4911_v62, %v2561_v57 }
0x1439   : > { %v7045_v23 = vadd.f32 %v4912_v4, %v2568_v13  ;;  %v8334_v4 = vld [vmem:[#allocation12_spill] sm:$0xff] }
0x143b   : > { %8314 = vst [vmem:[#allocation11_spill] sm:$0xff] %v7045_v23  ;;  %5244 = vmatmul.mubr.msk.f32.vlgmr.msra.gmra.mrb[18].mxu0 %vm652_vm1, %v7045_v23 }
0x143c   : > { %5258 = vmatpush3.msra.mxu0 %v2726_v7  ;;  %5259 = vmatprep.mubr.msk.f32.mxu0 %vm8316_vm10, %v2730_v1  ;;  %v8333_v7 = vld [vmem:[#allocation14_spill] sm:$0xff]  ;;  %vm8337_vm10 = vmmov %vm8335_vm14 }
0x143f   : > { %5260 = vmatmul.mubr.msk.f32.vlgmr.msra.gmra.mrb[20].mxu0 %vm8317_vm12, %v2731_v27  ;;  %vm8338_vm12 = vmmov %vm8337_vm10 }
0x1440   : > { %5262 = vmatprep.mubr.msk.f32.mxu0 %vm8318_vm13, %v2732_v6 }
0x1443   : > { %5263 = vmatmul.mubr.msk.f32.gmra.mrb[22].mxu0 %vm8319_vm11, %v2733_v10 }
0x1444   : > { %5265 = vmatprep.mubr.msk.f32.mxu0 %vm8320_vm2, %v2734_v46 }
0x1447   : > { %5266 = vmatmul.mubr.msk.f32.gmra.mrb[24].mxu0 %vm8321_vm6, %v2735_v12 }
0x1448   : > { %5268 = vmatprep.mubr.msk.f32.mxu0 %vm8322_vm9, %v2736_v24 }
0x144b   : > { %5269 = vmatmul.mubr.msk.f32.gmra.mrb[26].mxu0 %vm8323_vm3, %v2737_v29 }
0x150e   : > { %v7081_v21 = vpop.f32.mrb[18].mxu0 }
0x150f   : > { %v5245_v61 = vpop.f32.mrb[19].mxu0  ;;  %v7131_v32 = vmul.f32 %v8331_v39, %v7081_v21  ;;  %v7137_v28 = vmul.f32 %v8332_v19, %v7081_v21  ;;  %v7146_v18 = vmul.f32 %v8333_v7, %v7081_v21  ;;  %v7155_v13 = vmul.f32 %v8334_v4, %v7081_v21 }
0x1512   : > { %v5261_v26 = vpop.f32.mrb[20].mxu0 }
0x1513   : > { %v2832_v44 = vpop.f32.mrb[21].mxu0 }
0x1516   : > { %v5264_v34 = vpop.f32.mrb[22].mxu0 }
0x1517   : > { %v2842_v63 = vpop.f32.mrb[23].mxu0 }
0x151a   : > { %v5267_v37 = vpop.f32.mrb[24].mxu0 }
0x151b   : > { %v2852_v48 = vpop.f32.mrb[25].mxu0 }
0x151c   : > { %v5589_v15 = vpack.i.bf16 %v5267_v37, %v2852_v48 }
0x151e   : > { %5590 = vrot.lane.b32.xlu0 %v5589_v15, %s8324_s28  ;;  %v5270_v56 = vpop.f32.mrb[26].mxu0 }
0x151f   : > { %v2862_v25 = vpop.f32.mrb[27].mxu0 }
0x1520   : > { %v5594_v43 = vpack.i.bf16 %v5270_v56, %v2862_v25 }
0x1522   : > { %5595 = vrot.lane.b32.xlu1 %v5594_v43, %s8324_s28 }
0x1590   : > { %v5591_v51 = vpop.permute.xlu0 %5590 }
0x1591   : > { %v5593_v2 = vunpack.i.h.bf16 %v5591_v51  ;;  %v5592_v5 = vunpack.i.l.bf16 %v5591_v51 }
0x1593   : > { %v2888_v55 = vsel %vm8325_vm4, %v5261_v26, %v5593_v2  ;;  %v2887_v8 = vsel %vm8326_vm5, %v2832_v44, %v5592_v5 }
0x1594   : > { %v7087_v38 = vpack.c.bf16 %v2888_v55, %v2887_v8  ;;  %v5596_v16 = vpop.permute.xlu1 %5595 }
0x1595   : > { %v5598_v41 = vunpack.i.h.bf16 %v5596_v16  ;;  %v5597_v35 = vunpack.i.l.bf16 %v5596_v16 }
0x1596   : > { %5447 = vmatprep.subr.bf16.mxu1 %v7087_v38  ;;  %5463 = vmatprep.subr.bf16.mxu0 %v7087_v38 }
0x1597   : > { %v2890_v0 = vsel %vm8327_vm7, %v5264_v34, %v5598_v41  ;;  %v2889_v47 = vsel %vm8328_vm8, %v2842_v63, %v5597_v35  ;;  %5449 = vmatpush3.bf16.msra.mxu1 %v7087_v38  ;;  %5465 = vmatpush3.bf16.msra.mxu0 %v7087_v38  ;;  %vm8343_vm7 = vmmov %vm8337_vm10 }
0x1598   : > { %v7095_v9 = vpack.c.bf16 %v2890_v0, %v2889_v47  ;;  %vm8344_vm8 = vmmov %vm8343_vm7 }
0x159a   : > { %5451 = vmatprep.subr.bf16.mxu1 %v7095_v9  ;;  %5467 = vmatprep.subr.bf16.mxu0 %v7095_v9 }
0x159b   : > { %5453 = vmatpush3.bf16.msra.mxu1 %v7095_v9  ;;  %5469 = vmatpush3.bf16.msra.mxu0 %v7095_v9 }
0x159c   : > { %5455 = vmatprep.subr.bf16.mxu1 %v7087_v38  ;;  %5479 = vmatprep.subr.bf16.mxu0 %v7087_v38 }
0x159e   : > { %5280 = vmatmul.mubr.msk.f32.vlgmr.msra.gmra.mrb[16].mxu1 %vm652_vm1, %v8313_v49 }
0x159f   : > { %5457 = vmatpush3.bf16.msra.mxu1 %v7087_v38  ;;  %5282 = vmatprep.mubr.msk.f32.mxu1 %vm652_vm1, %v8313_v49 }
0x15a0   : > { %5459 = vmatprep.subr.bf16.mxu1 %v7095_v9 }
0x15a2   : > { %5283 = vmatmul.mubr.msk.f32.gmra.mrb[18].mxu1 %vm652_vm1, %v8313_v49 }
0x15a3   : > { %5461 = vmatpush3.bf16.msra.mxu1 %v7095_v9 }
0x15a4   : > { %5471 = vmatprep.subr.bf16.mxu1 %v7087_v38 }
0x1671   : > { %v7113_v14 = vpop.f32.mrb[16].mxu1 }
0x1672   : > { %3002 = vrot.lane.b32.xlu0 %v7113_v14, %s8324_s28  ;;  %v7117_v31 = vpop.f32.mrb[17].mxu1  ;;  %v2981_v52 = vmul.f32 %v7113_v14, %v7131_v32 }
0x1673   : > { %3000 = vrot.lane.b32.xlu1 %v7117_v31, %s8324_s28  ;;  %v2980_v3 = vmul.f32 %v7117_v31, %v7137_v28 }
0x1674   : > { %v2987_v40 = vsel %vm652_vm1, %v2981_v52, 0.0 }
0x1675   : > { %v7121_v30 = vpop.f32.mrb[18].mxu1  ;;  %v2984_v22 = vsel %vm652_vm1, %v2980_v3, 0.0 }
0x1676   : > { %8329 = vst [vmem:[#allocation20_spill] sm:$0xff] %v7121_v30  ;;  %3006 = vrot.lane.b32.xlu0 %v7121_v30, %s8324_s28  ;;  %v7125_v49 = vpop.f32.mrb[19].mxu1  ;;  %v2983_v46 = vmul.f32 %v7121_v30, %v7155_v13 }
0x1677   : > { %8330 = vst [vmem:[#allocation21_spill] sm:$0xff] %v7125_v49  ;;  %3004 = vrot.lane.b32.xlu1 %v7125_v49, %s8324_s28  ;;  %v2982_v36 = vmul.f32 %v7125_v49, %v7146_v18 }
0x1678   : > { %v2993_v24 = vsel %vm652_vm1, %v2983_v46, 0.0 }
0x1679   : > { %v2990_v10 = vsel %vm652_vm1, %v2982_v36, 0.0 }
0x1695   : > { %2988 = vadd.xlane.f32.xlu0 %v2987_v40 }
0x169b   : > { %2985 = vadd.xlane.f32.xlu1 %v2984_v22 }
0x16e4   : > { %v3003_v17 = vpop.permute.xlu0 %3002 }
0x16e5   : > { %v3013_v33 = vmul.f32 %v3003_v17, %v7131_v32  ;;  %v3001_v53 = vpop.permute.xlu1 %3000 }
0x16e6   : > { %v3012_v59 = vmul.f32 %v3001_v53, %v7137_v28 }
0x16e7   : > { %v3019_v50 = vsel %vm652_vm1, %v3013_v33, 0.0  ;;  %v8340_v33 = vmov 3  }
0x16e8   : > { %3020 = vadd.xlane.f32.xlu1 %v3019_v50  ;;  %v3016_v58 = vsel %vm652_vm1, %v3012_v59, 0.0  ;;  %v3007_v62 = vpop.permute.xlu0 %3006 }
0x16e9   : > { %3017 = vadd.xlane.f32.xlu0 %v3016_v58  ;;  %v3005_v57 = vpop.permute.xlu1 %3004  ;;  %v3015_v27 = vmul.f32 %v3007_v62, %v7155_v13 }
0x16ea   : > { %v3014_v1 = vmul.f32 %v3005_v57, %v7146_v18  ;;  %v8341_v57 = vld [vmem:[#allocation10_spill] sm:$0xff] }
0x16eb   : > { %v3025_v12 = vsel %vm652_vm1, %v3015_v27, 0.0 }
0x16ec   : > { %v3022_v6 = vsel %vm652_vm1, %v3014_v1, 0.0 }
0x16ed   : > { %3023 = vadd.xlane.f32.xlu1 %v3022_v6  ;;  %2991 = vadd.xlane.f32.xlu0 %v2990_v10 }
0x16f1   : > { %3026 = vadd.xlane.f32.xlu1 %v3025_v12  ;;  %2994 = vadd.xlane.f32.xlu0 %v2993_v24 }
0x1722   : > { %v2989_v21 = vpop.xlane.xlu0 %2988 }
0x1728   : > { %v2986_v29 = vpop.xlane.xlu1 %2985 }
0x1775   : > { %v3021_v61 = vpop.xlane.xlu1 %3020 }
0x1776   : > { %v3029_v26 = vsel %vm8335_vm14, %v2989_v21, %v3021_v61  ;;  %v3018_v44 = vpop.xlane.xlu0 %3017  ;;  %vm8345_vm14 = vmmov %vm8343_vm7 }
0x1777   : > { %v4928_v34 = vmul.f32 -1.442695, %v3029_v26  ;;  %v3028_v63 = vsel %vm8336_vm15, %v2986_v29, %v3018_v44  ;;  %vm8346_vm15 = vmmov %vm8343_vm7 }
0x1778   : > { %v4927_v37 = vmul.f32 -1.442695, %v3028_v63 }
0x1779   : > { %5697 = vpow2.f32 %v4928_v34 }
0x177a   : > { %5699 = vpow2.f32 %v4927_v37  ;;  %v3024_v48 = vpop.xlane.xlu1 %3023  ;;  %v2992_v15 = vpop.xlane.xlu0 %2991 }
0x177b   : > { %v3030_v56 = vsel %vm8337_vm10, %v2992_v15, %v3024_v48 }
0x177c   : > { %v4929_v25 = vmul.f32 -1.442695, %v3030_v56 }
0x177e   : > { %5701 = vpow2.f32 %v4929_v25  ;;  %v3027_v43 = vpop.xlane.xlu1 %3026  ;;  %v2995_v51 = vpop.xlane.xlu0 %2994 }
0x177f   : > { %v3031_v2 = vsel %vm8338_vm12, %v2995_v51, %v3027_v43 }
0x1780   : > { %v4930_v5 = vmul.f32 -1.442695, %v3031_v2 }
0x1782   : > { %5703 = vpow2.f32 %v4930_v5 }
0x1783   : > { %v5698_v55 = vpop.eup %5697 }
0x1784   : > { %v5700_v8 = vpop.eup %5699  ;;  %v3045_v16 = vadd.f32 1.0, %v5698_v55 }
0x1785   : > { %v3044_v41 = vadd.f32 1.0, %v5700_v8 }
0x1786   : > { %5705 = vrcp.f32 %v3045_v16 }
0x1787   : > { %5707 = vrcp.f32 %v3044_v41 }
0x1788   : > { %v5702_v35 = vpop.eup %5701 }
0x1789   : > { %v3046_v0 = vadd.f32 1.0, %v5702_v35 }
0x178b   : > { %5709 = vrcp.f32 %v3046_v0 }
0x178c   : > { %v5704_v47 = vpop.eup %5703 }
0x178d   : > { %v3047_v39 = vadd.f32 1.0, %v5704_v47 }
0x178f   : > { %5711 = vrcp.f32 %v3047_v39 }
0x1790   : > { %v7169_v52 = vpop.eup %5705 }
0x1791   : > { %v7171_v19 = vpop.eup %5707  ;;  %3062 = vrot.lane.b32.xlu1 %v7169_v52, %s8339_s1 }
0x1792   : > { %3060 = vrot.lane.b32.xlu0 %v7171_v19, %s8339_s1 }
0x1795   : > { %v7177_v40 = vpop.eup %5709 }
0x1796   : > { %3064 = vrot.lane.b32.xlu1 %v7177_v40, %s8339_s1 }
0x1799   : > { %v7181_v3 = vpop.eup %5711 }
0x179a   : > { %3066 = vrot.lane.b32.xlu0 %v7181_v3, %s8339_s1 }
0x1803   : > { %v7185_v22 = vpop.permute.xlu1 %3062 }
0x1804   : > { %vm3073_vm13 = vcmp.ge.f32.partialorder %v7169_v52, %v7185_v22  ;;  %v7189_v17 = vpop.permute.xlu0 %3060 }
0x1805   : > { %v7195_v53 = vsel %vm3073_vm13, 2, %v8340_v33  ;;  %vm3072_vm11 = vcmp.ge.f32.partialorder %v7171_v19, %v7189_v17 }
0x1806   : > { %v7203_v7 = vsel %vm3072_vm11, 2, %v8340_v33  ;;  %3176 = vperm.xlu0 %5585, %v7195_v53  }
0x1807   : > { %3173 = vperm.xlu1 %5588, %v7203_v7  }
0x1808   : > { %v7207_v59 = vpop.permute.xlu1 %3064 }
0x1809   : > { %vm3074_vm2 = vcmp.ge.f32.partialorder %v7177_v40, %v7207_v59 }
0x180a   : > { %v7215_v50 = vsel %vm3074_vm2, 2, %v8340_v33 }
0x180b   : > { %3179 = vperm.xlu1 %5588, %v7215_v50  }
0x180c   : > { %v7218_v58 = vpop.permute.xlu0 %3066 }
0x180d   : > { %vm8228_vm6 = vcmp.ge.f32.partialorder %v7181_v3, %v7218_v58 }
0x180e   : > { %v7226_v36 = vsel %vm8228_vm6, 2, %v8340_v33 }
0x180f   : > { %3182 = vperm.xlu0 %5585, %v7226_v36  }
0x1885   : > { %v3177_v62 = vpop.permute.xlu0 %3176 }
0x1886   : > { %vm3185_vm9 = vcmp.eq.s32.totalorder %v8341_v57, %v3177_v62  ;;  %v3174_v4 = vpop.permute.xlu1 %3173 }
0x1887   : > { %vm3184_vm3 = vcmp.eq.s32.totalorder %v8341_v57, %v3174_v4  ;;  %v4932_v27 = vsel %vm3185_vm9, 1.0, %v8310_v54 }
0x1888   : > { %v4931_v1 = vsel %vm3184_vm3, 1.0, %v8310_v54 }
0x1889   : > { %5293 = vmatprep.mubr.msk.f32.mxu1 %vm652_vm1, %v4931_v1 }
0x188a   : > { %v3180_v6 = vpop.permute.xlu1 %3179  ;;  %5294 = vmatmul.mubr.msk.f32.vlgmr.msra.gmra.mrb[20].mxu1 %vm652_vm1, %v4932_v27 }
0x188b   : > { %vm3186_vm4 = vcmp.eq.s32.totalorder %v8341_v57, %v3180_v6  ;;  %5473 = vmatpush3.bf16.msra.mxu1 %v7087_v38 }
0x188c   : > { %v4933_v10 = vsel %vm3186_vm4, 1.0, %v8310_v54  ;;  %5475 = vmatprep.subr.bf16.mxu1 %v7095_v9 }
0x188d   : > { %5296 = vmatprep.mubr.msk.f32.mxu1 %vm652_vm1, %v4933_v10 }
0x188e   : > { %v3183_v46 = vpop.permute.xlu0 %3182 }
0x188f   : > { %5477 = vmatpush3.bf16.msra.mxu1 %v7095_v9  ;;  %vm3187_vm5 = vcmp.eq.s32.totalorder %v8341_v57, %v3183_v46 }
0x1890   : > { %v4934_v12 = vsel %vm3187_vm5, 1.0, %v8310_v54  ;;  %5486 = vmatprep.subr.bf16.mxu1 %v8305_v60 }
0x1891   : > { %5297 = vmatmul.mubr.msk.f32.gmra.mrb[22].mxu1 %vm652_vm1, %v4934_v12 }
0x195d   : > { %v7245_v24 = vpop.f32.mrb[20].mxu1 }
0x195e   : > { %3315 = vrot.lane.b32.xlu0 %v7245_v24, %s8324_s28  ;;  %v7249_v29 = vpop.f32.mrb[21].mxu1  ;;  %v3294_v26 = vmul.f32 %v7245_v24, %v7131_v32 }
0x195f   : > { %3313 = vrot.lane.b32.xlu1 %v7249_v29, %s8324_s28  ;;  %v3293_v34 = vmul.f32 %v7249_v29, %v7137_v28 }
0x1960   : > { %v3300_v44 = vsel %vm652_vm1, %v3294_v26, 0.0 }
0x1961   : > { %v3297_v63 = vsel %vm652_vm1, %v3293_v34, 0.0 }
0x1964   : > { %v7253_v21 = vpop.f32.mrb[22].mxu1 }
0x1965   : > { %8342 = vst [vmem:[#allocation13_spill] sm:$0xff] %v7253_v21  ;;  %3319 = vrot.lane.b32.xlu0 %v7253_v21, %s8324_s28  ;;  %v7257_v61 = vpop.f32.mrb[23].mxu1  ;;  %v3296_v8 = vmul.f32 %v7253_v21, %v7155_v13 }
0x1966   : > { %3317 = vrot.lane.b32.xlu1 %v7257_v61, %s8324_s28  ;;  %v3295_v51 = vmul.f32 %v7257_v61, %v7146_v18 }
0x1967   : > { %v3306_v0 = vsel %vm652_vm1, %v3296_v8, 0.0 }
0x1968   : > { %v3303_v55 = vsel %vm652_vm1, %v3295_v51, 0.0 }
0x1984   : > { %3301 = vadd.xlane.f32.xlu0 %v3300_v44 }
0x198a   : > { %3298 = vadd.xlane.f32.xlu1 %v3297_v63 }
0x19d0   : > { %v3316_v37 = vpop.permute.xlu0 %3315 }
0x19d1   : > { %v3326_v48 = vmul.f32 %v3316_v37, %v7131_v32  ;;  %v3314_v15 = vpop.permute.xlu1 %3313 }
0x19d2   : > { %v3325_v56 = vmul.f32 %v3314_v15, %v7137_v28 }
0x19d3   : > { %v3332_v25 = vsel %vm652_vm1, %v3326_v48, 0.0 }
0x19d4   : > { %3333 = vadd.xlane.f32.xlu1 %v3332_v25  ;;  %v3329_v43 = vsel %vm652_vm1, %v3325_v56, 0.0 }
0x19d5   : > { %3330 = vadd.xlane.f32.xlu0 %v3329_v43 }
0x19d7   : > { %v3320_v2 = vpop.permute.xlu0 %3319 }
0x19d8   : > { %v3318_v5 = vpop.permute.xlu1 %3317  ;;  %v3328_v41 = vmul.f32 %v3320_v2, %v7155_v13 }
0x19d9   : > { %v3327_v16 = vmul.f32 %v3318_v5, %v7146_v18  ;;  %3304 = vadd.xlane.f32.xlu0 %v3303_v55 }
0x19da   : > { %v3338_v47 = vsel %vm652_vm1, %v3328_v41, 0.0 }
0x19db   : > { %v3335_v35 = vsel %vm652_vm1, %v3327_v16, 0.0 }
0x19dc   : > { %3336 = vadd.xlane.f32.xlu1 %v3335_v35 }
0x19dd   : > { %3307 = vadd.xlane.f32.xlu0 %v3306_v0  ;;  %v3482_v0 = vmul.u32 2, %v7195_v53 }
0x19e0   : > { %3339 = vadd.xlane.f32.xlu1 %v3338_v47  ;;  %v3481_v47 = vmul.u32 2, %v7203_v7  ;;  %v3483_v7 = vmul.u32 2, %v7215_v50 }
0x1a11   : > { %v3302_v33 = vpop.xlane.xlu0 %3301 }
0x1a17   : > { %v3299_v39 = vpop.xlane.xlu1 %3298 }
0x1a61   : > { %v3334_v62 = vpop.xlane.xlu1 %3333 }
0x1a62   : > { %v3342_v4 = vsel %vm8343_vm7, %v3302_v33, %v3334_v62  ;;  %v3331_v1 = vpop.xlane.xlu0 %3330  ;;  %v3485_v62 = vadd.s32 1, %v3481_v47 }
0x1a63   : > { %v4940_v27 = vmul.f32 -1.442695, %v3342_v4  ;;  %v3341_v6 = vsel %vm8344_vm8, %v3299_v39, %v3331_v1  ;;  %v3486_v39 = vadd.s32 1, %v3482_v0 }
0x1a64   : > { %v4939_v10 = vmul.f32 -1.442695, %v3341_v6  ;;  %v3484_v6 = vmul.u32 2, %v7226_v36 }
0x1a65   : > { %5713 = vpow2.f32 %v4940_v27  ;;  %v3487_v27 = vadd.s32 1, %v3483_v7 }
0x1a66   : > { %5715 = vpow2.f32 %v4939_v10  ;;  %v3305_v46 = vpop.xlane.xlu0 %3304 }
0x1a69   : > { %v3337_v12 = vpop.xlane.xlu1 %3336 }
0x1a6a   : > { %v3343_v26 = vsel %vm8345_vm14, %v3305_v46, %v3337_v12  ;;  %v3308_v34 = vpop.xlane.xlu0 %3307  ;;  %v3488_v12 = vadd.s32 1, %v3484_v6 }
0x1a6b   : > { %v4941_v44 = vmul.f32 -1.442695, %v3343_v26 }
0x1a6d   : > { %5717 = vpow2.f32 %v4941_v44  ;;  %v3340_v63 = vpop.xlane.xlu1 %3339 }
0x1a6e   : > { %v3344_v37 = vsel %vm8346_vm15, %v3308_v34, %v3340_v63  ;;  %vm8350_vm15 = vmmov %vm8345_vm14 }
0x1a6f   : > { %v5714_v48 = vpop.eup %5713  ;;  %v4942_v15 = vmul.f32 -1.442695, %v3344_v37 }
0x1a70   : > { %v5716_v56 = vpop.eup %5715  ;;  %v3358_v25 = vadd.f32 1.0, %v5714_v48 }
0x1a71   : > { %v3357_v43 = vadd.f32 1.0, %v5716_v56  ;;  %5719 = vpow2.f32 %v4942_v15 }
0x1a72   : > { %5721 = vrcp.f32 %v3358_v25 }
0x1a73   : > { %5723 = vrcp.f32 %v3357_v43 }
0x1a77   : > { %v5718_v51 = vpop.eup %5717 }
0x1a78   : > { %v3359_v2 = vadd.f32 1.0, %v5718_v51 }
0x1a7a   : > { %5725 = vrcp.f32 %v3359_v2 }
0x1a7b   : > { %v5720_v5 = vpop.eup %5719 }
0x1a7c   : > { %v7285_v55 = vpop.eup %5721  ;;  %v3360_v8 = vadd.f32 1.0, %v5720_v5 }
0x1a7d   : > { %v7287_v16 = vpop.eup %5723  ;;  %3375 = vrot.lane.b32.xlu1 %v7285_v55, %s8339_s1 }
0x1a7e   : > { %5727 = vrcp.f32 %v3360_v8  ;;  %3373 = vrot.lane.b32.xlu0 %v7287_v16, %s8339_s1 }
0x1a84   : > { %v7293_v41 = vpop.eup %5725 }
0x1a85   : > { %3377 = vrot.lane.b32.xlu1 %v7293_v41, %s8339_s1 }
0x1a88   : > { %v7297_v35 = vpop.eup %5727 }
0x1a89   : > { %3379 = vrot.lane.b32.xlu0 %v7297_v35, %s8339_s1 }
0x1aef   : > { %v7303_v33 = vpop.permute.xlu1 %3375 }
0x1af0   : > { %vm3386_vm10 = vcmp.ge.f32.partialorder %v7285_v55, %v7303_v33  ;;  %v7307_v4 = vpop.permute.xlu0 %3373 }
0x1af1   : > { %vm3385_vm12 = vcmp.ge.f32.partialorder %v7287_v16, %v7307_v4  ;;  %v7314_v1 = vsel %vm3386_vm10, %v3482_v0, %v3486_v39 }
0x1af2   : > { %3497 = vperm.xlu0 %5585, %v7314_v1   ;;  %v7320_v53 = vsel %vm3385_vm12, %v3481_v47, %v3485_v62 }
0x1af3   : > { %3494 = vperm.xlu1 %5588, %v7320_v53  }
0x1af7   : > { %v7325_v10 = vpop.permute.xlu1 %3377 }
0x1af8   : > { %vm3387_vm9 = vcmp.ge.f32.partialorder %v7293_v41, %v7325_v10 }
0x1af9   : > { %v7332_v46 = vsel %vm3387_vm9, %v3483_v7, %v3487_v27 }
0x1afa   : > { %3500 = vperm.xlu1 %5588, %v7332_v46  }
0x1afb   : > { %v7335_v26 = vpop.permute.xlu0 %3379 }
0x1afc   : > { %vm3388_vm3 = vcmp.ge.f32.partialorder %v7297_v35, %v7335_v26 }
0x1afd   : > { %v7342_v50 = vsel %vm3388_vm3, %v3484_v6, %v3488_v12 }
0x1afe   : > { %3503 = vperm.xlu0 %5585, %v7342_v50  }
0x1b71   : > { %v3498_v36 = vpop.permute.xlu0 %3497 }
0x1b72   : > { %vm3506_vm4 = vcmp.eq.s32.totalorder %v8341_v57, %v3498_v36  ;;  %v3495_v44 = vpop.permute.xlu1 %3494 }
0x1b73   : > { %vm3505_vm5 = vcmp.eq.s32.totalorder %v8341_v57, %v3495_v44  ;;  %v4944_v63 = vsel %vm3506_vm4, 1.0, %v8310_v54  ;;  %vm8351_vm4 = vmmov %vm8345_vm14 }
0x1b74   : > { %v4943_v34 = vsel %vm3505_vm5, 1.0, %v8310_v54  ;;  %vm8352_vm5 = vmmov %vm8351_vm4 }
0x1b75   : > { %5307 = vmatprep.mubr.msk.f32.mxu0 %vm652_vm1, %v4943_v34 }
0x1b76   : > { %5308 = vmatmul.mubr.msk.f32.vlgmr.msra.gmra.mrb[28].mxu0 %vm652_vm1, %v4944_v63 }
0x1b77   : > { %5481 = vmatpush3.bf16.msra.mxu0 %v7087_v38 }
0x1b78   : > { %5483 = vmatprep.subr.bf16.mxu0 %v7095_v9 }
0x1b79   : > { %v3501_v37 = vpop.permute.xlu1 %3500 }
0x1b7a   : > { %vm3507_vm7 = vcmp.eq.s32.totalorder %v8341_v57, %v3501_v37 }
0x1b7b   : > { %v4945_v48 = vsel %vm3507_vm7, 1.0, %v8310_v54  ;;  %5485 = vmatpush3.bf16.msra.mxu0 %v7095_v9 }
0x1b7c   : > { %5310 = vmatprep.mubr.msk.f32.mxu0 %vm652_vm1, %v4945_v48  ;;  %5492 = vmatprep.subr.bf16.mxu0 %v8305_v60 }
0x1b7d   : > { %v3504_v15 = vpop.permute.xlu0 %3503 }
0x1b7e   : > { %vm3508_vm8 = vcmp.eq.s32.totalorder %v8341_v57, %v3504_v15 }
0x1b7f   : > { %v4946_v56 = vsel %vm3508_vm8, 1.0, %v8310_v54 }
0x1b80   : > { %5311 = vmatmul.mubr.msk.f32.gmra.mrb[30].mxu0 %vm652_vm1, %v4946_v56 }
0x1c49   : > { %v7361_v38 = vpop.f32.mrb[28].mxu0 }
0x1c4a   : > { %8347 = vst [vmem:[#allocation15_spill] sm:$0xff] %v7361_v38  ;;  %3636 = vrot.lane.b32.xlu0 %v7361_v38, %s8324_s28  ;;  %v7365_v25 = vpop.f32.mrb[29].mxu0  ;;  %v3615_v51 = vmul.f32 %v7361_v38, %v7131_v32  ;;  %v8367_v38 = vmov 0  }
0x1c4b   : > { %8348 = vst [vmem:[#allocation14_spill] sm:$0xff] %v7365_v25  ;;  %3634 = vrot.lane.b32.xlu1 %v7365_v25, %s8324_s28  ;;  %v3614_v5 = vmul.f32 %v7365_v25, %v7137_v28  ;;  %v3390_v25 = vmul.f32 0.125, %v7285_v55  ;;  %v3440_v33 = vsel %vm3388_vm3, 1, %v8367_v38 }
0x1c4c   : > { %v3621_v2 = vsel %vm652_vm1, %v3615_v51, 0.0 }
0x1c4d   : > { %v3618_v8 = vsel %vm652_vm1, %v3614_v5, 0.0 }
0x1c53   : > { %v7369_v9 = vpop.f32.mrb[30].mxu0 }
0x1c54   : > { %8349 = vst [vmem:[#allocation12_spill] sm:$0xff] %v7369_v9  ;;  %3640 = vrot.lane.b32.xlu0 %v7369_v9, %s8324_s28  ;;  %v7373_v43 = vpop.f32.mrb[31].mxu0  ;;  %v3617_v36 = vmul.f32 %v7369_v9, %v7155_v13 }
0x1c55   : > { %3638 = vrot.lane.b32.xlu1 %v7373_v43, %s8324_s28  ;;  %v3616_v6 = vmul.f32 %v7373_v43, %v7146_v18 }
0x1c56   : > { %v3627_v37 = vsel %vm652_vm1, %v3617_v36, 0.0 }
0x1c57   : > { %v3624_v12 = vsel %vm652_vm1, %v3616_v6, 0.0 }
0x1c73   : > { %3622 = vadd.xlane.f32.xlu0 %v3621_v2 }
0x1c79   : > { %3619 = vadd.xlane.f32.xlu1 %v3618_v8 }
0x1cbc   : > { %v3637_v0 = vpop.permute.xlu0 %3636 }
0x1cbd   : > { %v3647_v47 = vmul.f32 %v3637_v0, %v7131_v32  ;;  %v3635_v39 = vpop.permute.xlu1 %3634 }
0x1cbe   : > { %v3646_v62 = vmul.f32 %v3635_v39, %v7137_v28 }
0x1cbf   : > { %v3653_v7 = vsel %vm652_vm1, %v3647_v47, 0.0 }
0x1cc0   : > { %3654 = vadd.xlane.f32.xlu1 %v3653_v7  ;;  %v3650_v27 = vsel %vm652_vm1, %v3646_v62, 0.0 }
0x1cc1   : > { %3651 = vadd.xlane.f32.xlu0 %v3650_v27 }
0x1cc5   : > { %3625 = vadd.xlane.f32.xlu0 %v3624_v12 }
0x1cc6   : > { %v3641_v44 = vpop.permute.xlu0 %3640 }
0x1cc7   : > { %v3639_v34 = vpop.permute.xlu1 %3638  ;;  %v3649_v48 = vmul.f32 %v3641_v44, %v7155_v13 }
0x1cc8   : > { %v3648_v63 = vmul.f32 %v3639_v34, %v7146_v18 }
0x1cc9   : > { %3628 = vadd.xlane.f32.xlu0 %v3627_v37  ;;  %v3659_v56 = vsel %vm652_vm1, %v3649_v48, 0.0 }
0x1cca   : > { %v3656_v15 = vsel %vm652_vm1, %v3648_v63, 0.0 }
0x1ccb   : > { %3657 = vadd.xlane.f32.xlu1 %v3656_v15 }
0x1ccf   : > { %3660 = vadd.xlane.f32.xlu1 %v3659_v56 }
0x1d00   : > { %v3623_v2 = vpop.xlane.xlu0 %3622 }
0x1d06   : > { %v3620_v51 = vpop.xlane.xlu1 %3619 }
0x1d4d   : > { %v3655_v5 = vpop.xlane.xlu1 %3654 }
0x1d4e   : > { %v3663_v8 = vsel %vm8345_vm14, %v3623_v2, %v3655_v5  ;;  %v3652_v0 = vpop.xlane.xlu0 %3651 }
0x1d4f   : > { %v4952_v47 = vmul.f32 -1.442695, %v3663_v8  ;;  %v3662_v39 = vsel %vm8350_vm15, %v3620_v51, %v3652_v0 }
0x1d50   : > { %v4951_v62 = vmul.f32 -1.442695, %v3662_v39 }
0x1d51   : > { %5729 = vpow2.f32 %v4952_v47 }
0x1d52   : > { %5731 = vpow2.f32 %v4951_v62  ;;  %v3626_v7 = vpop.xlane.xlu0 %3625 }
0x1d56   : > { %v3629_v63 = vpop.xlane.xlu0 %3628 }
0x1d58   : > { %v3658_v27 = vpop.xlane.xlu1 %3657 }
0x1d59   : > { %v3664_v6 = vsel %vm8351_vm4, %v3626_v7, %v3658_v27  ;;  %v3803_v7 = vmul.u32 2, %v7314_v1  ;;  %v3802_v27 = vmul.u32 2, %v7320_v53 }
0x1d5a   : > { %v4953_v12 = vmul.f32 -1.442695, %v3664_v6  ;;  %v3804_v53 = vmul.u32 2, %v7332_v46 }
0x1d5b   : > { %v5730_v36 = vpop.eup %5729  ;;  %v3807_v6 = vadd.s32 1, %v3803_v7 }
0x1d5c   : > { %v5732_v44 = vpop.eup %5731  ;;  %v3679_v34 = vadd.f32 1.0, %v5730_v36  ;;  %5733 = vpow2.f32 %v4953_v12  ;;  %v3661_v37 = vpop.xlane.xlu1 %3660  ;;  %v3806_v36 = vadd.s32 1, %v3802_v27 }
0x1d5d   : > { %v3678_v48 = vadd.f32 1.0, %v5732_v44  ;;  %v3665_v15 = vsel %vm8352_vm5, %v3629_v63, %v3661_v37  ;;  %v3808_v63 = vadd.s32 1, %v3804_v53  ;;  %v3805_v37 = vmul.u32 2, %v7342_v50 }
0x1d5e   : > { %5735 = vrcp.f32 %v3679_v34  ;;  %v4954_v56 = vmul.f32 -1.442695, %v3665_v15 }
0x1d5f   : > { %5737 = vrcp.f32 %v3678_v48 }
0x1d60   : > { %5739 = vpow2.f32 %v4954_v56  ;;  %v3809_v56 = vadd.s32 1, %v3805_v37 }
0x1d66   : > { %v5734_v51 = vpop.eup %5733 }
0x1d67   : > { %v3680_v2 = vadd.f32 1.0, %v5734_v51 }
0x1d68   : > { %v7401_v5 = vpop.eup %5735 }
0x1d69   : > { %v7403_v8 = vpop.eup %5737  ;;  %5741 = vrcp.f32 %v3680_v2  ;;  %3696 = vrot.lane.b32.xlu1 %v7401_v5, %s8339_s1 }
0x1d6a   : > { %v5740_v0 = vpop.eup %5739  ;;  %3694 = vrot.lane.b32.xlu0 %v7403_v8, %s8339_s1 }
0x1d6b   : > { %v3681_v47 = vadd.f32 1.0, %v5740_v0 }
0x1d6d   : > { %5743 = vrcp.f32 %v3681_v47 }
0x1d73   : > { %v7409_v39 = vpop.eup %5741 }
0x1d74   : > { %3698 = vrot.lane.b32.xlu1 %v7409_v39, %s8339_s1 }
0x1d77   : > { %v7413_v62 = vpop.eup %5743 }
0x1d78   : > { %3700 = vrot.lane.b32.xlu0 %v7413_v62, %s8339_s1 }
0x1ddb   : > { %v7419_v12 = vpop.permute.xlu1 %3696 }
0x1ddc   : > { %vm3707_vm7 = vcmp.ge.f32.partialorder %v7401_v5, %v7419_v12  ;;  %v7423_v44 = vpop.permute.xlu0 %3694 }
0x1ddd   : > { %vm3706_vm8 = vcmp.ge.f32.partialorder %v7403_v8, %v7423_v44  ;;  %v7430_v34 = vsel %vm3707_vm7, %v3803_v7, %v3807_v6 }
0x1dde   : > { %3818 = vperm.xlu0 %5585, %v7430_v34   ;;  %v7436_v1 = vsel %vm3706_vm8, %v3802_v27, %v3806_v36 }
0x1ddf   : > { %3815 = vperm.xlu1 %5588, %v7436_v1  }
0x1de6   : > { %v7441_v48 = vpop.permute.xlu1 %3698 }
0x1de7   : > { %vm8212_vm14 = vcmp.ge.f32.partialorder %v7409_v39, %v7441_v48 }
0x1de8   : > { %v7448_v15 = vsel %vm8212_vm14, %v3804_v53, %v3808_v63 }
0x1de9   : > { %3821 = vperm.xlu1 %5588, %v7448_v15  }
0x1dea   : > { %v7451_v51 = vpop.permute.xlu0 %3700 }
0x1deb   : > { %vm8211_vm15 = vcmp.ge.f32.partialorder %v7413_v62, %v7451_v51 }
0x1dec   : > { %v7458_v46 = vsel %vm8211_vm15, %v3805_v37, %v3809_v56 }
0x1ded   : > { %3824 = vperm.xlu0 %5585, %v7458_v46  }
0x1e5d   : > { %v3819_v50 = vpop.permute.xlu0 %3818 }
0x1e5e   : > { %vm3827_vm4 = vcmp.eq.s32.totalorder %v8341_v57, %v3819_v50  ;;  %v3816_v2 = vpop.permute.xlu1 %3815 }
0x1e5f   : > { %vm3826_vm5 = vcmp.eq.s32.totalorder %v8341_v57, %v3816_v2  ;;  %v4956_v47 = vsel %vm3827_vm4, 1.0, %v8310_v54 }
0x1e60   : > { %v4955_v0 = vsel %vm3826_vm5, 1.0, %v8310_v54 }
0x1e61   : > { %5321 = vmatprep.mubr.msk.f32.mxu1 %vm652_vm1, %v4955_v0 }
0x1e62   : > { %5322 = vmatmul.mubr.msk.f32.vlgmr.msra.gmra.mrb[24].mxu1 %vm652_vm1, %v4956_v47 }
0x1e68   : > { %v3822_v7 = vpop.permute.xlu1 %3821 }
0x1e69   : > { %vm3828_vm15 = vcmp.eq.s32.totalorder %v8341_v57, %v3822_v7 }
0x1e6a   : > { %v4957_v27 = vsel %vm3828_vm15, 1.0, %v8310_v54 }
0x1e6b   : > { %5324 = vmatprep.mubr.msk.f32.mxu1 %vm652_vm1, %v4957_v27 }
0x1e6c   : > { %v3825_v6 = vpop.permute.xlu0 %3824 }
0x1e6d   : > { %vm3829_vm14 = vcmp.eq.s32.totalorder %v8341_v57, %v3825_v6 }
0x1e6e   : > { %v4958_v36 = vsel %vm3829_vm14, 1.0, %v8310_v54  ;;  %vm8354_vm14 = vcmask 7168  }
0x1e6f   : > { %5325 = vmatmul.mubr.msk.f32.gmra.mrb[26].mxu1 %vm652_vm1, %v4958_v36  ;;  %vm8355_vm15 = vmmov %vm8354_vm14 }
0x1e70   : > { %5349 = vmatprep.mubr.msk.f32.mxu1 %vm5851_vm0, %v8310_v54  ;;  %vm8356_vm4 = vmmov %vm8354_vm14 }
0x1e71   : > { %vm8357_vm5 = vmmov %vm8356_vm4 }
0x1f35   : > { %v7475_v53 = vpop.f32.mrb[24].mxu1 }
0x1f36   : > { %3957 = vrot.lane.b32.xlu0 %v7475_v53, %s8324_s28  ;;  %v7479_v63 = vpop.f32.mrb[25].mxu1  ;;  %v3936_v50 = vmul.f32 %v7475_v53, %v7131_v32 }
0x1f37   : > { %8353 = vst [vmem:[#allocation10_spill] sm:$0xff] %v7479_v63  ;;  %3955 = vrot.lane.b32.xlu1 %v7479_v63, %s8324_s28  ;;  %v3935_v0 = vmul.f32 %v7479_v63, %v7137_v28 }
0x1f38   : > { %v3942_v2 = vsel %vm652_vm1, %v3936_v50, 0.0 }
0x1f39   : > { %v3939_v47 = vsel %vm652_vm1, %v3935_v0, 0.0 }
0x1f42   : > { %v7483_v37 = vpop.f32.mrb[26].mxu1 }
0x1f43   : > { %3961 = vrot.lane.b32.xlu0 %v7483_v37, %s8324_s28  ;;  %v7487_v56 = vpop.f32.mrb[27].mxu1  ;;  %v3938_v0 = vmul.f32 %v7483_v37, %v7155_v13 }
0x1f44   : > { %3959 = vrot.lane.b32.xlu1 %v7487_v56, %s8324_s28  ;;  %v3937_v50 = vmul.f32 %v7487_v56, %v7146_v18 }
0x1f62   : > { %3943 = vadd.xlane.f32.xlu0 %v3942_v2  ;;  %v3945_v2 = vsel %vm652_vm1, %v3937_v50, 0.0 }
0x1f68   : > { %3940 = vadd.xlane.f32.xlu1 %v3939_v47  ;;  %v3948_v47 = vsel %vm652_vm1, %v3938_v0, 0.0 }
0x1fa8   : > { %v3958_v7 = vpop.permute.xlu0 %3957 }
0x1fa9   : > { %v3968_v27 = vmul.f32 %v3958_v7, %v7131_v32  ;;  %v3956_v6 = vpop.permute.xlu1 %3955 }
0x1faa   : > { %v3967_v36 = vmul.f32 %v3956_v6, %v7137_v28 }
0x1fab   : > { %v3974_v23 = vsel %vm652_vm1, %v3968_v27, 0.0 }
0x1fac   : > { %3975 = vadd.xlane.f32.xlu1 %v3974_v23  ;;  %v3971_v20 = vsel %vm652_vm1, %v3967_v36, 0.0 }
0x1fad   : > { %3972 = vadd.xlane.f32.xlu0 %v3971_v20 }
0x1fb1   : > { %3946 = vadd.xlane.f32.xlu0 %v3945_v2 }
0x1fb5   : > { %3949 = vadd.xlane.f32.xlu0 %v3948_v47  ;;  %v3962_v7 = vpop.permute.xlu0 %3961 }
0x1fb6   : > { %v3960_v6 = vpop.permute.xlu1 %3959  ;;  %v3970_v23 = vmul.f32 %v3962_v7, %v7155_v13 }
0x1fb7   : > { %v3969_v27 = vmul.f32 %v3960_v6, %v7146_v18 }
0x1fb8   : > { %v3980_v20 = vsel %vm652_vm1, %v3970_v23, 0.0 }
0x1fb9   : > { %v3977_v36 = vsel %vm652_vm1, %v3969_v27, 0.0 }
0x1fba   : > { %3978 = vadd.xlane.f32.xlu1 %v3977_v36 }
0x1fbe   : > { %3981 = vadd.xlane.f32.xlu1 %v3980_v20 }
0x1fef   : > { %v3944_v11 = vpop.xlane.xlu0 %3943 }
0x1ff5   : > { %v3941_v50 = vpop.xlane.xlu1 %3940 }
0x2039   : > { %v3976_v45 = vpop.xlane.xlu1 %3975 }
0x203a   : > { %v3984_v2 = vsel %vm8354_vm14, %v3944_v11, %v3976_v45  ;;  %v3973_v42 = vpop.xlane.xlu0 %3972 }
0x203b   : > { %v4964_v0 = vmul.f32 -1.442695, %v3984_v2  ;;  %v3983_v47 = vsel %vm8355_vm15, %v3941_v50, %v3973_v42 }
0x203c   : > { %v4963_v60 = vmul.f32 -1.442695, %v3983_v47 }
0x203d   : > { %5745 = vpow2.f32 %v4964_v0 }
0x203e   : > { %5747 = vpow2.f32 %v4963_v60  ;;  %v3947_v6 = vpop.xlane.xlu0 %3946 }
0x2042   : > { %v3950_v63 = vpop.xlane.xlu0 %3949 }
0x2047   : > { %v5746_v7 = vpop.eup %5745  ;;  %v3979_v21 = vpop.xlane.xlu1 %3978 }
0x2048   : > { %v5748_v27 = vpop.eup %5747  ;;  %v4000_v36 = vadd.f32 1.0, %v5746_v7  ;;  %v3985_v23 = vsel %vm8356_vm4, %v3947_v6, %v3979_v21  ;;  %v4124_v6 = vmul.u32 2, %v7430_v34  ;;  %v4123_v7 = vmul.u32 2, %v7436_v1 }
0x2049   : > { %v3999_v20 = vadd.f32 1.0, %v5748_v27  ;;  %v4965_v9 = vmul.f32 -1.442695, %v3985_v23  ;;  %v4125_v1 = vmul.u32 2, %v7448_v15 }
0x204a   : > { %5749 = vrcp.f32 %v4000_v36  ;;  %v4128_v27 = vadd.s32 1, %v4124_v6  ;;  %v4127_v23 = vadd.s32 1, %v4123_v7 }
0x204b   : > { %5751 = vrcp.f32 %v3999_v20  ;;  %v3982_v45 = vpop.xlane.xlu1 %3981 }
0x204c   : > { %5753 = vpow2.f32 %v4965_v9  ;;  %v3986_v11 = vsel %vm8357_vm5, %v3950_v63, %v3982_v45 }
0x204d   : > { %v4966_v42 = vmul.f32 -1.442695, %v3986_v11  ;;  %v4126_v11 = vmul.u32 2, %v7458_v46  ;;  %v8359_v46 = vmov 1  }
0x204f   : > { %5755 = vpow2.f32 %v4966_v42  ;;  %v4129_v42 = vadd.s32 1, %v4125_v1 }
0x2054   : > { %v7515_v50 = vpop.eup %5749 }
0x2055   : > { %v7517_v60 = vpop.eup %5751  ;;  %4017 = vrot.lane.b32.xlu1 %v7515_v50, %s8339_s1 }
0x2056   : > { %v5754_v2 = vpop.eup %5753  ;;  %4015 = vrot.lane.b32.xlu0 %v7517_v60, %s8339_s1 }
0x2057   : > { %v4001_v21 = vadd.f32 1.0, %v5754_v2 }
0x2059   : > { %v5756_v0 = vpop.eup %5755  ;;  %5757 = vrcp.f32 %v4001_v21 }
0x205a   : > { %v4002_v47 = vadd.f32 1.0, %v5756_v0  ;;  %v4130_v0 = vadd.s32 1, %v4126_v11 }
0x205c   : > { %5759 = vrcp.f32 %v4002_v47 }
0x2063   : > { %v7523_v9 = vpop.eup %5757 }
0x2064   : > { %4019 = vrot.lane.b32.xlu1 %v7523_v9, %s8339_s1 }
0x2066   : > { %v7527_v63 = vpop.eup %5759 }
0x2067   : > { %4021 = vrot.lane.b32.xlu0 %v7527_v63, %s8339_s1 }
0x20c7   : > { %v7533_v36 = vpop.permute.xlu1 %4017 }
0x20c8   : > { %vm4028_vm14 = vcmp.ge.f32.partialorder %v7515_v50, %v7533_v36  ;;  %v7537_v20 = vpop.permute.xlu0 %4015 }
0x20c9   : > { %vm8225_vm15 = vcmp.ge.f32.partialorder %v7517_v60, %v7537_v20  ;;  %v4132_v45 = vsel %vm4028_vm14, %v4124_v6, %v4128_v27 }
0x20ca   : > { %4139 = vperm.xlu0 %5585, %v4132_v45   ;;  %v4131_v34 = vsel %vm8225_vm15, %v4123_v7, %v4127_v23 }
0x20cb   : > { %4136 = vperm.xlu1 %5588, %v4131_v34  }
0x20d6   : > { %v7549_v2 = vpop.permute.xlu1 %4019 }
0x20d7   : > { %8358 = vst [vmem:[#allocation22_spill] sm:$0xff] %v7549_v2  ;;  %vm8226_vm4 = vcmp.ge.f32.partialorder %v7523_v9, %v7549_v2 }
0x20d8   : > { %v4133_v21 = vsel %vm8226_vm4, %v4125_v1, %v4129_v42 }
0x20d9   : > { %4142 = vperm.xlu1 %5588, %v4133_v21   ;;  %v7556_v47 = vpop.permute.xlu0 %4021 }
0x20da   : > { %vm8227_vm5 = vcmp.ge.f32.partialorder %v7527_v63, %v7556_v47 }
0x20db   : > { %v4134_v15 = vsel %vm8227_vm5, %v4126_v11, %v4130_v0  ;;  %v3077_v0 = vmul.f32 0.0625, %v7169_v52  ;;  %v3438_v52 = vsel %vm3386_vm10, 1, %v8367_v38  ;;  %vm8373_vm10 = vcmp.ge.f32.partialorder %v7517_v60, %v7537_v20 }
0x20dc   : > { %4145 = vperm.xlu0 %5585, %v4134_v15   ;;  %v7589_v15 = vmul.f32 0.0625, %v7177_v40  ;;  %v4080_v40 = vsel %vm4028_vm14, 1, %v8367_v38 }
0x20e0   : > { %5600 = vset.pattern.permute.xlu0 %v8359_v46 }
0x2149   : > { %v4140_v6 = vpop.permute.xlu0 %4139 }
0x214a   : > { %vm4148_vm15 = vcmp.eq.s32.totalorder %v8341_v57, %v4140_v6  ;;  %v4137_v7 = vpop.permute.xlu1 %4136 }
0x214b   : > { %vm4147_vm4 = vcmp.eq.s32.totalorder %v8341_v57, %v4137_v7  ;;  %v4968_v23 = vsel %vm4148_vm15, 1.0, %v8310_v54  ;;  %v7595_v7 = vmul.f32 0.25, %v7403_v8 }
0x214c   : > { %v4967_v27 = vsel %vm4147_vm4, 1.0, %v8310_v54 }
0x214d   : > { %5335 = vmatprep.mubr.msk.f32.mxu0 %vm652_vm1, %v4967_v27 }
0x214e   : > { %5336 = vmatmul.mubr.msk.f32.vlgmr.msra.gmra.mrb[32].mxu0 %vm652_vm1, %v4968_v23  ;;  %v7603_v23 = vmul.f32 0.0625, %v7181_v3 }
0x2158   : > { %v4143_v45 = vpop.permute.xlu1 %4142 }
0x2159   : > { %vm4149_vm5 = vcmp.eq.s32.totalorder %v8341_v57, %v4143_v45  ;;  %v7607_v45 = vmul.f32 0.25, %v7409_v39 }
0x215a   : > { %v4969_v34 = vsel %vm4149_vm5, 1.0, %v8310_v54 }
0x215b   : > { %5338 = vmatprep.mubr.msk.f32.mxu0 %vm652_vm1, %v4969_v34  ;;  %v4146_v1 = vpop.permute.xlu0 %4145  ;;  %v7611_v34 = vmul.f32 0.5, %v7515_v50 }
0x215c   : > { %vm4150_vm6 = vcmp.eq.s32.totalorder %v8341_v57, %v4146_v1  ;;  %v3389_v57 = vmul.f32 0.125, %v7287_v16  ;;  %v7615_v1 = vmul.f32 0.5, %v7523_v9 }
0x215d   : > { %v4970_v11 = vsel %vm4150_vm6, 1.0, %v8310_v54  ;;  %8364 = vst [vmem:[#allocation27_spill] sm:$0xff] %v7611_v34  ;;  %vm8372_vm6 = vcmp.ge.f32.partialorder %v7409_v39, %v7441_v48 }
0x215e   : > { %5339 = vmatmul.mubr.msk.f32.gmra.mrb[34].mxu0 %vm652_vm1, %v4970_v11  ;;  %8365 = vst [vmem:[#allocation28_spill] sm:$0xff] %v7615_v1  ;;  %v7619_v11 = vmul.f32 0.5, %v7527_v63 }
0x215f   : > { %5360 = vmatprep.mubr.msk.f32.mxu0 %vm5851_vm0, %v8310_v54  ;;  %v3076_v54 = vmul.f32 0.0625, %v7171_v19  ;;  %v3126_v19 = vsel %vm3074_vm2, 1, %v8367_v38  ;;  %vm8371_vm2 = vcmp.ge.f32.partialorder %v7181_v3, %v7218_v58  ;;  %v4079_v3 = vsel %vm8373_vm10, 1, %v8367_v38 }
0x2160   : > { %8366 = vst [vmem:[#allocation29_spill] sm:$0xff] %v7619_v11 }
0x2221   : > { %v7578_v42 = vpop.f32.mrb[32].mxu0 }
0x2222   : > { %8360 = vst [vmem:[#allocation23_spill] sm:$0xff] %v7578_v42  ;;  %4278 = vrot.lane.b32.xlu0 %v7578_v42, %s8324_s28  ;;  %v7582_v21 = vpop.f32.mrb[33].mxu0  ;;  %v4257_v30 = vmul.f32 %v7578_v42, %v7131_v32 }
0x2223   : > { %8361 = vst [vmem:[#allocation24_spill] sm:$0xff] %v7582_v21  ;;  %4276 = vrot.lane.b32.xlu1 %v7582_v21, %s8324_s28 }
0x2227   : > { %3109 = vperm.xlu1 %5588, %v3077_v0  }
0x222b   : > { %3418 = vperm.xlu1 %5588, %v3389_v57  }
0x222f   : > { %3113 = vperm.xlu1 %5588, %v7589_v15  }
0x2231   : > { %v7592_v6 = vpop.f32.mrb[34].mxu0 }
0x2232   : > { %8362 = vst [vmem:[#allocation25_spill] sm:$0xff] %v7592_v6  ;;  %4282 = vrot.lane.b32.xlu0 %v7592_v6, %s8324_s28  ;;  %v7599_v27 = vpop.f32.mrb[35].mxu0 }
0x2233   : > { %8363 = vst [vmem:[#allocation26_spill] sm:$0xff] %v7599_v27  ;;  %3739 = vperm.xlu1 %5588, %v7595_v7  }
0x2237   : > { %3117 = vperm.xlu1 %5588, %v7603_v23  }
0x223b   : > { %3747 = vperm.xlu1 %5588, %v7607_v45  }
0x223f   : > { %4064 = vperm.xlu1 %5588, %v7611_v34   ;;  %v4263_v34 = vsel %vm652_vm1, %v4257_v30, 0.0  ;;  %v4259_v30 = vmul.f32 %v7592_v6, %v7155_v13 }
0x2243   : > { %4068 = vperm.xlu1 %5588, %v7615_v1   ;;  %v4256_v1 = vmul.f32 %v7582_v21, %v7137_v28 }
0x2245   : > { %v4260_v49 = vsel %vm652_vm1, %v4256_v1, 0.0 }
0x2247   : > { %4072 = vperm.xlu1 %5588, %v7619_v11   ;;  %v7633_v11 = vmul.f32 0.125, %v7293_v41 }
0x2249   : > { %8368 = vst [vmem:[#allocation30_spill] sm:$0xff] %v7633_v11 }
0x224b   : > { %5599 = vset.pattern.permute.xlu1 %v8359_v46 }
0x224c   : > { %3082 = vperm.xlu1 %5599, %v3076_v54  }
0x2251   : > { %4264 = vadd.xlane.f32.xlu0 %v4263_v34 }
0x2267   : > { %3087 = vperm.xlu0 %5600, %v3077_v0   ;;  %v4269_v0 = vsel %vm652_vm1, %v4259_v30, 0.0 }
0x226b   : > { %5601 = vset.pattern.permute.xlu0 %v8367_v38 }
0x226c   : > { %3105 = vperm.xlu0 %5601, %v3076_v54   ;;  %v4258_v54 = vmul.f32 %v7599_v27, %v7146_v18 }
0x226e   : > { %v4266_v1 = vsel %vm652_vm1, %v4258_v54, 0.0 }
0x2270   : > { %4261 = vadd.xlane.f32.xlu1 %v4260_v49  ;;  %3422 = vperm.xlu0 %5601, %v3390_v25  }
0x2274   : > { %3426 = vperm.xlu0 %5601, %v7633_v11  }
0x2281   : > { %4280 = vrot.lane.b32.xlu1 %v7599_v27, %s8324_s28 }
0x2293   : > { %4270 = vadd.xlane.f32.xlu0 %v4269_v0 }
0x2294   : > { %v4279_v21 = vpop.permute.xlu0 %4278 }
0x2295   : > { %v4277_v34 = vpop.permute.xlu1 %4276  ;;  %v4289_v11 = vmul.f32 %v4279_v21, %v7131_v32 }
0x2296   : > { %v4288_v49 = vmul.f32 %v4277_v34, %v7137_v28  ;;  %v3711_v28 = vmul.f32 0.25, %v7401_v5  ;;  %v7658_v34 = vmul.f32 0.125, %v7297_v35 }
0x2297   : > { %4267 = vadd.xlane.f32.xlu0 %v4266_v1  ;;  %v4295_v6 = vsel %vm652_vm1, %v4289_v11, 0.0  ;;  %v7671_v11 = vmul.f32 0.25, %v7413_v62 }
0x2298   : > { %v4292_v42 = vsel %vm652_vm1, %v4288_v49, 0.0 }
0x229b   : > { %4293 = vadd.xlane.f32.xlu0 %v4292_v42  ;;  %v7664_v42 = vmul.f32 0.5, %v7517_v60 }
0x22a4   : > { %v4283_v59 = vpop.permute.xlu0 %4282 }
0x22a5   : > { %4296 = vadd.xlane.f32.xlu1 %v4295_v6  ;;  %v4291_v5 = vmul.f32 %v4283_v59, %v7155_v13 }
0x22a6   : > { %v7648_v30 = vpop.permute.xlu1 %3109 }
0x22aa   : > { %v7650_v2 = vpop.permute.xlu1 %3418 }
0x22ab   : > { %v3433_v39 = vmul.f32 %v7650_v2, %v7249_v29 }
0x22ae   : > { %v7652_v0 = vpop.permute.xlu1 %3113 }
0x22b1   : > { %3743 = vperm.xlu0 %5601, %v3711_v28  }
0x22b2   : > { %v7655_v54 = vpop.permute.xlu1 %3739 }
0x22b5   : > { %3430 = vperm.xlu0 %5601, %v7658_v34  }
0x22b6   : > { %v7661_v32 = vpop.permute.xlu1 %3117  ;;  %3395 = vperm.xlu1 %5599, %v3389_v57   ;;  %v3125_v57 = vsel %vm3073_vm13, 1, %v8367_v38  ;;  %vm8369_vm13 = vcmask 7168  }
0x22b9   : > { %4060 = vperm.xlu0 %5601, %v7664_v42  }
0x22ba   : > { %v3748_v21 = vpop.permute.xlu1 %3747  ;;  %3400 = vperm.xlu1 %5599, %v3390_v25   ;;  %v3124_v25 = vsel %vm3072_vm11, 1, %v8367_v38  ;;  %vm8370_vm11 = vmmov %vm8369_vm13 }
0x22bb   : > { %v7668_v6 = vmul.f32 %v3748_v21, %v7373_v43  ;;  %vm8376_vm3 = vmmov %vm8370_vm11 }
0x22bd   : > { %3751 = vperm.xlu0 %5601, %v7671_v11  }
0x22be   : > { %v4065_v49 = vpop.permute.xlu1 %4064  ;;  %5602 = vset.pattern.permute.xlu1 %v8367_v38 }
0x22bf   : > { %v7680_v1 = vmul.f32 %v7475_v53, %v4065_v49  ;;  %3132 = vperm.xlu1 %5602, %v3125_v57   ;;  %v3759_v57 = vsel %vm3707_vm7, 1, %v8367_v38  ;;  %vm8377_vm7 = vmmov %vm8376_vm3 }
0x22c1   : > { %3129 = vperm.xlu0 %5601, %v3124_v25   ;;  %v4301_v25 = vsel %vm652_vm1, %v4291_v5, 0.0 }
0x22c2   : > { %v4069_v21 = vpop.permute.xlu1 %4068 }
0x22c3   : > { %v7687_v27 = vmul.f32 %v4069_v21, %v7487_v56 }
0x22c5   : > { %3445 = vperm.xlu0 %5601, %v3438_v52  }
0x22c6   : > { %v4073_v22 = vpop.permute.xlu1 %4072 }
0x22c7   : > { %v7694_v49 = vmul.f32 %v7483_v37, %v4073_v22 }
0x22c9   : > { %3135 = vperm.xlu0 %5601, %v3126_v19  }
0x22cb   : > { %v3083_v17 = vpop.permute.xlu1 %3082 }
0x22cc   : > { %v7705_v55 = vmul.f32 %v3083_v17, %v7117_v31 }
0x22cd   : > { %3766 = vperm.xlu0 %5601, %v3759_v57  }
0x22d1   : > { %3451 = vperm.xlu0 %5601, %v3440_v33  }
0x22d5   : > { %4087 = vperm.xlu0 %5601, %v4080_v40  }
0x22de   : > { %v4265_v12 = vpop.xlane.xlu0 %4264 }
0x22e3   : > { %4302 = vadd.xlane.f32.xlu1 %v4301_v25 }
0x22e6   : > { %v3088_v21 = vpop.permute.xlu0 %3087 }
0x22e7   : > { %v7718_v52 = vmul.f32 %v7113_v14, %v3088_v21 }
0x22eb   : > { %v3106_v35 = vpop.permute.xlu0 %3105 }
0x22ec   : > { %v7721_v26 = vmul.f32 %v3106_v35, %v7117_v31  ;;  %v3437_v31 = vsel %vm3385_vm12, 1, %v8367_v38  ;;  %vm8374_vm12 = vcmp.ge.f32.partialorder %v7413_v62, %v7451_v51 }
0x22ed   : > { %v3761_v58 = vsel %vm8374_vm12, 1, %v8367_v38 }
0x22ef   : > { %v3423_v22 = vpop.permute.xlu0 %3422 }
0x22f0   : > { %v7724_v50 = vmul.f32 %v7245_v24, %v3423_v22 }
0x22f3   : > { %v3427_v36 = vpop.permute.xlu0 %3426 }
0x22f4   : > { %v7727_v19 = vmul.f32 %v3427_v36, %v7257_v61 }
0x22fd   : > { %v4262_v13 = vpop.xlane.xlu1 %4261 }
0x2301   : > { %v4281_v17 = vpop.permute.xlu1 %4280 }
0x2302   : > { %v4290_v57 = vmul.f32 %v4281_v17, %v7146_v18  ;;  %v3439_v18 = vsel %vm3387_vm9, 1, %v8367_v38  ;;  %vm8375_vm9 = vcmp.ge.f32.partialorder %v7527_v63, %v7556_v47 }
0x2303   : > { %v4082_v62 = vsel %vm8375_vm9, 1, %v8367_v38 }
0x2304   : > { %v4298_v33 = vsel %vm652_vm1, %v4290_v57, 0.0  ;;  %v8378_v57 = vld [vmem:[#allocation22_spill] sm:$0xff] }
0x2305   : > { %4299 = vadd.xlane.f32.xlu1 %v4298_v33 }
0x2316   : > { %3442 = vperm.xlu1 %5602, %v3437_v31  }
0x231a   : > { %5603 = vset.pattern.permute.xlu1 %v8359_v46 }
0x231b   : > { %3092 = vperm.xlu1 %5603, %v7589_v15   ;;  %v3758_v15 = vsel %vm3706_vm8, 1, %v8367_v38  ;;  %vm8379_vm8 = vcmp.ge.f32.partialorder %v7523_v9, %v8378_v57 }
0x231c   : > { %v4081_v33 = vsel %vm8379_vm8, 1, %v8367_v38 }
0x231f   : > { %3716 = vperm.xlu1 %5603, %v7595_v7  }
0x2320   : > { %v4271_v40 = vpop.xlane.xlu0 %4270 }
0x2323   : > { %3721 = vperm.xlu1 %5603, %v3711_v28  }
0x2324   : > { %v7738_v59 = vpop.xlane.xlu0 %4267 }
0x2327   : > { %5604 = vset.pattern.permute.xlu1 %v8367_v38 }
0x2328   : > { %3448 = vperm.xlu1 %5604, %v3439_v18   ;;  %v4294_v16 = vpop.xlane.xlu0 %4293 }
0x2329   : > { %v4304_v4 = vsel %vm8369_vm13, %v4262_v13, %v4294_v16 }
0x232a   : > { %v4975_v5 = vmul.f32 -1.442695, %v4304_v4  ;;  %v8380_v4 = vld [vmem:[#allocation29_spill] sm:$0xff] }
0x232c   : > { %5761 = vpow2.f32 %v4975_v5  ;;  %3763 = vperm.xlu1 %5604, %v3758_v15  }
0x2330   : > { %5605 = vset.pattern.permute.xlu1 %v8359_v46 }
0x2331   : > { %3097 = vperm.xlu1 %5605, %v7603_v23   ;;  %v3127_v23 = vsel %vm8371_vm2, 1, %v8367_v38 }
0x2332   : > { %v4297_v41 = vpop.xlane.xlu1 %4296 }
0x2333   : > { %v4305_v10 = vsel %vm8370_vm11, %v4265_v12, %v4297_v41  ;;  %v3760_v12 = vsel %vm8372_vm6, 1, %v8367_v38  ;;  %v8382_v41 = vld [vmem:[#allocation14_spill] sm:$0xff] }
0x2334   : > { %v4976_v7 = vmul.f32 -1.442695, %v4305_v10 }
0x2335   : > { %3726 = vperm.xlu1 %5605, %v7607_v45  }
0x2336   : > { %v5762_v28 = vpop.eup %5761  ;;  %5763 = vpow2.f32 %v4976_v7  ;;  %v3396_v25 = vpop.permute.xlu1 %3395 }
0x2337   : > { %v4320_v21 = vadd.f32 1.0, %v5762_v28  ;;  %v7755_v35 = vmul.f32 %v3396_v25, %v7249_v29  ;;  %v3121_v28 = vmul.f32 %v7113_v14, %v7648_v30 }
0x2339   : > { %5765 = vrcp.f32 %v4320_v21  ;;  %4037 = vperm.xlu1 %5605, %v7664_v42  }
0x233a   : > { %v3401_v8 = vpop.permute.xlu1 %3400 }
0x233b   : > { %v7759_v44 = vmul.f32 %v7245_v24, %v3401_v8 }
0x233d   : > { %5606 = vset.pattern.permute.xlu1 %v8367_v38 }
0x233e   : > { %3138 = vperm.xlu1 %5606, %v3127_v23   ;;  %v7800_v29 = vpop.permute.xlu1 %3132  ;;  %v8383_v23 = vld [vmem:[#allocation15_spill] sm:$0xff] }
0x233f   : > { %vm3141_vm11 = vcmp.eq.s32.totalorder %v7800_v29, 1 }
0x2340   : > { %v5764_v45 = vpop.eup %5763 }
0x2341   : > { %v4321_v22 = vadd.f32 1.0, %v5764_v45 }
0x2342   : > { %3769 = vperm.xlu1 %5606, %v3760_v12  }
0x2343   : > { %v7770_v42 = vpop.eup %5765  ;;  %5767 = vrcp.f32 %v4321_v22 }
0x2344   : > { %4336 = vrot.lane.b32.xlu0 %v7770_v42, %s8339_s1 }
0x2346   : > { %4084 = vperm.xlu1 %5606, %v4079_v3  }
0x2348   : > { %4373 = vperm.xlu0 %5601, %v7770_v42  }
0x234a   : > { %5607 = vset.pattern.permute.xlu1 %v8359_v46 }
0x234b   : > { %3731 = vperm.xlu1 %5607, %v7671_v11   ;;  %v3744_v11 = vpop.permute.xlu0 %3743 }
0x234c   : > { %3772 = vperm.xlu0 %5601, %v3761_v58   ;;  %v8384_v58 = vld [vmem:[#allocation20_spill] sm:$0xff] }
0x234d   : > { %v7785_v24 = vpop.eup %5767 }
0x234f   : > { %4338 = vrot.lane.b32.xlu1 %v7785_v24, %s8339_s1  ;;  %v7805_v47 = vpop.permute.xlu0 %3430 }
0x2350   : > { %3461 = vrot.lane.b32.xlu0 %v3433_v39, %s8324_s28  ;;  %5608 = vset.pattern.permute.xlu1 %v8367_v38 }
0x2353   : > { %4377 = vperm.xlu1 %5608, %v7785_v24   ;;  %v7811_v36 = vpop.permute.xlu0 %4060 }
0x2354   : > { %4093 = vperm.xlu0 %5601, %v4082_v62  }
0x2357   : > { %5609 = vset.pattern.permute.xlu1 %v8359_v46  ;;  %v7822_v18 = vpop.permute.xlu0 %3751 }
0x2358   : > { %4353 = vperm.xlu1 %5609, %v7770_v42  }
0x235b   : > { %v7829_v15 = vpop.permute.xlu0 %3129 }
0x235c   : > { %vm3140_vm13 = vcmp.eq.s32.totalorder %v7829_v15, 1 }
0x235f   : > { %v7839_v8 = vpop.permute.xlu0 %3445 }
0x2360   : > { %vm3454_vm6 = vcmp.eq.s32.totalorder %v7839_v8, 1 }
0x2363   : > { %v7848_v12 = vpop.permute.xlu0 %3135 }
0x2364   : > { %vm3142_vm8 = vcmp.eq.s32.totalorder %v7848_v12, 1 }
0x2367   : > { %v7859_v22 = vpop.permute.xlu0 %3766 }
0x2368   : > { %vm3775_vm10 = vcmp.eq.s32.totalorder %v7859_v22, 1  ;;  %v2740_v22 = vld [vmem:[%s8139_s11 + $0x10] sm:$0xff] }
0x2370   : > { %v4303_v48 = vpop.xlane.xlu1 %4302 }
0x2371   : > { %v4307_v51 = vsel %vm8376_vm3, %v4271_v40, %v4303_v48  ;;  %v7870_v48 = vpop.permute.xlu0 %3451 }
0x2372   : > { %v4978_v60 = vmul.f32 -1.442695, %v4307_v51 }
0x2374   : > { %5769 = vpow2.f32 %v4978_v60  ;;  %v8385_v60 = vld [vmem:[#allocation30_spill] sm:$0xff] }
0x237e   : > { %v5770_v20 = vpop.eup %5769 }
0x237f   : > { %v4323_v2 = vadd.f32 1.0, %v5770_v20 }
0x2381   : > { %5771 = vrcp.f32 %v4323_v2  ;;  %v8386_v2 = vld [vmem:[#allocation10_spill] sm:$0xff] }
0x238b   : > { %v7803_v63 = vpop.eup %5771 }
0x238c   : > { %4342 = vrot.lane.b32.xlu1 %v7803_v63, %s8339_s1  ;;  %4385 = vperm.xlu0 %5601, %v7803_v63  }
0x2390   : > { %4357 = vperm.xlu1 %5609, %v7785_v24  }
0x2392   : > { %v4300_v13 = vpop.xlane.xlu1 %4299 }
0x2393   : > { %v4306_v17 = vsel %vm8377_vm7, %v7738_v59, %v4300_v13  ;;  %v8381_v59 = vld [vmem:[#allocation21_spill] sm:$0xff] }
0x2394   : > { %v4977_v31 = vmul.f32 -1.442695, %v4306_v17  ;;  %5610 = vset.pattern.permute.xlu1 %v8367_v38 }
0x2395   : > { %4090 = vperm.xlu1 %5610, %v4081_v33  }
0x2396   : > { %5773 = vpow2.f32 %v4977_v31  ;;  %v7820_v40 = vpop.permute.xlu1 %3442  ;;  %v3754_v31 = vmul.f32 %v7655_v54, %v8382_v41  ;;  %v4075_v54 = vmul.f32 %v7811_v36, %v8386_v2 }
0x2397   : > { %vm3453_vm15 = vcmp.eq.s32.totalorder %v7820_v40, 1 }
0x2399   : > { %5611 = vset.pattern.permute.xlu1 %v8359_v46 }
0x239a   : > { %v3093_v16 = vpop.permute.xlu1 %3092  ;;  %4052 = vperm.xlu1 %5611, %v8380_v4  }
0x239b   : > { %v7827_v5 = vmul.f32 %v3093_v16, %v8381_v59  ;;  %v8389_v16 = vld [vmem:[#allocation12_spill] sm:$0xff] }
0x239e   : > { %v3717_v9 = vpop.permute.xlu1 %3716  ;;  %3148 = vrot.lane.b32.xlu1 %v7721_v26, %s8324_s28 }
0x239f   : > { %v7834_v10 = vmul.f32 %v3717_v9, %v8382_v41 }
0x23a0   : > { %v5774_v7 = vpop.eup %5773 }
0x23a1   : > { %v4322_v25 = vadd.f32 1.0, %v5774_v7 }
0x23a2   : > { %v3722_v21 = vpop.permute.xlu1 %3721  ;;  %3150 = vrot.lane.b32.xlu1 %v3121_v28, %s8324_s28 }
0x23a3   : > { %5775 = vrcp.f32 %v4322_v25  ;;  %v7842_v45 = vmul.f32 %v8383_v23, %v3722_v21  ;;  %v3757_v25 = vmul.f32 %v8389_v16, %v7822_v18 }
0x23a6   : > { %3463 = vrot.lane.b32.xlu1 %v7724_v50, %s8324_s28  ;;  %v3755_v50 = vmul.f32 %v8383_v23, %v3744_v11 }
0x23a7   : > { %v7846_v26 = vpop.permute.xlu1 %3448 }
0x23a8   : > { %vm3455_vm9 = vcmp.eq.s32.totalorder %v7846_v26, 1 }
0x23aa   : > { %4365 = vperm.xlu1 %5611, %v7803_v63  }
0x23ab   : > { %v7851_v14 = vpop.permute.xlu1 %3763 }
0x23ad   : > { %v7853_v30 = vpop.eup %5775 }
0x23ae   : > { %3465 = vrot.lane.b32.xlu1 %v7727_v19, %s8324_s28  ;;  %4340 = vrot.lane.b32.xlu0 %v7853_v30, %s8339_s1  ;;  %v3123_v19 = vmul.f32 %v8384_v58, %v7661_v32  ;;  %v7883_v32 = vpop.permute.xlu0 %4087  ;;  %s4989_s1 = sshll.u32 %s5987_s2, 7  ;;  %s5860_s2 = smov [#allocation2]  }
0x23af   : > { %5614 = vset.pattern.permute.xlu1 %v8367_v38  ;;  %vm4096_vm7 = vcmp.eq.s32.totalorder %v7883_v32, 1  ;;  %s8085_s21 = scalar_lea.hbm %s8148_s20, %s4989_s1  ;;  %s5790_s0 = sshll.u32 %s5860_s2, 4  ;;  %s5791_s0 = int_to_ptr.vmem [resolvable:$false] %s5790_s0 }
0x23b0   : > { %v3098_v3 = vpop.permute.xlu1 %3097  ;;  %s5792_s29 = scalar_lea.vmem %s5791_s0, 256  ;;  %p5793_p0 = scmp.lt.s32.totalorder %s8087_s23, %s5791_s0 }
0x23b1   : > { %v7864_v39 = vmul.f32 %v8384_v58, %v3098_v3  ;;  %v8392_v3 = vld [vmem:[#allocation25_spill] sm:$0xff] }
0x23b2   : > { %4381 = vperm.xlu0 %5601, %v7853_v30   ;;  %3784 = vrot.lane.b32.xlu1 %v3755_v50, %s8324_s28 }
0x23b4   : > { %v3727_v62 = vpop.permute.xlu1 %3726 }
0x23b5   : > { %v7873_v51 = vmul.f32 %v3727_v62, %v7373_v43 }
0x23b6   : > { %5612 = vset.pattern.permute.xlu0 %v8359_v46  ;;  %3154 = vrot.lane.b32.xlu1 %v3123_v19, %s8324_s28  ;;  %v4337_v43 = vpop.permute.xlu0 %4336  ;;  %v8387_v46 = vld [vmem:[#allocation27_spill] sm:$0xff] }
0x23b7   : > { %3405 = vperm.xlu0 %5612, %v8385_v60   ;;  %vm4348_vm14 = vcmp.ge.f32.partialorder %v7770_v42, %v4337_v43 }
0x23b8   : > { %v4038_v20 = vpop.permute.xlu1 %4037  ;;  %v4392_v57 = vsel %vm4348_vm14, 1, %v8367_v38  ;;  %vm3774_vm14 = vcmp.eq.s32.totalorder %v7851_v14, 1 }
0x23b9   : > { %v7879_v11 = vmul.f32 %v4038_v20, %v8386_v2 }
0x23ba   : > { %3786 = vrot.lane.b32.xlu1 %v7668_v6, %s8324_s28  ;;  %v8388_v6 = vld [vmem:[#allocation28_spill] sm:$0xff] }
0x23bb   : > { %3410 = vperm.xlu0 %5612, %v7658_v34   ;;  %v3122_v34 = vmul.f32 %v7652_v0, %v8381_v59  ;;  %v8390_v0 = vld [vmem:[#allocation13_spill] sm:$0xff] }
0x23bc   : > { %v3436_v59 = vmul.f32 %v8390_v0, %v7805_v47  ;;  %v8391_v47 = vld [vmem:[#allocation24_spill] sm:$0xff] }
0x23bd   : > { %v7886_v13 = vpop.permute.xlu1 %3138 }
0x23be   : > { %4105 = vrot.lane.b32.xlu1 %v7680_v1, %s8324_s28  ;;  %vm3143_vm12 = vcmp.eq.s32.totalorder %v7886_v13, 1 }
0x23bf   : > { %4042 = vperm.xlu0 %5612, %v8387_v46  }
0x23c1   : > { %v7891_v17 = vpop.permute.xlu1 %3769 }
0x23c2   : > { %4107 = vrot.lane.b32.xlu1 %v7687_v27, %s8324_s28  ;;  %vm3776_vm3 = vcmp.eq.s32.totalorder %v7891_v17, 1 }
0x23c3   : > { %4047 = vperm.xlu0 %5612, %v8388_v6  }
0x23c5   : > { %v7900_v33 = vpop.permute.xlu1 %4084 }
0x23c6   : > { %4397 = vperm.xlu1 %5614, %v4392_v57  }
0x23c7   : > { %3152 = vrot.lane.b32.xlu0 %v3122_v34, %s8324_s28  ;;  %v4374_v1 = vpop.permute.xlu0 %4373  ;;  %v8393_v34 = vld [vmem:[#allocation23_spill] sm:$0xff] }
0x23c8   : > { %v4388_v18 = vmul.f32 %v4374_v1, %v8391_v47 }
0x23ca   : > { %v3732_v42 = vpop.permute.xlu1 %3731 }
0x23cb   : > { %v7906_v4 = vmul.f32 %v8389_v16, %v3732_v42  ;;  %3782 = vrot.lane.b32.xlu0 %v3754_v31, %s8324_s28  ;;  %v7909_v27 = vpop.permute.xlu0 %3772  ;;  %v8394_v42 = vld [vmem:[#allocation26_spill] sm:$0xff] }
0x23ce   : > { %v4339_v9 = vpop.permute.xlu1 %4338 }
0x23cf   : > { %3467 = vrot.lane.b32.xlu0 %v3436_v59, %s8324_s28  ;;  %v3462_v7 = vpop.permute.xlu0 %3461  ;;  %vm4349_vm4 = vcmp.ge.f32.partialorder %v7785_v24, %v4339_v9  ;;  %v2739_v59 = vld [vmem:[%s8139_s11 + $0x8] sm:$0xff] }
0x23d0   : > { %v3473_v28 = vsel %vm3453_vm15, %v7755_v35, %v3462_v7  ;;  %v4393_v35 = vsel %vm4349_vm4, 1, %v8367_v38  ;;  %v2741_v7 = vld [vmem:[%s8139_s11 + $0x18] sm:$0xff]  ;;  %vm3456_vm4 = vcmp.eq.s32.totalorder %v7870_v48, 1 }
0x23d2   : > { %v4378_v41 = vpop.permute.xlu1 %4377 }
0x23d3   : > { %4103 = vrot.lane.b32.xlu0 %v4075_v54, %s8324_s28  ;;  %v4389_v15 = vmul.f32 %v8393_v34, %v4378_v41 }
0x23d7   : > { %v4354_v21 = vpop.permute.xlu1 %4353  ;;  %3788 = vrot.lane.b32.xlu0 %v3757_v25, %s8324_s28  ;;  %v5490_v25 = vpack.c.bf16 %v2741_v7, %v2740_v22  ;;  %v8396_v7 = vld [vmem:[#allocation16_spill] sm:$0xff] }
0x23d8   : > { %v7923_v23 = vmul.f32 %v4354_v21, %v8391_v47  ;;  %v8395_v21 = vmov 0.0|0.0  }
0x23db   : > { %4109 = vrot.lane.b32.xlu0 %v7694_v49, %s8324_s28  ;;  %v7935_v49 = vpop.permute.xlu0 %4093 }
0x23df   : > { %4361 = vperm.xlu0 %5612, %v7853_v30  }
0x23e3   : > { %5613 = vset.pattern.permute.xlu0 %v8367_v38 }
0x23e4   : > { %4400 = vperm.xlu0 %5613, %v4393_v35  }
0x23fe   : > { %v4343_v36 = vpop.permute.xlu1 %4342 }
0x23ff   : > { %vm4351_vm5 = vcmp.ge.f32.partialorder %v7803_v63, %v4343_v36 }
0x2400   : > { %v4395_v40 = vsel %vm4351_vm5, 1, %v8367_v38  ;;  %vm4095_vm5 = vcmp.eq.s32.totalorder %v7900_v33, 1 }
0x2401   : > { %4406 = vperm.xlu0 %5613, %v4395_v40  }
0x2405   : > { %4416 = vrot.lane.b32.xlu0 %v4388_v18, %s8324_s28 }
0x240b   : > { %v4386_v50 = vpop.permute.xlu0 %4385 }
0x240c   : > { %v4391_v24 = vmul.f32 %v8392_v3, %v4386_v50 }
0x240e   : > { %4422 = vrot.lane.b32.xlu0 %v4391_v24, %s8324_s28 }
0x240f   : > { %v7939_v58 = vpop.permute.xlu1 %4357 }
0x2414   : > { %v7941_v19 = vpop.permute.xlu1 %4090 }
0x2415   : > { %vm4097_vm15 = vcmp.eq.s32.totalorder %v7941_v19, 1 }
0x2419   : > { %v7943_v62 = vpop.permute.xlu1 %4052 }
0x241d   : > { %v3149_v63 = vpop.permute.xlu1 %3148 }
0x241e   : > { %v3160_v60 = vsel %vm3140_vm13, %v7705_v55, %v3149_v63  ;;  %vm3777_vm13 = vcmp.eq.s32.totalorder %v7909_v27, 1 }
0x241f   : > { %v7947_v20 = vadd.f32 %v3473_v28, %v3160_v60 }
0x2420   : > { %v4341_v2 = vpop.permute.xlu0 %4340 }
0x2421   : > { %vm4350_vm2 = vcmp.ge.f32.partialorder %v7853_v30, %v4341_v2  ;;  %v3151_v43 = vpop.permute.xlu1 %3150 }
0x2422   : > { %v4394_v46 = vsel %vm4350_vm2, 1, %v8367_v38  ;;  %v3161_v6 = vsel %vm3141_vm11, %v7718_v52, %v3151_v43  ;;  %vm4098_vm11 = vcmp.eq.s32.totalorder %v7935_v49, 1 }
0x2423   : > { %4403 = vperm.xlu1 %5614, %v4394_v46  }
0x2425   : > { %v3464_v57 = vpop.permute.xlu1 %3463 }
0x2426   : > { %v3474_v55 = vsel %vm3454_vm6, %v7759_v44, %v3464_v57  ;;  %v2738_v44 = vld [vmem:[%s8139_s11] sm:$0xff] }
0x2427   : > { %v3478_v1 = vadd.f32 %v3474_v55, %v3161_v6  ;;  %4418 = vrot.lane.b32.xlu1 %v4389_v15, %s8324_s28  ;;  %v5487_v9 = vpack.c.bf16 %v2739_v59, %v2738_v44  ;;  %v4369_v44 = vmul.f32 %v8393_v34, %v7939_v58 }
0x2429   : > { %v7957_v31 = vpop.permute.xlu1 %4365  ;;  %5488 = vmatpush3.bf16.msra.mxu1 %v5487_v9 }
0x242a   : > { %5489 = vmatprep.subr.bf16.mxu1 %v8395_v21 }
0x242d   : > { %v3466_v29 = vpop.permute.xlu1 %3465  ;;  %5491 = vmatpush3.bf16.msra.mxu1 %v5490_v25 }
0x242e   : > { %5498 = vmatprep.subr.bf16.mxu1 %v8395_v21 }
0x2431   : > { %v3785_v30 = vpop.permute.xlu1 %3784  ;;  %v4382_v38 = vpop.permute.xlu0 %4381 }
0x2432   : > { %v3795_v52 = vsel %vm3775_vm10, %v7842_v45, %v3785_v30  ;;  %v4390_v16 = vmul.f32 %v4382_v38, %v8394_v42 }
0x2433   : > { %v3799_v8 = vadd.f32 %v3795_v52, %v3478_v1 }
0x2434   : > { %4420 = vrot.lane.b32.xlu1 %v4390_v16, %s8324_s28 }
0x2435   : > { %v3155_v45 = vpop.permute.xlu1 %3154 }
0x2436   : > { %v3163_v28 = vsel %vm3143_vm12, %v7864_v39, %v3155_v45  ;;  %v3406_v54 = vpop.permute.xlu0 %3405 }
0x2437   : > { %v3415_v41 = vmul.f32 %v3406_v54, %v7257_v61 }
0x2439   : > { %v3787_v13 = vpop.permute.xlu1 %3786  ;;  %v3475_v47 = vsel %vm3455_vm9, %v3415_v41, %v3466_v29 }
0x243a   : > { %v3796_v35 = vsel %vm3776_vm3, %v7873_v51, %v3787_v13  ;;  %v3411_v36 = vpop.permute.xlu0 %3410  ;;  %v8398_v13 = vld [vmem:[#allocation18_spill] sm:$0xff] }
0x243b   : > { %v3416_v12 = vmul.f32 %v8390_v0, %v3411_v36  ;;  %v4058_v0 = vmul.f32 %v7483_v37, %v7943_v62 }
0x243d   : > { %v4106_v61 = vpop.permute.xlu1 %4105 }
0x243e   : > { %v4043_v39 = vpop.permute.xlu0 %4042 }
0x243f   : > { %v4056_v40 = vmul.f32 %v7475_v53, %v4043_v39 }
0x2441   : > { %v4116_v18 = vsel %vm4096_vm7, %v4056_v40, %v4106_v61  ;;  %v4108_v60 = vpop.permute.xlu1 %4107  ;;  %v8402_v61 = vld [vmem:[#allocation11_spill] sm:$0xff] }
0x2442   : > { %v4048_v26 = vpop.permute.xlu0 %4047  ;;  %v4120_v50 = vadd.f32 %v4116_v18, %v3799_v8 }
0x2443   : > { %v4057_v24 = vmul.f32 %v4048_v26, %v7487_v56 }
0x2445   : > { %v4117_v32 = vsel %vm4097_vm15, %v4057_v24, %v4108_v60  ;;  %v4398_v52 = vpop.permute.xlu1 %4397 }
0x2446   : > { %v3153_v17 = vpop.permute.xlu0 %3152  ;;  %vm4408_vm2 = vcmp.eq.s32.totalorder %v4398_v52, 1 }
0x2447   : > { %v3162_v51 = vsel %vm3142_vm8, %v7827_v5, %v3153_v17 }
0x2448   : > { %v3479_v63 = vadd.f32 %v3475_v47, %v3162_v51 }
0x244a   : > { %v3800_v53 = vadd.f32 %v3796_v35, %v3479_v63  ;;  %v3783_v2 = vpop.permute.xlu0 %3782  ;;  %v8399_v35 = vld [vmem:[#allocation19_spill] sm:$0xff] }
0x244b   : > { %v3794_v43 = vsel %vm3774_vm14, %v7834_v10, %v3783_v2  ;;  %v4549_v2 = vld [vmem:[%s8142_s14 + $0x8] sm:$0xff] }
0x244c   : > { %v3798_v46 = vadd.f32 %v3794_v43, %v7947_v20  ;;  %v4121_v6 = vadd.f32 %v4117_v32, %v3800_v53  ;;  %v4548_v53 = vld [vmem:[%s8142_s14] sm:$0xff]  ;;  %v4550_v43 = vld [vmem:[%s8142_s14 + $0x10] sm:$0xff] }
0x244d   : > { %v5493_v32 = vpack.c.bf16 %v4549_v2, %v4548_v53 }
0x244e   : > { %v3468_v56 = vpop.permute.xlu0 %3467 }
0x244f   : > { %v3476_v5 = vsel %vm3456_vm4, %v3416_v12, %v3468_v56  ;;  %5494 = vmatpush3.bf16.msra.mxu0 %v5493_v32  ;;  %v4633_v12 = vld [vmem:[%s8144_s16] sm:$0xff]  ;;  %v4634_v56 = vld [vmem:[%s8144_s16 + $0x8] sm:$0xff] }
0x2450   : > { %v3480_v15 = vadd.f32 %v3476_v5, %v3163_v28  ;;  %v8397_v28 = vld [vmem:[#allocation17_spill] sm:$0xff]  ;;  %5495 = vmatprep.subr.bf16.mxu0 %v8395_v21  ;;  %v4635_v5 = vld [vmem:[%s8144_s16 + $0x10] sm:$0xff] }
0x2452   : > { %v4104_v14 = vpop.permute.xlu0 %4103 }
0x2453   : > { %v4115_v19 = vsel %vm4095_vm5, %v7879_v11, %v4104_v14  ;;  %v4636_v14 = vld [vmem:[%s8144_s16 + $0x18] sm:$0xff] }
0x2454   : > { %v4119_v57 = vadd.f32 %v4115_v19, %v3798_v46  ;;  %v4551_v46 = vld [vmem:[%s8142_s14 + $0x18] sm:$0xff]  ;;  %v5502_v19 = vpack.c.bf16 %v4636_v14, %v4635_v5 }
0x2456   : > { %v3789_v55 = vpop.permute.xlu0 %3788 }
0x2457   : > { %v3797_v10 = vsel %vm3777_vm13, %v7906_v4, %v3789_v55  ;;  %v4371_v4 = vmul.f32 %v8392_v3, %v7957_v31  ;;  %v4638_v55 = vld [vmem:[%s8144_s16 + $0x28] sm:$0xff] }
0x2458   : > { %v3801_v20 = vadd.f32 %v3797_v10, %v3480_v15  ;;  %v5499_v15 = vpack.c.bf16 %v4634_v56, %v4633_v12 }
0x245a   : > { %v4110_v48 = vpop.permute.xlu0 %4109 }
0x245b   : > { %v4118_v1 = vsel %vm4098_vm11, %v4058_v0, %v4110_v48 }
0x245c   : > { %v4122_v29 = vadd.f32 %v4118_v1, %v3801_v20 }
0x245e   : > { %v4362_v30 = vpop.permute.xlu0 %4361 }
0x245f   : > { %v4370_v9 = vmul.f32 %v4362_v30, %v8394_v42  ;;  %v8401_v42 = vmov 0.0  }
0x2463   : > { %v4401_v33 = vpop.permute.xlu0 %4400 }
0x2464   : > { %vm4409_vm10 = vcmp.eq.s32.totalorder %v4401_v33, 1  ;;  %v4981_v33 = vld [vmem:[%s8141_s13] ss:$0 sm:$0xff] }
0x2480   : > { %v4407_v38 = vpop.permute.xlu0 %4406 }
0x2481   : > { %vm4411_vm6 = vcmp.eq.s32.totalorder %v4407_v38, 1 }
0x2484   : > { %v4417_v11 = vpop.permute.xlu0 %4416 }
0x2485   : > { %v4428_v27 = vsel %vm4408_vm2, %v7923_v23, %v4417_v11  ;;  %v4640_v11 = vld [vmem:[%s8144_s16 + $0x38] sm:$0xff] }
0x2486   : > { %v4432_v16 = vadd.f32 %v4428_v27, %v4119_v57  ;;  %v4637_v57 = vld [vmem:[%s8144_s16 + $0x20] sm:$0xff] }
0x2487   : > { %v5505_v10 = vpack.c.bf16 %v4638_v55, %v4637_v57 }
0x2488   : > { %v4423_v8 = vpop.permute.xlu0 %4422  ;;  %v4436_v23 = vmul.f32 %v4432_v16, %v8396_v7  ;;  %v4982_v16 = vld [vmem:[%s8143_s15] ss:$0 sm:$0xff] }
0x2489   : > { %v4431_v37 = vsel %vm4411_vm6, %v4371_v4, %v4423_v8 }
0x248a   : > { %v4435_v62 = vadd.f32 %v4431_v37, %v4122_v29  ;;  %v4980_v29 = vld [vmem:[%s8140_s12] ss:$0 sm:$0xff] }
0x248c   : > { %v4439_v36 = vmul.f32 %v4435_v62, %v8399_v35 }
0x24a2   : > { %v4404_v49 = vpop.permute.xlu1 %4403 }
0x24a3   : > { %vm4410_vm12 = vcmp.eq.s32.totalorder %v4404_v49, 1  ;;  %v4984_v49 = vld [vmem:[%s8145_s17] ss:$0 sm:$0xff] }
0x24a6   : > { %v4419_v59 = vpop.permute.xlu1 %4418 }
0x24a7   : > { %v4429_v22 = vsel %vm4409_vm10, %v4369_v44, %v4419_v59 }
0x24a8   : > { %v4433_v45 = vadd.f32 %v4429_v22, %v4120_v50 }
0x24aa   : > { %v4437_v54 = vmul.f32 %v4433_v45, %v8397_v28  ;;  %v4421_v3 = vpop.permute.xlu1 %4420 }
0x24ab   : > { %v4430_v31 = vsel %vm4410_vm12, %v4370_v9, %v4421_v3 }
0x24ac   : > { %v4440_v41 = vadd.f32 %v4437_v54, %v4436_v23  ;;  %v4434_v25 = vadd.f32 %v4430_v31, %v4121_v6  ;;  %v5496_v6 = vpack.c.bf16 %v4551_v46, %v4550_v43 }
0x24ae   : > { %v4438_v47 = vmul.f32 %v4434_v25, %v8398_v13  ;;  %5497 = vmatpush3.bf16.msra.mxu0 %v5496_v6 }
0x24b0   : > { %v4441_v58 = vadd.f32 %v4440_v41, %v4438_v47  ;;  %v4986_v47 = vld [vmem:[%s8146_s18] ss:$0 sm:$0xff] }
0x24b2   : > { %v4442_v34 = vadd.f32 %v4441_v58, %v4439_v36  ;;  %v4987_v36 = vld [vmem:[%s8147_s19] ss:$0 sm:$0xff] }
0x24b4   : > { %4444 = vrot.lane.b32.xlu1 %v4442_v34, %s8400_s30  ;;  %s5786_s30 = scalar_lea.vmem %s8087_s23, 128 }
0x24b5   : > { %p5787_p11 = scmp.ne.s32.totalorder %s8087_s23, %s5786_s30  ;;  %p5794_p1 = scmp.lt.s32.totalorder %s5792_s29, %s5786_s30 }
0x24b7   : > { %p5788_p12 = pnand %p5787_p11, %p6004_p5  ;;  %p5795_p2 = por %p5794_p1, %p5793_p0 }
0x24b9   : > { %p5789_p13 = pneg %p5788_p12 }
0x24bb   : > { %p5796_p3 = pnand %p5795_p2, %p5789_p13 }
0x2526   : > { %v4445_v39 = vpop.permute.xlu1 %4444 }
0x2527   : > { %5350 = vmatmul.mubr.msk.f32.vlgmr.msra.gmra.mrb[28].mxu1 %vm652_vm1, %v4445_v39 }
0x2528   : > { %5379 = vmatprep.mubr.msk.f32.mxu1 %vm5851_vm0, %v8401_v42  ;;  %5500 = vmatpush3.bf16.msra.mxu1 %v5499_v15  ;;  %vm8403_vm0 = vcmask 523264  }
0x2529   : > { %5501 = vmatprep.subr.bf16.mxu1 %v8395_v21 }
0x252c   : > { %5503 = vmatpush3.bf16.msra.mxu1 %v5502_v19 }
0x252d   : > { %5504 = vmatprep.subr.bf16.mxu1 %v8395_v21 }
0x2530   : > { %5506 = vmatpush3.bf16.msra.mxu1 %v5505_v10 }
0x2531   : > { %5507 = vmatprep.subr.bf16.mxu1 %v8395_v21  ;;  %v4639_v21 = vld [vmem:[%s8144_s16 + $0x30] sm:$0xff] }
0x2532   : > { %v5508_v27 = vpack.c.bf16 %v4640_v11, %v4639_v21 }
0x2534   : > { %5509 = vmatpush3.bf16.msra.mxu1 %v5508_v27 }
0x25fa   : > { %v4514_v40 = vpop.f32.mrb[28].mxu1 }
0x25fb   : > { %v4518_v18 = vadd.f32 %v4514_v40, %v8402_v61  ;;  %v5351_v26 = vpop.f32.mrb[29].mxu1 }
0x25fd   : > { %v4521_v50 = vsel %vm652_vm1, %v4518_v18, 0.0 }
0x25fe   : > { %4522 = vadd.xlane.f32.xlu0 %v4521_v50 }
0x268b   : > { %v4523_v17 = vpop.xlane.xlu0 %4522 }
0x268c   : > { %v4524_v24 = vmul.f32 0.03125, %v4523_v17 }
0x268e   : > { %v4525_v51 = vsub.f32 %v4518_v18, %v4524_v24 }
0x2690   : > { %v4526_v63 = vmul.f32 %v4525_v51, %v4525_v51 }
0x2692   : > { %v4527_v60 = vsel %vm652_vm1, %v4526_v63, 0.0 }
0x2693   : > { %4528 = vadd.xlane.f32.xlu1 %v4527_v60 }
0x2720   : > { %v4529_v20 = vpop.xlane.xlu1 %4528 }
0x2721   : > { %v4530_v0 = vmul.f32 0.03125, %v4529_v20 }
0x2723   : > { %v4531_v48 = vadd.f32 1e-05, %v4530_v0 }
0x2725   : > { %5777 = vrsqrt.f32 %v4531_v48 }
0x272f   : > { %v5778_v1 = vpop.eup %5777 }
0x2730   : > { %v4533_v30 = vmul.f32 %v5778_v1, %v4525_v51 }
0x2732   : > { %v4540_v38 = vmul.f32 %v4980_v29, %v4533_v30 }
0x2734   : > { %v4547_v52 = vadd.f32 %v4981_v33, %v4540_v38 }
0x2736   : > { %5361 = vmatmul.mubr.msk.f32.vlgmr.msra.gmra.mrb[36].mxu0 %vm652_vm1, %v4547_v52 }
0x2809   : > { %v4628_v4 = vpop.f32.mrb[36].mxu0 }
0x280a   : > { %v4629_v8 = vadd.f32 %v4982_v16, %v4628_v4  ;;  %v5362_v37 = vpop.f32.mrb[37].mxu0 }
0x280c   : > { %v4632_v62 = vmax.f32 %v4629_v8, 0.0 }
0x280e   : > { %5380 = vmatmul.mubr.msk.f32.vlgmr.msra.gmra.mrb[30].mxu1 %vm8403_vm0, %v4632_v62 }
0x28e1   : > { %v4717_v44 = vpop.f32.mrb[30].mxu1 }
0x28e2   : > { %v4718_v59 = vadd.f32 %v4984_v49, %v4717_v44  ;;  %v5381_v22 = vpop.f32.mrb[31].mxu1 }
0x28e4   : > { %v4721_v45 = vadd.f32 %v4718_v59, %v4547_v52 }
0x28e6   : > { %v4724_v9 = vsel %vm652_vm1, %v4721_v45, 0.0 }
0x28e7   : > { %4725 = vadd.xlane.f32.xlu0 %v4724_v9 }
0x2974   : > { %v4726_v7 = vpop.xlane.xlu0 %4725 }
0x2975   : > { %v4727_v23 = vmul.f32 0.03125, %v4726_v7 }
0x2977   : > { %v4728_v28 = vsub.f32 %v4721_v45, %v4727_v23 }
0x2979   : > { %v4729_v54 = vmul.f32 %v4728_v28, %v4728_v28 }
0x297b   : > { %v4730_v3 = vsel %vm652_vm1, %v4729_v54, 0.0 }
0x297c   : > { %4731 = vadd.xlane.f32.xlu0 %v4730_v3 }
0x2a09   : > { %v4732_v31 = vpop.xlane.xlu0 %4731 }
0x2a0a   : > { %v4733_v41 = vmul.f32 0.03125, %v4732_v31 }
0x2a0c   : > { %v4734_v25 = vadd.f32 1e-05, %v4733_v41 }
0x2a0e   : > { %5779 = vrsqrt.f32 %v4734_v25 }
0x2a18   : > { %v5780_v13 = vpop.eup %5779 }
0x2a19   : > { %v4736_v35 = vmul.f32 %v5780_v13, %v4728_v28 }
0x2a1b   : > { %v4743_v58 = vmul.f32 %v4986_v47, %v4736_v35 }
0x2a1d   : > { %v4750_v34 = vadd.f32 %v4987_v36, %v4743_v58 }
0x2a1f   : > { %4751 = vst.msk [vmem:[%s633_s3] sm:$0xff] %vm652_vm1, %v4750_v34 }
0x2a20   : > { %5799 = shalt.err (!%p5796_p3)
}
0x2a21   : > { %s5800_s25 = scalar_lea.hbm %s8085_s21, 128  ;;  %s5804_s3 = scalar_lea.hbm %s8148_s20, 256 }
0x2a22   : > { %p5801_p4 = scmp.ne.s32.totalorder %s8085_s21, %s5800_s25  ;;  %p5805_p9 = scmp.lt.u32.totalorder %s8085_s21, %s8148_s20 }
0x2a23   : > { %p5806_p10 = scmp.lt.u32.totalorder %s5804_s3, %s5800_s25  ;;  %p5808_p12 = scmp.lt.u32.totalorder %s5800_s25, %s8085_s21 }
0x2a24   : > { %p5802_p7 = pnand %p5801_p4, %p6004_p5 }
0x2a25   : > { %p5807_p11 = por %p5806_p10, %p5805_p9 }
0x2a26   : > { %p5803_p8 = pneg %p5802_p7 }
0x2a27   : > { %p5809_p13 = por %p5808_p12, %p5807_p11 }
0x2a29   : > { %p5810_p0 = pnand %p5809_p13, %p5803_p8 }
0x2a2b   : > { %5813 = shalt.err (!%p5810_p0)
}
0x2a2c   : > { %5512 = dma.vmem_to_hbm [thread:$0]  (%p6004_p5), %s8087_s23, 128, %s8085_s21, %s4753_s5  }
0x2a2d PF: > { %s8404_s30 = sld [smem:[#allocation5_spill]]  ;;  %p5518_p1 = scmp.ge.s32.totalorder %s5848_s24, 2 }
0x2a2f   : > { %p5515_p2 = pnand %p5518_p1, %p6008_p6 }
0x2a33   : > { %s4778_s0 = sand.u32 1, %s8404_s30  }
0x2a34   : > { %s4779_s29 = scalar_lea.sflag [#allocation3], %s4778_s0 }
0x2a35   : > { %5831 = dma.done.wait (!%p5515_p2), %s4779_s29, 128  }
0x2a36   : > { %5833 = vsyncadd (!%p5515_p2), %s4779_s29, 4294967168  ;;  %s8406_s24 = sld [smem:[#allocation7_spill]]  ;;  %s8407_s25 = sld [smem:[#allocation6_spill]] }
0x2a37   : > { %s8408_s23 = sld [smem:[#allocation8_spill]]  ;;  %s8409_s1 = smov %s5840_s22 }
0x2a3c   : > { %p30_p3 = scmp.ge.s32.totalorder %s8406_s24, 4   ;;  %s8410_s22 = smov %s8407_s25 }
0x2a3e   :  { %32 = sbr.rel (!%p30_p3) target bundleno = 11 (0xb), region = 138 }
0x2a45   :  { %4784 = vsyncpa [#allocation3], 1 }
0x2a46   :  { %4786 = vsyncpa [#allocation3 + $0x1], 1 }

</bundles_post_ra>
